<compile_context>
chip_gen: v6e
topology: v6e:2x2x1
jax: 0.10.0
libtpu: 0.0.40
codegen_flags: <defaults>
</compile_context>

<pallas_src>
import functools
import math

import jax
import jax.numpy as jnp
from jax.experimental import pallas as pl
from jax.experimental.pallas import tpu as pltpu


MATMUL_DTYPE = jnp.bfloat16          # MXU input dtype; accumulation is always f32.
LN_EPS = 1e-5                        # PyTorch nn.LayerNorm default.


# --------------------------- compiler / tiling helpers -------------------------

@functools.lru_cache(maxsize=None)
def _vmem_limit_bytes():
    """Generation-aware scoped-VMEM budget (~75% of physical, capped at 100 MiB)."""
    cap = 128 * 1024 * 1024
    try:
        got = getattr(pltpu.get_tpu_info(), "vmem_capacity_bytes", None)
        if got:
            cap = int(got)
    except Exception:
        pass
    return int(min(cap * 3 // 4, 100 * 1024 * 1024))


def _compiler_params(dim_sem):
    return pltpu.CompilerParams(
        dimension_semantics=dim_sem,
        vmem_limit_bytes=_vmem_limit_bytes(),
    )


def _pick_tile(n, max_tile, align):
    """Largest tile <= max_tile (multiple of `align`) dividing n; whole n if small/awkward."""
    if n <= max_tile:
        return n
    t = (max_tile // align) * align
    while t >= align:
        if n % t == 0:
            return t
        t -= align
    return n


def _row_tiling(m, max_rows=512):
    """Row tile + padded row count: prefer large tiles, pad instead of shrinking."""
    if m <= max_rows:
        return m, m
    bm = _pick_tile(m, max_rows, 8)
    if bm == m:                       # no aligned divisor: pad up instead
        bm = max_rows
        m = ((m + bm - 1) // bm) * bm
    return bm, m


# --------------------------- in-kernel building blocks -------------------------

def _mm(a, b):
    """MXU matmul: low-precision inputs (no-op cast for pre-cast weights), f32 accumulation."""
    return jnp.dot(a.astype(MATMUL_DTYPE), b.astype(MATMUL_DTYPE),
                   preferred_element_type=jnp.float32)


def _attention_core(q, k, v, mask, num_heads):
    """q: (tq, D) f32 (already scaled), k/v: (Skv, D) f32, mask: (1|tq, Skv) (1 = keep)."""
    tq, D = q.shape
    Skv = k.shape[0]
    Dh = D // num_heads
    qh = jnp.transpose(q.reshape(tq, num_heads, Dh), (1, 0, 2)).astype(MATMUL_DTYPE)
    kh = jnp.transpose(k.reshape(Skv, num_heads, Dh), (1, 0, 2)).astype(MATMUL_DTYPE)
    vh = jnp.transpose(v.reshape(Skv, num_heads, Dh), (1, 0, 2)).astype(MATMUL_DTYPE)

    s = jnp.einsum("hqd,hkd->hqk", qh, kh, preferred_element_type=jnp.float32)
    s = jnp.where(mask[None, :, :] > 0, s, jnp.float32(-1e9))
    s = s - jnp.max(s, axis=-1, keepdims=True)
    p = jnp.exp(s)                                                    # values in [0, 1]
    denom = jnp.maximum(jnp.sum(p, axis=-1, keepdims=True), jnp.float32(1e-20))

    ctx = jnp.einsum("hqk,hkd->hqd", p.astype(MATMUL_DTYPE), vh,
                     preferred_element_type=jnp.float32)              # (H, tq, Dh)
    ctx = ctx * pl.reciprocal(denom, approx=True)                     # normalize small tensor
    return jnp.transpose(ctx, (1, 0, 2)).reshape(tq, D)


def _residual_layernorm(x, y, gamma, beta, eps):
    """LayerNorm(x + y) over last dim; f32 statistics (PyTorch biased variance)."""
    r = x + y
    mean = jnp.mean(r, axis=-1, keepdims=True)
    var = jnp.mean(jnp.square(r - mean), axis=-1, keepdims=True)
    rn = (r - mean) * jax.lax.rsqrt(var + eps)
    return rn * gamma.astype(jnp.float32) + beta.astype(jnp.float32)


# ------------------------------- fused kernels ---------------------------------

def _attn_block_kernel(xq_ref, kvsrc_ref, m_ref, wq_ref, bq_ref, wkv_ref, bkv_ref,
                       wo_ref, bo_ref, g_ref, b_ref, o_ref, *, num_heads, scale, eps):
    """Q proj (tile) + fused KV proj (full) -> MHA -> out proj -> residual -> LayerNorm."""
    xq = xq_ref[0].astype(jnp.float32)                                  # (tq, D)
    xkv = kvsrc_ref[0].astype(jnp.float32)                              # (Skv, D)
    D = xq.shape[-1]
    q = (_mm(xq, wq_ref[...]) + bq_ref[...].astype(jnp.float32)) * scale
    kv = _mm(xkv, wkv_ref[...]) + bkv_ref[...].astype(jnp.float32)      # (Skv, 2D)
    ctx = _attention_core(q, kv[:, :D], kv[:, D:], m_ref[0], num_heads)
    out = _mm(ctx, wo_ref[...]) + bo_ref[...].astype(jnp.float32)
    o_ref[0] = _residual_layernorm(xq, out, g_ref[...], b_ref[...], eps).astype(o_ref.dtype)


def _ffn_block_kernel(x_ref, w1_ref, b1_ref, w2_ref, b2_ref, g_ref, b_ref, o_ref,
                      acc_ref, *, eps):
    """Hidden-dim-tiled FFN: accumulate relu(x@w1_f)@w2_f; finalize residual + LayerNorm."""
    f = pl.program_id(1)

    @pl.when(f == 0)
    def _():
        acc_ref[...] = jnp.zeros_like(acc_ref)

    x = x_ref[...].astype(jnp.float32)                                   # (bm, D)
    h = jnp.maximum(_mm(x, w1_ref[...]) + b1_ref[...].astype(jnp.float32), 0.0)
    acc_ref[...] += _mm(h, w2_ref[...])

    @pl.when(f == pl.num_programs(1) - 1)
    def _():
        y = acc_ref[...] + b2_ref[...].astype(jnp.float32)
        o_ref[...] = _residual_layernorm(x_ref[...].astype(jnp.float32), y,
                                         g_ref[...], b_ref[...], eps).astype(o_ref.dtype)


def _vocab_proj_kernel(x_ref, w_ref, b_ref, o_ref):
    o_ref[...] = (_mm(x_ref[...], w_ref[...])
                  + b_ref[...].astype(jnp.float32)).astype(o_ref.dtype)


# ------------------------------ pallas wrappers ---------------------------------

def attention_block(x, kv_src, mask, wq, bq, wkv, bkv, wo, bo, gamma, beta, num_heads):
    """Fused attention sub-block (self-attn: kv_src is x; cross-attn: kv_src is enc)."""
    B, Sq, D = x.shape
    Skv = kv_src.shape[1]
    Bm, Sqm, Skm = mask.shape
    assert Bm in (1, B) and Sqm in (1, Sq) and Skm == Skv
    tq = _pick_tile(Sq, 256, 8)
    scale = 1.0 / math.sqrt(D // num_heads)
    mq = tq if Sqm != 1 else 1
    b_of = (lambda b: b) if Bm == B else (lambda b: 0)
    q_of = (lambda qi: qi) if Sqm != 1 else (lambda qi: 0)
    kernel = functools.partial(_attn_block_kernel,
                               num_heads=num_heads, scale=scale, eps=LN_EPS)
    return pl.pallas_call(
        kernel,
        out_shape=jax.ShapeDtypeStruct((B, Sq, D), x.dtype),
        grid=(B, Sq // tq),
        in_specs=[
            pl.BlockSpec((1, tq, D), lambda b, qi: (b, qi, 0)),      # query tile
            pl.BlockSpec((1, Skv, D), lambda b, qi: (b, 0, 0)),      # full KV source
            pl.BlockSpec((1, mq, Skv), lambda b, qi: (b_of(b), q_of(qi), 0)),
            pl.BlockSpec((D, D), lambda b, qi: (0, 0)),
            pl.BlockSpec((1, D), lambda b, qi: (0, 0)),
            pl.BlockSpec((D, 2 * D), lambda b, qi: (0, 0)),
            pl.BlockSpec((1, 2 * D), lambda b, qi: (0, 0)),
            pl.BlockSpec((D, D), lambda b, qi: (0, 0)),
            pl.BlockSpec((1, D), lambda b, qi: (0, 0)),
            pl.BlockSpec((1, D), lambda b, qi: (0, 0)),
            pl.BlockSpec((1, D), lambda b, qi: (0, 0)),
        ],
        out_specs=pl.BlockSpec((1, tq, D), lambda b, qi: (b, qi, 0)),
        compiler_params=_compiler_params(("parallel", "parallel")),
    )(x, kv_src, mask, wq, bq.reshape(1, -1), wkv, bkv.reshape(1, -1),
      wo, bo.reshape(1, -1), gamma.reshape(1, -1), beta.reshape(1, -1))


def ffn_block(x2d, w1, b1, w2, b2, gamma, beta):
    M, D = x2d.shape
    F = w1.shape[1]
    bm, Mp = _row_tiling(M)
    tf = _pick_tile(F, 512, 128)
    x_in = x2d if Mp == M else jnp.pad(x2d, ((0, Mp - M), (0, 0)))
    kernel = functools.partial(_ffn_block_kernel, eps=LN_EPS)
    out = pl.pallas_call(
        kernel,
        out_shape=jax.ShapeDtypeStruct((Mp, D), x2d.dtype),
        grid=(Mp // bm, F // tf),
        in_specs=[
            pl.BlockSpec((bm, D), lambda i, f: (i, 0)),
            pl.BlockSpec((D, tf), lambda i, f: (0, f)),
            pl.BlockSpec((1, tf), lambda i, f: (0, f)),
            pl.BlockSpec((tf, D), lambda i, f: (f, 0)),
            pl.BlockSpec((1, D), lambda i, f: (0, 0)),
            pl.BlockSpec((1, D), lambda i, f: (0, 0)),
            pl.BlockSpec((1, D), lambda i, f: (0, 0)),
        ],
        out_specs=pl.BlockSpec((bm, D), lambda i, f: (i, 0)),
        scratch_shapes=[pltpu.VMEM((bm, D), jnp.float32)],
        compiler_params=_compiler_params(("parallel", "arbitrary")),
    )(x_in, w1, b1.reshape(1, F), w2, b2.reshape(1, D),
      gamma.reshape(1, D), beta.reshape(1, D))
    return out if Mp == M else out[:M]


def vocab_projection(x2d, wf_padded, bf_padded):
    """wf_padded / bf_padded are already padded to a multiple of 128 lanes."""
    M, D = x2d.shape
    Vp = wf_padded.shape[1]
    bm, Mp = _row_tiling(M)
    tn = _pick_tile(Vp, 512, 128)
    x_in = x2d if Mp == M else jnp.pad(x2d, ((0, Mp - M), (0, 0)))
    out = pl.pallas_call(
        _vocab_proj_kernel,
        out_shape=jax.ShapeDtypeStruct((Mp, Vp), x2d.dtype),
        grid=(Mp // bm, Vp // tn),
        in_specs=[
            pl.BlockSpec((bm, D), lambda i, j: (i, 0)),
            pl.BlockSpec((D, tn), lambda i, j: (0, j)),
            pl.BlockSpec((1, tn), lambda i, j: (0, j)),
        ],
        out_specs=pl.BlockSpec((bm, tn), lambda i, j: (i, j)),
        compiler_params=_compiler_params(("parallel", "parallel")),
    )(x_in, wf_padded, bf_padded.reshape(1, Vp))
    return out if Mp == M else out[:M]


# ------------------------------ model wiring ------------------------------------

def _normalize_mask(mask):
    """Accept (B?,1,Sq?,Sk), (B?,Sq?,Sk) or (Sq,Sk); return (1-or-B, 1-or-Sq, Sk)."""
    m = jnp.asarray(mask)
    if m.ndim == 4:
        m = m[:, 0]
    elif m.ndim == 2:
        m = m[None]
    return m


def decoder_layer(p, enc_output, src_mask, tgt, look_ahead_mask, num_heads):
    B, St, D = tgt.shape
    x = attention_block(tgt, tgt, look_ahead_mask,
                        p["wq1"], p["bq1"], p["wkv1"], p["bkv1"], p["wo1"], p["bo1"],
                        p["ln1_g"], p["ln1_b"], num_heads)
    x = attention_block(x, enc_output, src_mask,
                        p["wq2"], p["bq2"], p["wkv2"], p["bkv2"], p["wo2"], p["bo2"],
                        p["ln2_g"], p["ln2_b"], num_heads)
    h = ffn_block(x.reshape(B * St, D), p["w1"], p["b1"], p["w2"], p["b2"],
                  p["ln3_g"], p["ln3_b"])
    return h.reshape(B, St, D)


def decoder_forward(params, enc_output, src_mask, tgt, look_ahead_mask,
                    num_heads, vocab_size):
    B, St, D = tgt.shape
    la_mask = _normalize_mask(look_ahead_mask)
    s_mask = _normalize_mask(src_mask)
    for layer_p in params["layers"]:
        tgt = decoder_layer(layer_p, enc_output, s_mask, tgt, la_mask, num_heads)
    logits = vocab_projection(tgt.reshape(B * St, D), params["wf"], params["bf"])
    logits = logits[:, :vocab_size]   # no-op when vocab_size % 128 == 0
    return logits.reshape(B, St, vocab_size)   # module never applies its softmax


# ------------------------------- param init -------------------------------------

def _dense(key, fan_in, fan_out):
    k1, k2 = jax.random.split(key)
    s = 1.0 / math.sqrt(fan_in)
    w = jax.random.uniform(k1, (fan_in, fan_out), jnp.float32, -s, s)
    b = jax.random.uniform(k2, (fan_out,), jnp.float32, -s, s)
    return w, b


def init_params(key, dim_model, num_layers, num_heads, ffn_val, vocab_size):
    layers = []
    for _ in range(num_layers):
        key, *ks = jax.random.split(key, 9)
        wq1, bq1 = _dense(ks[0], dim_model, dim_model)
        wkv1, bkv1 = _dense(ks[1], dim_model, 2 * dim_model)   # fused K,V
        wo1, bo1 = _dense(ks[2], dim_model, dim_model)
        wq2, bq2 = _dense(ks[3], dim_model, dim_model)
        wkv2, bkv2 = _dense(ks[4], dim_model, 2 * dim_model)   # fused K,V
        wo2, bo2 = _dense(ks[5], dim_model, dim_model)
        w1, b1 = _dense(ks[6], dim_model, ffn_val)
        w2, b2 = _dense(ks[7], ffn_val, dim_model)
        ones = jnp.ones((dim_model,), jnp.float32)
        zeros = jnp.zeros((dim_model,), jnp.float32)
        layers.append(dict(
            wq1=wq1, bq1=bq1, wkv1=wkv1, bkv1=bkv1, wo1=wo1, bo1=bo1,
            wq2=wq2, bq2=bq2, wkv2=wkv2, bkv2=bkv2, wo2=wo2, bo2=bo2,
            w1=w1, b1=b1, w2=w2, b2=b2,
            ln1_g=ones, ln1_b=zeros, ln2_g=ones, ln2_b=zeros, ln3_g=ones, ln3_b=zeros,
        ))
    key, kf = jax.random.split(key)
    wf, bf = _dense(kf, dim_model, vocab_size)
    return {"layers": layers, "wf": wf, "bf": bf}


def prepare_params(params):
    """One-time HBM prep: pre-cast matmul weights to MXU dtype; pad vocab weight to 128 lanes."""
    layers = []
    for p in params["layers"]:
        q = dict(p)
        for name in ("wq1", "wkv1", "wo1", "wq2", "wkv2", "wo2", "w1", "w2"):
            q[name] = p[name].astype(MATMUL_DTYPE)
        layers.append(q)
    wf, bf = params["wf"], params["bf"]
    V = wf.shape[1]
    Vp = ((V + 127) // 128) * 128
    if Vp != V:
        wf = jnp.pad(wf, ((0, 0), (0, Vp - V)))
        bf = jnp.pad(bf, (0, Vp - V))
    return {"layers": layers, "wf": wf.astype(MATMUL_DTYPE), "bf": bf}


# ---------------------------------- main -----------------------------------------

if __name__ == "__main__":
    B, S_TGT, S_SRC = 2, 8, 8
    DIM_MODEL, NUM_LAYERS, NUM_HEADS, FFN_VAL, VOCAB = 32, 2, 4, 64, 16

    root = jax.random.PRNGKey(0)
    kp, ke, kt = jax.random.split(root, 3)

    params = prepare_params(init_params(kp, DIM_MODEL, NUM_LAYERS, NUM_HEADS, FFN_VAL, VOCAB))

    enc_output = jax.random.normal(ke, (B, S_SRC, DIM_MODEL), jnp.float32)
    tgt = jax.random.normal(kt, (B, S_TGT, DIM_MODEL), jnp.float32)
    # masks: 1 = attend, 0 = masked (PyTorch-style (B,1,1,Ssrc) and (1,1,St,St))
    src_mask = jnp.ones((B, 1, 1, S_SRC), jnp.float32)
    look_ahead_mask = jnp.tril(jnp.ones((S_TGT, S_TGT), jnp.float32)).reshape(1, 1, S_TGT, S_TGT)

    fwd = jax.jit(functools.partial(decoder_forward, num_heads=NUM_HEADS, vocab_size=VOCAB))
    out = fwd(params, enc_output, src_mask, tgt, look_ahead_mask)
    jax.block_until_ready(out)

    assert out.shape == (B, S_TGT, VOCAB), out.shape
    assert jnp.all(jnp.isfinite(out))
    print("KERNEL_OK")
</pallas_src>

<mosaic_0001>
module attributes {stable_mosaic.version = 11 : i64} {
  func.func @_attn_block_kernel(%arg0: i32, %arg1: i32, %arg2: memref<1x8x32xf32, #tpu.memory_space<vmem>>, %arg3: memref<1x8x32xf32, #tpu.memory_space<vmem>>, %arg4: memref<1x8x8xf32, #tpu.memory_space<vmem>>, %arg5: memref<32x32xbf16, #tpu.memory_space<vmem>>, %arg6: memref<1x32xf32, #tpu.memory_space<vmem>>, %arg7: memref<32x64xbf16, #tpu.memory_space<vmem>>, %arg8: memref<1x64xf32, #tpu.memory_space<vmem>>, %arg9: memref<32x32xbf16, #tpu.memory_space<vmem>>, %arg10: memref<1x32xf32, #tpu.memory_space<vmem>>, %arg11: memref<1x32xf32, #tpu.memory_space<vmem>>, %arg12: memref<1x32xf32, #tpu.memory_space<vmem>>, %arg13: memref<1x8x32xf32, #tpu.memory_space<vmem>>) attributes {dimension_semantics = [#tpu.dimension_semantics<parallel>, #tpu.dimension_semantics<parallel>], iteration_bounds = array<i64: 2, 1>, scalar_prefetch = 0 : i64, scratch_operands = 0 : i64, tpu.core_type = #tpu.core_type<tc>, window_params = [{transform_indices = @transform_0, window_bounds = array<i64: 1, 8, 32>}, {transform_indices = @transform_1, window_bounds = array<i64: 1, 8, 32>}, {transform_indices = @transform_2, window_bounds = array<i64: 1, 8, 8>}, {pipeline_mode = #tpu.pipeline_mode<synchronous>, transform_indices = @transform_3, window_bounds = array<i64: 32, 32>}, {pipeline_mode = #tpu.pipeline_mode<synchronous>, transform_indices = @transform_4, window_bounds = array<i64: 1, 32>}, {pipeline_mode = #tpu.pipeline_mode<synchronous>, transform_indices = @transform_5, window_bounds = array<i64: 32, 64>}, {pipeline_mode = #tpu.pipeline_mode<synchronous>, transform_indices = @transform_6, window_bounds = array<i64: 1, 64>}, {pipeline_mode = #tpu.pipeline_mode<synchronous>, transform_indices = @transform_7, window_bounds = array<i64: 32, 32>}, {pipeline_mode = #tpu.pipeline_mode<synchronous>, transform_indices = @transform_8, window_bounds = array<i64: 1, 32>}, {pipeline_mode = #tpu.pipeline_mode<synchronous>, transform_indices = @transform_9, window_bounds = array<i64: 1, 32>}, {pipeline_mode = #tpu.pipeline_mode<synchronous>, transform_indices = @transform_10, window_bounds = array<i64: 1, 32>}, {transform_indices = @transform_11, window_bounds = array<i64: 1, 8, 32>}]} {
    %c0 = arith.constant 0 : index
    %c0_0 = arith.constant 0 : index
    %c0_1 = arith.constant 0 : index
    %0 = vector.load %arg2[%c0, %c0_0, %c0_1] : memref<1x8x32xf32, #tpu.memory_space<vmem>>, vector<1x8x32xf32>
    %1 = vector.shape_cast %0 : vector<1x8x32xf32> to vector<8x32xf32>
    %c0_2 = arith.constant 0 : index
    %c0_3 = arith.constant 0 : index
    %c0_4 = arith.constant 0 : index
    %2 = vector.load %arg3[%c0_2, %c0_3, %c0_4] : memref<1x8x32xf32, #tpu.memory_space<vmem>>, vector<1x8x32xf32>
    %3 = vector.shape_cast %2 : vector<1x8x32xf32> to vector<8x32xf32>
    %c0_5 = arith.constant 0 : index
    %c0_6 = arith.constant 0 : index
    %4 = vector.load %arg5[%c0_5, %c0_6] : memref<32x32xbf16, #tpu.memory_space<vmem>>, vector<32x32xbf16>
    %5 = arith.truncf %1 : vector<8x32xf32> to vector<8x32xbf16>
    %cst = arith.constant dense<0.000000e+00> : vector<8x32xf32>
    %6 = tpu.matmul %5, %4, %cst {dimension_numbers = #tpu.dot_dimension_numbers<[1], [0], [0], [1], [0, 0, 1, 1], [], []>} : vector<8x32xbf16>, vector<32x32xbf16>, vector<8x32xf32> -> vector<8x32xf32>
    %c0_7 = arith.constant 0 : index
    %c0_8 = arith.constant 0 : index
    %7 = vector.load %arg6[%c0_7, %c0_8] : memref<1x32xf32, #tpu.memory_space<vmem>>, vector<1x32xf32>
    %8 = vector.broadcast %7 : vector<1x32xf32> to vector<8x32xf32>
    %9 = arith.addf %6, %8 : vector<8x32xf32>
    %cst_9 = arith.constant 0.353553385 : f32
    %10 = vector.broadcast %cst_9 : f32 to vector<8x32xf32>
    %11 = arith.mulf %9, %10 : vector<8x32xf32>
    %c0_10 = arith.constant 0 : index
    %c0_11 = arith.constant 0 : index
    %12 = vector.load %arg7[%c0_10, %c0_11] : memref<32x64xbf16, #tpu.memory_space<vmem>>, vector<32x64xbf16>
    %13 = arith.truncf %3 : vector<8x32xf32> to vector<8x32xbf16>
    %cst_12 = arith.constant dense<0.000000e+00> : vector<8x64xf32>
    %14 = tpu.matmul %13, %12, %cst_12 {dimension_numbers = #tpu.dot_dimension_numbers<[1], [0], [0], [1], [0, 0, 1, 1], [], []>} : vector<8x32xbf16>, vector<32x64xbf16>, vector<8x64xf32> -> vector<8x64xf32>
    %c0_13 = arith.constant 0 : index
    %c0_14 = arith.constant 0 : index
    %15 = vector.load %arg8[%c0_13, %c0_14] : memref<1x64xf32, #tpu.memory_space<vmem>>, vector<1x64xf32>
    %16 = vector.broadcast %15 : vector<1x64xf32> to vector<8x64xf32>
    %17 = arith.addf %14, %16 : vector<8x64xf32>
    %18 = vector.extract_strided_slice %17 {offsets = [0, 0], sizes = [8, 32], strides = [1, 1]} : vector<8x64xf32> to vector<8x32xf32>
    %19 = vector.extract_strided_slice %17 {offsets = [0, 32], sizes = [8, 32], strides = [1, 1]} : vector<8x64xf32> to vector<8x32xf32>
    %c0_15 = arith.constant 0 : index
    %c0_16 = arith.constant 0 : index
    %c0_17 = arith.constant 0 : index
    %20 = vector.load %arg4[%c0_15, %c0_16, %c0_17] : memref<1x8x8xf32, #tpu.memory_space<vmem>>, vector<1x8x8xf32>
    %21 = vector.shape_cast %20 : vector<1x8x8xf32> to vector<8x8xf32>
    %22 = vector.shape_cast %11 : vector<8x32xf32> to vector<8x4x8xf32>
    %23 = tpu.transpose %22, [1, 0, 2] : vector<8x4x8xf32> -> vector<4x8x8xf32>
    %24 = arith.truncf %23 : vector<4x8x8xf32> to vector<4x8x8xbf16>
    %25 = vector.shape_cast %18 : vector<8x32xf32> to vector<8x4x8xf32>
    %26 = tpu.transpose %25, [1, 0, 2] : vector<8x4x8xf32> -> vector<4x8x8xf32>
    %27 = arith.truncf %26 : vector<4x8x8xf32> to vector<4x8x8xbf16>
    %28 = vector.shape_cast %19 : vector<8x32xf32> to vector<8x4x8xf32>
    %29 = tpu.transpose %28, [1, 0, 2] : vector<8x4x8xf32> -> vector<4x8x8xf32>
    %30 = arith.truncf %29 : vector<4x8x8xf32> to vector<4x8x8xbf16>
    "tpu.trace_start"() <{level = 10 : i32, message = "hqd,hkd->hqk"}> : () -> ()
    %cst_18 = arith.constant dense<0.000000e+00> : vector<4x8x8xf32>
    %31 = tpu.matmul %24, %27, %cst_18 {dimension_numbers = #tpu.dot_dimension_numbers<[2], [2], [1], [1], [0, 0, 0, 1, 1, 1], [0], [0]>} : vector<4x8x8xbf16>, vector<4x8x8xbf16>, vector<4x8x8xf32> -> vector<4x8x8xf32>
    "tpu.trace_stop"() : () -> ()
    %32 = vector.shape_cast %21 : vector<8x8xf32> to vector<1x8x8xf32>
    %cst_19 = arith.constant 0.000000e+00 : f32
    %33 = vector.broadcast %cst_19 : f32 to vector<1x8x8xf32>
    %34 = arith.cmpf ogt, %32, %33 : vector<1x8x8xf32>
    %cst_20 = arith.constant -1.000000e+09 : f32
    %35 = vector.shape_cast %34 : vector<1x8x8xi1> to vector<1x8x8xi1>
    %36 = vector.broadcast %35 : vector<1x8x8xi1> to vector<4x8x8xi1>
    %37 = vector.broadcast %cst_20 : f32 to vector<4x8x8xf32>
    %38 = arith.select %36, %31, %37 : vector<4x8x8xi1>, vector<4x8x8xf32>
    %cst_21 = arith.constant dense<0xFF800000> : vector<4x8xf32>
    %39 = vector.multi_reduction <maximumf>, %38, %cst_21 [2] : vector<4x8x8xf32> to vector<4x8xf32>
    %40 = vector.shape_cast %39 : vector<4x8xf32> to vector<4x8x1xf32>
    %41 = vector.broadcast %40 : vector<4x8x1xf32> to vector<4x8x8xf32>
    %42 = arith.subf %38, %41 : vector<4x8x8xf32>
    %43 = math.exp %42 : vector<4x8x8xf32>
    %cst_22 = arith.constant dense<0.000000e+00> : vector<4x8xf32>
    %44 = vector.multi_reduction <add>, %43, %cst_22 [2] : vector<4x8x8xf32> to vector<4x8xf32>
    %45 = vector.shape_cast %44 : vector<4x8xf32> to vector<4x8x1xf32>
    %cst_23 = arith.constant 9.99999968E-21 : f32
    %46 = vector.broadcast %cst_23 : f32 to vector<4x8x1xf32>
    %47 = arith.maximumf %45, %46 : vector<4x8x1xf32>
    %48 = arith.truncf %43 : vector<4x8x8xf32> to vector<4x8x8xbf16>
    "tpu.trace_start"() <{level = 10 : i32, message = "hqk,hkd->hqd"}> : () -> ()
    %cst_24 = arith.constant dense<0.000000e+00> : vector<4x8x8xf32>
    %49 = tpu.matmul %48, %30, %cst_24 {dimension_numbers = #tpu.dot_dimension_numbers<[2], [1], [1], [2], [0, 0, 0, 1, 1, 2], [0], [0]>} : vector<4x8x8xbf16>, vector<4x8x8xbf16>, vector<4x8x8xf32> -> vector<4x8x8xf32>
    "tpu.trace_stop"() : () -> ()
    %50 = tpu.reciprocal %47 {approx = true} : vector<4x8x1xf32> -> vector<4x8x1xf32>
    %51 = vector.broadcast %50 : vector<4x8x1xf32> to vector<4x8x8xf32>
    %52 = arith.mulf %49, %51 : vector<4x8x8xf32>
    %53 = tpu.transpose %52, [1, 0, 2] : vector<4x8x8xf32> -> vector<8x4x8xf32>
    %54 = vector.shape_cast %53 : vector<8x4x8xf32> to vector<8x32xf32>
    %c0_25 = arith.constant 0 : index
    %c0_26 = arith.constant 0 : index
    %55 = vector.load %arg9[%c0_25, %c0_26] : memref<32x32xbf16, #tpu.memory_space<vmem>>, vector<32x32xbf16>
    %56 = arith.truncf %54 : vector<8x32xf32> to vector<8x32xbf16>
    %cst_27 = arith.constant dense<0.000000e+00> : vector<8x32xf32>
    %57 = tpu.matmul %56, %55, %cst_27 {dimension_numbers = #tpu.dot_dimension_numbers<[1], [0], [0], [1], [0, 0, 1, 1], [], []>} : vector<8x32xbf16>, vector<32x32xbf16>, vector<8x32xf32> -> vector<8x32xf32>
    %c0_28 = arith.constant 0 : index
    %c0_29 = arith.constant 0 : index
    %58 = vector.load %arg10[%c0_28, %c0_29] : memref<1x32xf32, #tpu.memory_space<vmem>>, vector<1x32xf32>
    %59 = vector.broadcast %58 : vector<1x32xf32> to vector<8x32xf32>
    %60 = arith.addf %57, %59 : vector<8x32xf32>
    %c0_30 = arith.constant 0 : index
    %c0_31 = arith.constant 0 : index
    %61 = vector.load %arg11[%c0_30, %c0_31] : memref<1x32xf32, #tpu.memory_space<vmem>>, vector<1x32xf32>
    %c0_32 = arith.constant 0 : index
    %c0_33 = arith.constant 0 : index
    %62 = vector.load %arg12[%c0_32, %c0_33] : memref<1x32xf32, #tpu.memory_space<vmem>>, vector<1x32xf32>
    %63 = arith.addf %1, %60 : vector<8x32xf32>
    %cst_34 = arith.constant dense<0.000000e+00> : vector<8xf32>
    %64 = vector.multi_reduction <add>, %63, %cst_34 [1] : vector<8x32xf32> to vector<8xf32>
    %65 = vector.shape_cast %64 : vector<8xf32> to vector<8x1xf32>
    %cst_35 = arith.constant 3.200000e+01 : f32
    %66 = vector.broadcast %cst_35 : f32 to vector<8x1xf32>
    %67 = arith.divf %65, %66 : vector<8x1xf32>
    %68 = vector.broadcast %67 : vector<8x1xf32> to vector<8x32xf32>
    %69 = arith.subf %63, %68 : vector<8x32xf32>
    %70 = arith.mulf %69, %69 : vector<8x32xf32>
    %cst_36 = arith.constant dense<0.000000e+00> : vector<8xf32>
    %71 = vector.multi_reduction <add>, %70, %cst_36 [1] : vector<8x32xf32> to vector<8xf32>
    %72 = vector.shape_cast %71 : vector<8xf32> to vector<8x1xf32>
    %cst_37 = arith.constant 3.200000e+01 : f32
    %73 = vector.broadcast %cst_37 : f32 to vector<8x1xf32>
    %74 = arith.divf %72, %73 : vector<8x1xf32>
    %75 = vector.broadcast %67 : vector<8x1xf32> to vector<8x32xf32>
    %76 = arith.subf %63, %75 : vector<8x32xf32>
    %cst_38 = arith.constant 9.99999974E-6 : f32
    %77 = vector.broadcast %cst_38 : f32 to vector<8x1xf32>
    %78 = arith.addf %74, %77 : vector<8x1xf32>
    %79 = math.rsqrt %78 : vector<8x1xf32>
    %80 = vector.broadcast %79 : vector<8x1xf32> to vector<8x32xf32>
    %81 = arith.mulf %76, %80 : vector<8x32xf32>
    %82 = vector.broadcast %61 : vector<1x32xf32> to vector<8x32xf32>
    %83 = arith.mulf %81, %82 : vector<8x32xf32>
    %84 = vector.broadcast %62 : vector<1x32xf32> to vector<8x32xf32>
    %85 = arith.addf %83, %84 : vector<8x32xf32>
    %c0_39 = arith.constant 0 : index
    %c0_40 = arith.constant 0 : index
    %c0_41 = arith.constant 0 : index
    %86 = vector.load %arg13[%c0_39, %c0_40, %c0_41] : memref<1x8x32xf32, #tpu.memory_space<vmem>>, vector<1x8x32xf32>
    %87 = vector.shape_cast %86 : vector<1x8x32xf32> to vector<8x32xf32>
    %88 = vector.shape_cast %85 : vector<8x32xf32> to vector<1x8x32xf32>
    tpu.vector_store %arg13[%c0_39, %c0_40, %c0_41], %88 {strides = array<i32>} : memref<1x8x32xf32, #tpu.memory_space<vmem>>, vector<1x8x32xf32>,
    return
  }
  func.func @transform_0(%arg0: i32, %arg1: i32) -> (i32, i32, i32) {
    %c0_i32 = arith.constant 0 : i32
    %c0_i32_0 = arith.constant 0 : i32
    return %arg0, %arg1, %c0_i32 : i32, i32, i32
  }
  func.func @transform_1(%arg0: i32, %arg1: i32) -> (i32, i32, i32) {
    %c0_i32 = arith.constant 0 : i32
    %c0_i32_0 = arith.constant 0 : i32
    %c0_i32_1 = arith.constant 0 : i32
    return %arg0, %c0_i32, %c0_i32_0 : i32, i32, i32
  }
  func.func @transform_2(%arg0: i32, %arg1: i32) -> (i32, i32, i32) {
    %c0_i32 = arith.constant 0 : i32
    %c0_i32_0 = arith.constant 0 : i32
    %c0_i32_1 = arith.constant 0 : i32
    return %c0_i32, %arg1, %c0_i32_0 : i32, i32, i32
  }
  func.func @transform_3(%arg0: i32, %arg1: i32) -> (i32, i32) {
    %c0_i32 = arith.constant 0 : i32
    %c0_i32_0 = arith.constant 0 : i32
    %c0_i32_1 = arith.constant 0 : i32
    return %c0_i32, %c0_i32_0 : i32, i32
  }
  func.func @transform_4(%arg0: i32, %arg1: i32) -> (i32, i32) {
    %c0_i32 = arith.constant 0 : i32
    %c0_i32_0 = arith.constant 0 : i32
    %c0_i32_1 = arith.constant 0 : i32
    return %c0_i32, %c0_i32_0 : i32, i32
  }
  func.func @transform_5(%arg0: i32, %arg1: i32) -> (i32, i32) {
    %c0_i32 = arith.constant 0 : i32
    %c0_i32_0 = arith.constant 0 : i32
    %c0_i32_1 = arith.constant 0 : i32
    return %c0_i32, %c0_i32_0 : i32, i32
  }
  func.func @transform_6(%arg0: i32, %arg1: i32) -> (i32, i32) {
    %c0_i32 = arith.constant 0 : i32
    %c0_i32_0 = arith.constant 0 : i32
    %c0_i32_1 = arith.constant 0 : i32
    return %c0_i32, %c0_i32_0 : i32, i32
  }
  func.func @transform_7(%arg0: i32, %arg1: i32) -> (i32, i32) {
    %c0_i32 = arith.constant 0 : i32
    %c0_i32_0 = arith.constant 0 : i32
    %c0_i32_1 = arith.constant 0 : i32
    return %c0_i32, %c0_i32_0 : i32, i32
  }
  func.func @transform_8(%arg0: i32, %arg1: i32) -> (i32, i32) {
    %c0_i32 = arith.constant 0 : i32
    %c0_i32_0 = arith.constant 0 : i32
    %c0_i32_1 = arith.constant 0 : i32
    return %c0_i32, %c0_i32_0 : i32, i32
  }
  func.func @transform_9(%arg0: i32, %arg1: i32) -> (i32, i32) {
    %c0_i32 = arith.constant 0 : i32
    %c0_i32_0 = arith.constant 0 : i32
    %c0_i32_1 = arith.constant 0 : i32
    return %c0_i32, %c0_i32_0 : i32, i32
  }
  func.func @transform_10(%arg0: i32, %arg1: i32) -> (i32, i32) {
    %c0_i32 = arith.constant 0 : i32
    %c0_i32_0 = arith.constant 0 : i32
    %c0_i32_1 = arith.constant 0 : i32
    return %c0_i32, %c0_i32_0 : i32, i32
  }
  func.func @transform_11(%arg0: i32, %arg1: i32) -> (i32, i32, i32) {
    %c0_i32 = arith.constant 0 : i32
    %c0_i32_0 = arith.constant 0 : i32
    return %arg0, %arg1, %c0_i32 : i32, i32, i32
  }
}

module attributes {stable_mosaic.version = 11 : i64} {
  func.func @_attn_block_kernel(%arg0: i32, %arg1: i32, %arg2: memref<1x8x32xf32, #tpu.memory_space<vmem>>, %arg3: memref<1x8x32xf32, #tpu.memory_space<vmem>>, %arg4: memref<1x1x8xf32, #tpu.memory_space<vmem>>, %arg5: memref<32x32xbf16, #tpu.memory_space<vmem>>, %arg6: memref<1x32xf32, #tpu.memory_space<vmem>>, %arg7: memref<32x64xbf16, #tpu.memory_space<vmem>>, %arg8: memref<1x64xf32, #tpu.memory_space<vmem>>, %arg9: memref<32x32xbf16, #tpu.memory_space<vmem>>, %arg10: memref<1x32xf32, #tpu.memory_space<vmem>>, %arg11: memref<1x32xf32, #tpu.memory_space<vmem>>, %arg12: memref<1x32xf32, #tpu.memory_space<vmem>>, %arg13: memref<1x8x32xf32, #tpu.memory_space<vmem>>) attributes {dimension_semantics = [#tpu.dimension_semantics<parallel>, #tpu.dimension_semantics<parallel>], iteration_bounds = array<i64: 2, 1>, scalar_prefetch = 0 : i64, scratch_operands = 0 : i64, tpu.core_type = #tpu.core_type<tc>, window_params = [{transform_indices = @transform_0, window_bounds = array<i64: 1, 8, 32>}, {transform_indices = @transform_1, window_bounds = array<i64: 1, 8, 32>}, {transform_indices = @transform_2, window_bounds = array<i64: 1, 1, 8>}, {pipeline_mode = #tpu.pipeline_mode<synchronous>, transform_indices = @transform_3, window_bounds = array<i64: 32, 32>}, {pipeline_mode = #tpu.pipeline_mode<synchronous>, transform_indices = @transform_4, window_bounds = array<i64: 1, 32>}, {pipeline_mode = #tpu.pipeline_mode<synchronous>, transform_indices = @transform_5, window_bounds = array<i64: 32, 64>}, {pipeline_mode = #tpu.pipeline_mode<synchronous>, transform_indices = @transform_6, window_bounds = array<i64: 1, 64>}, {pipeline_mode = #tpu.pipeline_mode<synchronous>, transform_indices = @transform_7, window_bounds = array<i64: 32, 32>}, {pipeline_mode = #tpu.pipeline_mode<synchronous>, transform_indices = @transform_8, window_bounds = array<i64: 1, 32>}, {pipeline_mode = #tpu.pipeline_mode<synchronous>, transform_indices = @transform_9, window_bounds = array<i64: 1, 32>}, {pipeline_mode = #tpu.pipeline_mode<synchronous>, transform_indices = @transform_10, window_bounds = array<i64: 1, 32>}, {transform_indices = @transform_11, window_bounds = array<i64: 1, 8, 32>}]} {
    %c0 = arith.constant 0 : index
    %c0_0 = arith.constant 0 : index
    %c0_1 = arith.constant 0 : index
    %0 = vector.load %arg2[%c0, %c0_0, %c0_1] : memref<1x8x32xf32, #tpu.memory_space<vmem>>, vector<1x8x32xf32>
    %1 = vector.shape_cast %0 : vector<1x8x32xf32> to vector<8x32xf32>
    %c0_2 = arith.constant 0 : index
    %c0_3 = arith.constant 0 : index
    %c0_4 = arith.constant 0 : index
    %2 = vector.load %arg3[%c0_2, %c0_3, %c0_4] : memref<1x8x32xf32, #tpu.memory_space<vmem>>, vector<1x8x32xf32>
    %3 = vector.shape_cast %2 : vector<1x8x32xf32> to vector<8x32xf32>
    %c0_5 = arith.constant 0 : index
    %c0_6 = arith.constant 0 : index
    %4 = vector.load %arg5[%c0_5, %c0_6] : memref<32x32xbf16, #tpu.memory_space<vmem>>, vector<32x32xbf16>
    %5 = arith.truncf %1 : vector<8x32xf32> to vector<8x32xbf16>
    %cst = arith.constant dense<0.000000e+00> : vector<8x32xf32>
    %6 = tpu.matmul %5, %4, %cst {dimension_numbers = #tpu.dot_dimension_numbers<[1], [0], [0], [1], [0, 0, 1, 1], [], []>} : vector<8x32xbf16>, vector<32x32xbf16>, vector<8x32xf32> -> vector<8x32xf32>
    %c0_7 = arith.constant 0 : index
    %c0_8 = arith.constant 0 : index
    %7 = vector.load %arg6[%c0_7, %c0_8] : memref<1x32xf32, #tpu.memory_space<vmem>>, vector<1x32xf32>
    %8 = vector.broadcast %7 : vector<1x32xf32> to vector<8x32xf32>
    %9 = arith.addf %6, %8 : vector<8x32xf32>
    %cst_9 = arith.constant 0.353553385 : f32
    %10 = vector.broadcast %cst_9 : f32 to vector<8x32xf32>
    %11 = arith.mulf %9, %10 : vector<8x32xf32>
    %c0_10 = arith.constant 0 : index
    %c0_11 = arith.constant 0 : index
    %12 = vector.load %arg7[%c0_10, %c0_11] : memref<32x64xbf16, #tpu.memory_space<vmem>>, vector<32x64xbf16>
    %13 = arith.truncf %3 : vector<8x32xf32> to vector<8x32xbf16>
    %cst_12 = arith.constant dense<0.000000e+00> : vector<8x64xf32>
    %14 = tpu.matmul %13, %12, %cst_12 {dimension_numbers = #tpu.dot_dimension_numbers<[1], [0], [0], [1], [0, 0, 1, 1], [], []>} : vector<8x32xbf16>, vector<32x64xbf16>, vector<8x64xf32> -> vector<8x64xf32>
    %c0_13 = arith.constant 0 : index
    %c0_14 = arith.constant 0 : index
    %15 = vector.load %arg8[%c0_13, %c0_14] : memref<1x64xf32, #tpu.memory_space<vmem>>, vector<1x64xf32>
    %16 = vector.broadcast %15 : vector<1x64xf32> to vector<8x64xf32>
    %17 = arith.addf %14, %16 : vector<8x64xf32>
    %18 = vector.extract_strided_slice %17 {offsets = [0, 0], sizes = [8, 32], strides = [1, 1]} : vector<8x64xf32> to vector<8x32xf32>
    %19 = vector.extract_strided_slice %17 {offsets = [0, 32], sizes = [8, 32], strides = [1, 1]} : vector<8x64xf32> to vector<8x32xf32>
    %c0_15 = arith.constant 0 : index
    %c0_16 = arith.constant 0 : index
    %c0_17 = arith.constant 0 : index
    %20 = vector.load %arg4[%c0_15, %c0_16, %c0_17] : memref<1x1x8xf32, #tpu.memory_space<vmem>>, vector<1x1x8xf32>
    %21 = vector.shape_cast %20 : vector<1x1x8xf32> to vector<1x8xf32>
    %22 = vector.shape_cast %11 : vector<8x32xf32> to vector<8x4x8xf32>
    %23 = tpu.transpose %22, [1, 0, 2] : vector<8x4x8xf32> -> vector<4x8x8xf32>
    %24 = arith.truncf %23 : vector<4x8x8xf32> to vector<4x8x8xbf16>
    %25 = vector.shape_cast %18 : vector<8x32xf32> to vector<8x4x8xf32>
    %26 = tpu.transpose %25, [1, 0, 2] : vector<8x4x8xf32> -> vector<4x8x8xf32>
    %27 = arith.truncf %26 : vector<4x8x8xf32> to vector<4x8x8xbf16>
    %28 = vector.shape_cast %19 : vector<8x32xf32> to vector<8x4x8xf32>
    %29 = tpu.transpose %28, [1, 0, 2] : vector<8x4x8xf32> -> vector<4x8x8xf32>
    %30 = arith.truncf %29 : vector<4x8x8xf32> to vector<4x8x8xbf16>
    "tpu.trace_start"() <{level = 10 : i32, message = "hqd,hkd->hqk"}> : () -> ()
    %cst_18 = arith.constant dense<0.000000e+00> : vector<4x8x8xf32>
    %31 = tpu.matmul %24, %27, %cst_18 {dimension_numbers = #tpu.dot_dimension_numbers<[2], [2], [1], [1], [0, 0, 0, 1, 1, 1], [0], [0]>} : vector<4x8x8xbf16>, vector<4x8x8xbf16>, vector<4x8x8xf32> -> vector<4x8x8xf32>
    "tpu.trace_stop"() : () -> ()
    %32 = vector.shape_cast %21 : vector<1x8xf32> to vector<1x1x8xf32>
    %cst_19 = arith.constant 0.000000e+00 : f32
    %33 = vector.broadcast %cst_19 : f32 to vector<1x1x8xf32>
    %34 = arith.cmpf ogt, %32, %33 : vector<1x1x8xf32>
    %cst_20 = arith.constant -1.000000e+09 : f32
    %35 = vector.shape_cast %34 : vector<1x1x8xi1> to vector<1x1x8xi1>
    %36 = vector.broadcast %35 : vector<1x1x8xi1> to vector<4x8x8xi1>
    %37 = vector.broadcast %cst_20 : f32 to vector<4x8x8xf32>
    %38 = arith.select %36, %31, %37 : vector<4x8x8xi1>, vector<4x8x8xf32>
    %cst_21 = arith.constant dense<0xFF800000> : vector<4x8xf32>
    %39 = vector.multi_reduction <maximumf>, %38, %cst_21 [2] : vector<4x8x8xf32> to vector<4x8xf32>
    %40 = vector.shape_cast %39 : vector<4x8xf32> to vector<4x8x1xf32>
    %41 = vector.broadcast %40 : vector<4x8x1xf32> to vector<4x8x8xf32>
    %42 = arith.subf %38, %41 : vector<4x8x8xf32>
    %43 = math.exp %42 : vector<4x8x8xf32>
    %cst_22 = arith.constant dense<0.000000e+00> : vector<4x8xf32>
    %44 = vector.multi_reduction <add>, %43, %cst_22 [2] : vector<4x8x8xf32> to vector<4x8xf32>
    %45 = vector.shape_cast %44 : vector<4x8xf32> to vector<4x8x1xf32>
    %cst_23 = arith.constant 9.99999968E-21 : f32
    %46 = vector.broadcast %cst_23 : f32 to vector<4x8x1xf32>
    %47 = arith.maximumf %45, %46 : vector<4x8x1xf32>
    %48 = arith.truncf %43 : vector<4x8x8xf32> to vector<4x8x8xbf16>
    "tpu.trace_start"() <{level = 10 : i32, message = "hqk,hkd->hqd"}> : () -> ()
    %cst_24 = arith.constant dense<0.000000e+00> : vector<4x8x8xf32>
    %49 = tpu.matmul %48, %30, %cst_24 {dimension_numbers = #tpu.dot_dimension_numbers<[2], [1], [1], [2], [0, 0, 0, 1, 1, 2], [0], [0]>} : vector<4x8x8xbf16>, vector<4x8x8xbf16>, vector<4x8x8xf32> -> vector<4x8x8xf32>
    "tpu.trace_stop"() : () -> ()
    %50 = tpu.reciprocal %47 {approx = true} : vector<4x8x1xf32> -> vector<4x8x1xf32>
    %51 = vector.broadcast %50 : vector<4x8x1xf32> to vector<4x8x8xf32>
    %52 = arith.mulf %49, %51 : vector<4x8x8xf32>
    %53 = tpu.transpose %52, [1, 0, 2] : vector<4x8x8xf32> -> vector<8x4x8xf32>
    %54 = vector.shape_cast %53 : vector<8x4x8xf32> to vector<8x32xf32>
    %c0_25 = arith.constant 0 : index
    %c0_26 = arith.constant 0 : index
    %55 = vector.load %arg9[%c0_25, %c0_26] : memref<32x32xbf16, #tpu.memory_space<vmem>>, vector<32x32xbf16>
    %56 = arith.truncf %54 : vector<8x32xf32> to vector<8x32xbf16>
    %cst_27 = arith.constant dense<0.000000e+00> : vector<8x32xf32>
    %57 = tpu.matmul %56, %55, %cst_27 {dimension_numbers = #tpu.dot_dimension_numbers<[1], [0], [0], [1], [0, 0, 1, 1], [], []>} : vector<8x32xbf16>, vector<32x32xbf16>, vector<8x32xf32> -> vector<8x32xf32>
    %c0_28 = arith.constant 0 : index
    %c0_29 = arith.constant 0 : index
    %58 = vector.load %arg10[%c0_28, %c0_29] : memref<1x32xf32, #tpu.memory_space<vmem>>, vector<1x32xf32>
    %59 = vector.broadcast %58 : vector<1x32xf32> to vector<8x32xf32>
    %60 = arith.addf %57, %59 : vector<8x32xf32>
    %c0_30 = arith.constant 0 : index
    %c0_31 = arith.constant 0 : index
    %61 = vector.load %arg11[%c0_30, %c0_31] : memref<1x32xf32, #tpu.memory_space<vmem>>, vector<1x32xf32>
    %c0_32 = arith.constant 0 : index
    %c0_33 = arith.constant 0 : index
    %62 = vector.load %arg12[%c0_32, %c0_33] : memref<1x32xf32, #tpu.memory_space<vmem>>, vector<1x32xf32>
    %63 = arith.addf %1, %60 : vector<8x32xf32>
    %cst_34 = arith.constant dense<0.000000e+00> : vector<8xf32>
    %64 = vector.multi_reduction <add>, %63, %cst_34 [1] : vector<8x32xf32> to vector<8xf32>
    %65 = vector.shape_cast %64 : vector<8xf32> to vector<8x1xf32>
    %cst_35 = arith.constant 3.200000e+01 : f32
    %66 = vector.broadcast %cst_35 : f32 to vector<8x1xf32>
    %67 = arith.divf %65, %66 : vector<8x1xf32>
    %68 = vector.broadcast %67 : vector<8x1xf32> to vector<8x32xf32>
    %69 = arith.subf %63, %68 : vector<8x32xf32>
    %70 = arith.mulf %69, %69 : vector<8x32xf32>
    %cst_36 = arith.constant dense<0.000000e+00> : vector<8xf32>
    %71 = vector.multi_reduction <add>, %70, %cst_36 [1] : vector<8x32xf32> to vector<8xf32>
    %72 = vector.shape_cast %71 : vector<8xf32> to vector<8x1xf32>
    %cst_37 = arith.constant 3.200000e+01 : f32
    %73 = vector.broadcast %cst_37 : f32 to vector<8x1xf32>
    %74 = arith.divf %72, %73 : vector<8x1xf32>
    %75 = vector.broadcast %67 : vector<8x1xf32> to vector<8x32xf32>
    %76 = arith.subf %63, %75 : vector<8x32xf32>
    %cst_38 = arith.constant 9.99999974E-6 : f32
    %77 = vector.broadcast %cst_38 : f32 to vector<8x1xf32>
    %78 = arith.addf %74, %77 : vector<8x1xf32>
    %79 = math.rsqrt %78 : vector<8x1xf32>
    %80 = vector.broadcast %79 : vector<8x1xf32> to vector<8x32xf32>
    %81 = arith.mulf %76, %80 : vector<8x32xf32>
    %82 = vector.broadcast %61 : vector<1x32xf32> to vector<8x32xf32>
    %83 = arith.mulf %81, %82 : vector<8x32xf32>
    %84 = vector.broadcast %62 : vector<1x32xf32> to vector<8x32xf32>
    %85 = arith.addf %83, %84 : vector<8x32xf32>
    %c0_39 = arith.constant 0 : index
    %c0_40 = arith.constant 0 : index
    %c0_41 = arith.constant 0 : index
    %86 = vector.load %arg13[%c0_39, %c0_40, %c0_41] : memref<1x8x32xf32, #tpu.memory_space<vmem>>, vector<1x8x32xf32>
    %87 = vector.shape_cast %86 : vector<1x8x32xf32> to vector<8x32xf32>
    %88 = vector.shape_cast %85 : vector<8x32xf32> to vector<1x8x32xf32>
    tpu.vector_store %arg13[%c0_39, %c0_40, %c0_41], %88 {strides = array<i32>} : memref<1x8x32xf32, #tpu.memory_space<vmem>>, vector<1x8x32xf32>,
    return
  }
  func.func @transform_0(%arg0: i32, %arg1: i32) -> (i32, i32, i32) {
    %c0_i32 = arith.constant 0 : i32
    %c0_i32_0 = arith.constant 0 : i32
    return %arg0, %arg1, %c0_i32 : i32, i32, i32
  }
  func.func @transform_1(%arg0: i32, %arg1: i32) -> (i32, i32, i32) {
    %c0_i32 = arith.constant 0 : i32
    %c0_i32_0 = arith.constant 0 : i32
    %c0_i32_1 = arith.constant 0 : i32
    return %arg0, %c0_i32, %c0_i32_0 : i32, i32, i32
  }
  func.func @transform_2(%arg0: i32, %arg1: i32) -> (i32, i32, i32) {
    %c0_i32 = arith.constant 0 : i32
    %c0_i32_0 = arith.constant 0 : i32
    %c0_i32_1 = arith.constant 0 : i32
    return %arg0, %c0_i32, %c0_i32_0 : i32, i32, i32
  }
  func.func @transform_3(%arg0: i32, %arg1: i32) -> (i32, i32) {
    %c0_i32 = arith.constant 0 : i32
    %c0_i32_0 = arith.constant 0 : i32
    %c0_i32_1 = arith.constant 0 : i32
    return %c0_i32, %c0_i32_0 : i32, i32
  }
  func.func @transform_4(%arg0: i32, %arg1: i32) -> (i32, i32) {
    %c0_i32 = arith.constant 0 : i32
    %c0_i32_0 = arith.constant 0 : i32
    %c0_i32_1 = arith.constant 0 : i32
    return %c0_i32, %c0_i32_0 : i32, i32
  }
  func.func @transform_5(%arg0: i32, %arg1: i32) -> (i32, i32) {
    %c0_i32 = arith.constant 0 : i32
    %c0_i32_0 = arith.constant 0 : i32
    %c0_i32_1 = arith.constant 0 : i32
    return %c0_i32, %c0_i32_0 : i32, i32
  }
  func.func @transform_6(%arg0: i32, %arg1: i32) -> (i32, i32) {
    %c0_i32 = arith.constant 0 : i32
    %c0_i32_0 = arith.constant 0 : i32
    %c0_i32_1 = arith.constant 0 : i32
    return %c0_i32, %c0_i32_0 : i32, i32
  }
  func.func @transform_7(%arg0: i32, %arg1: i32) -> (i32, i32) {
    %c0_i32 = arith.constant 0 : i32
    %c0_i32_0 = arith.constant 0 : i32
    %c0_i32_1 = arith.constant 0 : i32
    return %c0_i32, %c0_i32_0 : i32, i32
  }
  func.func @transform_8(%arg0: i32, %arg1: i32) -> (i32, i32) {
    %c0_i32 = arith.constant 0 : i32
    %c0_i32_0 = arith.constant 0 : i32
    %c0_i32_1 = arith.constant 0 : i32
    return %c0_i32, %c0_i32_0 : i32, i32
  }
  func.func @transform_9(%arg0: i32, %arg1: i32) -> (i32, i32) {
    %c0_i32 = arith.constant 0 : i32
    %c0_i32_0 = arith.constant 0 : i32
    %c0_i32_1 = arith.constant 0 : i32
    return %c0_i32, %c0_i32_0 : i32, i32
  }
  func.func @transform_10(%arg0: i32, %arg1: i32) -> (i32, i32) {
    %c0_i32 = arith.constant 0 : i32
    %c0_i32_0 = arith.constant 0 : i32
    %c0_i32_1 = arith.constant 0 : i32
    return %c0_i32, %c0_i32_0 : i32, i32
  }
  func.func @transform_11(%arg0: i32, %arg1: i32) -> (i32, i32, i32) {
    %c0_i32 = arith.constant 0 : i32
    %c0_i32_0 = arith.constant 0 : i32
    return %arg0, %arg1, %c0_i32 : i32, i32, i32
  }
}

module attributes {stable_mosaic.version = 11 : i64} {
  func.func @_ffn_block_kernel(%arg0: i32, %arg1: i32, %arg2: memref<16x32xf32, #tpu.memory_space<vmem>>, %arg3: memref<32x64xbf16, #tpu.memory_space<vmem>>, %arg4: memref<1x64xf32, #tpu.memory_space<vmem>>, %arg5: memref<64x32xbf16, #tpu.memory_space<vmem>>, %arg6: memref<1x32xf32, #tpu.memory_space<vmem>>, %arg7: memref<1x32xf32, #tpu.memory_space<vmem>>, %arg8: memref<1x32xf32, #tpu.memory_space<vmem>>, %arg9: memref<16x32xf32, #tpu.memory_space<vmem>>, %arg10: memref<16x32xf32, #tpu.memory_space<vmem>>) attributes {dimension_semantics = [#tpu.dimension_semantics<parallel>, #tpu.dimension_semantics<arbitrary>], iteration_bounds = array<i64: 1, 1>, scalar_prefetch = 0 : i64, scratch_operands = 1 : i64, tpu.core_type = #tpu.core_type<tc>, window_params = [{transform_indices = @transform_0, window_bounds = array<i64: 16, 32>}, {transform_indices = @transform_1, window_bounds = array<i64: 32, 64>}, {transform_indices = @transform_2, window_bounds = array<i64: 1, 64>}, {transform_indices = @transform_3, window_bounds = array<i64: 64, 32>}, {pipeline_mode = #tpu.pipeline_mode<synchronous>, transform_indices = @transform_4, window_bounds = array<i64: 1, 32>}, {pipeline_mode = #tpu.pipeline_mode<synchronous>, transform_indices = @transform_5, window_bounds = array<i64: 1, 32>}, {pipeline_mode = #tpu.pipeline_mode<synchronous>, transform_indices = @transform_6, window_bounds = array<i64: 1, 32>}, {transform_indices = @transform_7, window_bounds = array<i64: 16, 32>}]} {
    %c0_i32 = arith.constant 0 : i32
    %0 = arith.cmpi eq, %arg1, %c0_i32 : i32
    %1 = arith.extui %0 : i1 to i32
    %c0_i32_0 = arith.constant 0 : i32
    %2 = arith.cmpi ne, %1, %c0_i32_0 : i32
    scf.if %2 {
      %cst_16 = arith.constant 0.000000e+00 : f32
      %21 = vector.broadcast %cst_16 : f32 to vector<16x32xf32>
      %c0_17 = arith.constant 0 : index
      %c0_18 = arith.constant 0 : index
      %22 = vector.load %arg10[%c0_17, %c0_18] : memref<16x32xf32, #tpu.memory_space<vmem>>, vector<16x32xf32>
      tpu.vector_store %arg10[%c0_17, %c0_18], %21 {strides = array<i32>} : memref<16x32xf32, #tpu.memory_space<vmem>>, vector<16x32xf32>,
    } else {
    }
    %c0 = arith.constant 0 : index
    %c0_1 = arith.constant 0 : index
    %3 = vector.load %arg2[%c0, %c0_1] : memref<16x32xf32, #tpu.memory_space<vmem>>, vector<16x32xf32>
    %c0_2 = arith.constant 0 : index
    %c0_3 = arith.constant 0 : index
    %4 = vector.load %arg3[%c0_2, %c0_3] : memref<32x64xbf16, #tpu.memory_space<vmem>>, vector<32x64xbf16>
    %5 = arith.truncf %3 : vector<16x32xf32> to vector<16x32xbf16>
    %cst = arith.constant dense<0.000000e+00> : vector<16x64xf32>
    %6 = tpu.matmul %5, %4, %cst {dimension_numbers = #tpu.dot_dimension_numbers<[1], [0], [0], [1], [0, 0, 1, 1], [], []>} : vector<16x32xbf16>, vector<32x64xbf16>, vector<16x64xf32> -> vector<16x64xf32>
    %c0_4 = arith.constant 0 : index
    %c0_5 = arith.constant 0 : index
    %7 = vector.load %arg4[%c0_4, %c0_5] : memref<1x64xf32, #tpu.memory_space<vmem>>, vector<1x64xf32>
    %8 = vector.broadcast %7 : vector<1x64xf32> to vector<16x64xf32>
    %9 = arith.addf %6, %8 : vector<16x64xf32>
    %cst_6 = arith.constant 0.000000e+00 : f32
    %10 = vector.broadcast %cst_6 : f32 to vector<16x64xf32>
    %11 = arith.maximumf %9, %10 : vector<16x64xf32>
    %c0_7 = arith.constant 0 : index
    %c0_8 = arith.constant 0 : index
    %12 = vector.load %arg10[%c0_7, %c0_8] : memref<16x32xf32, #tpu.memory_space<vmem>>, vector<16x32xf32>
    %c0_9 = arith.constant 0 : index
    %c0_10 = arith.constant 0 : index
    %13 = vector.load %arg5[%c0_9, %c0_10] : memref<64x32xbf16, #tpu.memory_space<vmem>>, vector<64x32xbf16>
    %14 = arith.truncf %11 : vector<16x64xf32> to vector<16x64xbf16>
    %cst_11 = arith.constant dense<0.000000e+00> : vector<16x32xf32>
    %15 = tpu.matmul %14, %13, %cst_11 {dimension_numbers = #tpu.dot_dimension_numbers<[1], [0], [0], [1], [0, 0, 1, 1], [], []>} : vector<16x64xbf16>, vector<64x32xbf16>, vector<16x32xf32> -> vector<16x32xf32>
    %16 = arith.addf %12, %15 : vector<16x32xf32>
    %c0_12 = arith.constant 0 : index
    %c0_13 = arith.constant 0 : index
    %17 = vector.load %arg10[%c0_12, %c0_13] : memref<16x32xf32, #tpu.memory_space<vmem>>, vector<16x32xf32>
    tpu.vector_store %arg10[%c0_12, %c0_13], %16 {strides = array<i32>} : memref<16x32xf32, #tpu.memory_space<vmem>>, vector<16x32xf32>,
    %c0_i32_14 = arith.constant 0 : i32
    %18 = arith.cmpi eq, %arg1, %c0_i32_14 : i32
    %19 = arith.extui %18 : i1 to i32
    %c0_i32_15 = arith.constant 0 : i32
    %20 = arith.cmpi ne, %19, %c0_i32_15 : i32
    scf.if %20 {
      %c0_16 = arith.constant 0 : index
      %c0_17 = arith.constant 0 : index
      %21 = vector.load %arg10[%c0_16, %c0_17] : memref<16x32xf32, #tpu.memory_space<vmem>>, vector<16x32xf32>
      %c0_18 = arith.constant 0 : index
      %c0_19 = arith.constant 0 : index
      %22 = vector.load %arg6[%c0_18, %c0_19] : memref<1x32xf32, #tpu.memory_space<vmem>>, vector<1x32xf32>
      %23 = vector.broadcast %22 : vector<1x32xf32> to vector<16x32xf32>
      %24 = arith.addf %21, %23 : vector<16x32xf32>
      %c0_20 = arith.constant 0 : index
      %c0_21 = arith.constant 0 : index
      %25 = vector.load %arg2[%c0_20, %c0_21] : memref<16x32xf32, #tpu.memory_space<vmem>>, vector<16x32xf32>
      %c0_22 = arith.constant 0 : index
      %c0_23 = arith.constant 0 : index
      %26 = vector.load %arg7[%c0_22, %c0_23] : memref<1x32xf32, #tpu.memory_space<vmem>>, vector<1x32xf32>
      %c0_24 = arith.constant 0 : index
      %c0_25 = arith.constant 0 : index
      %27 = vector.load %arg8[%c0_24, %c0_25] : memref<1x32xf32, #tpu.memory_space<vmem>>, vector<1x32xf32>
      %28 = arith.addf %25, %24 : vector<16x32xf32>
      %cst_26 = arith.constant dense<0.000000e+00> : vector<16xf32>
      %29 = vector.multi_reduction <add>, %28, %cst_26 [1] : vector<16x32xf32> to vector<16xf32>
      %30 = vector.shape_cast %29 : vector<16xf32> to vector<16x1xf32>
      %cst_27 = arith.constant 3.200000e+01 : f32
      %31 = vector.broadcast %cst_27 : f32 to vector<16x1xf32>
      %32 = arith.divf %30, %31 : vector<16x1xf32>
      %33 = vector.broadcast %32 : vector<16x1xf32> to vector<16x32xf32>
      %34 = arith.subf %28, %33 : vector<16x32xf32>
      %35 = arith.mulf %34, %34 : vector<16x32xf32>
      %cst_28 = arith.constant dense<0.000000e+00> : vector<16xf32>
      %36 = vector.multi_reduction <add>, %35, %cst_28 [1] : vector<16x32xf32> to vector<16xf32>
      %37 = vector.shape_cast %36 : vector<16xf32> to vector<16x1xf32>
      %cst_29 = arith.constant 3.200000e+01 : f32
      %38 = vector.broadcast %cst_29 : f32 to vector<16x1xf32>
      %39 = arith.divf %37, %38 : vector<16x1xf32>
      %40 = vector.broadcast %32 : vector<16x1xf32> to vector<16x32xf32>
      %41 = arith.subf %28, %40 : vector<16x32xf32>
      %cst_30 = arith.constant 9.99999974E-6 : f32
      %42 = vector.broadcast %cst_30 : f32 to vector<16x1xf32>
      %43 = arith.addf %39, %42 : vector<16x1xf32>
      %44 = math.rsqrt %43 : vector<16x1xf32>
      %45 = vector.broadcast %44 : vector<16x1xf32> to vector<16x32xf32>
      %46 = arith.mulf %41, %45 : vector<16x32xf32>
      %47 = vector.broadcast %26 : vector<1x32xf32> to vector<16x32xf32>
      %48 = arith.mulf %46, %47 : vector<16x32xf32>
      %49 = vector.broadcast %27 : vector<1x32xf32> to vector<16x32xf32>
      %50 = arith.addf %48, %49 : vector<16x32xf32>
      %c0_31 = arith.constant 0 : index
      %c0_32 = arith.constant 0 : index
      %51 = vector.load %arg9[%c0_31, %c0_32] : memref<16x32xf32, #tpu.memory_space<vmem>>, vector<16x32xf32>
      tpu.vector_store %arg9[%c0_31, %c0_32], %50 {strides = array<i32>} : memref<16x32xf32, #tpu.memory_space<vmem>>, vector<16x32xf32>,
    } else {
    }
    return
  }
  func.func @transform_0(%arg0: i32, %arg1: i32) -> (i32, i32) {
    %c0_i32 = arith.constant 0 : i32
    %c0_i32_0 = arith.constant 0 : i32
    return %arg0, %c0_i32 : i32, i32
  }
  func.func @transform_1(%arg0: i32, %arg1: i32) -> (i32, i32) {
    %c0_i32 = arith.constant 0 : i32
    %c0_i32_0 = arith.constant 0 : i32
    return %c0_i32, %arg1 : i32, i32
  }
  func.func @transform_2(%arg0: i32, %arg1: i32) -> (i32, i32) {
    %c0_i32 = arith.constant 0 : i32
    %c0_i32_0 = arith.constant 0 : i32
    return %c0_i32, %arg1 : i32, i32
  }
  func.func @transform_3(%arg0: i32, %arg1: i32) -> (i32, i32) {
    %c0_i32 = arith.constant 0 : i32
    %c0_i32_0 = arith.constant 0 : i32
    return %arg1, %c0_i32 : i32, i32
  }
  func.func @transform_4(%arg0: i32, %arg1: i32) -> (i32, i32) {
    %c0_i32 = arith.constant 0 : i32
    %c0_i32_0 = arith.constant 0 : i32
    %c0_i32_1 = arith.constant 0 : i32
    return %c0_i32, %c0_i32_0 : i32, i32
  }
  func.func @transform_5(%arg0: i32, %arg1: i32) -> (i32, i32) {
    %c0_i32 = arith.constant 0 : i32
    %c0_i32_0 = arith.constant 0 : i32
    %c0_i32_1 = arith.constant 0 : i32
    return %c0_i32, %c0_i32_0 : i32, i32
  }
  func.func @transform_6(%arg0: i32, %arg1: i32) -> (i32, i32) {
    %c0_i32 = arith.constant 0 : i32
    %c0_i32_0 = arith.constant 0 : i32
    %c0_i32_1 = arith.constant 0 : i32
    return %c0_i32, %c0_i32_0 : i32, i32
  }
  func.func @transform_7(%arg0: i32, %arg1: i32) -> (i32, i32) {
    %c0_i32 = arith.constant 0 : i32
    %c0_i32_0 = arith.constant 0 : i32
    return %arg0, %c0_i32 : i32, i32
  }
}

module attributes {stable_mosaic.version = 11 : i64} {
  func.func @_attn_block_kernel(%arg0: i32, %arg1: i32, %arg2: memref<1x8x32xf32, #tpu.memory_space<vmem>>, %arg3: memref<1x8x32xf32, #tpu.memory_space<vmem>>, %arg4: memref<1x8x8xf32, #tpu.memory_space<vmem>>, %arg5: memref<32x32xbf16, #tpu.memory_space<vmem>>, %arg6: memref<1x32xf32, #tpu.memory_space<vmem>>, %arg7: memref<32x64xbf16, #tpu.memory_space<vmem>>, %arg8: memref<1x64xf32, #tpu.memory_space<vmem>>, %arg9: memref<32x32xbf16, #tpu.memory_space<vmem>>, %arg10: memref<1x32xf32, #tpu.memory_space<vmem>>, %arg11: memref<1x32xf32, #tpu.memory_space<vmem>>, %arg12: memref<1x32xf32, #tpu.memory_space<vmem>>, %arg13: memref<1x8x32xf32, #tpu.memory_space<vmem>>) attributes {dimension_semantics = [#tpu.dimension_semantics<parallel>, #tpu.dimension_semantics<parallel>], iteration_bounds = array<i64: 2, 1>, scalar_prefetch = 0 : i64, scratch_operands = 0 : i64, tpu.core_type = #tpu.core_type<tc>, window_params = [{transform_indices = @transform_0, window_bounds = array<i64: 1, 8, 32>}, {transform_indices = @transform_1, window_bounds = array<i64: 1, 8, 32>}, {transform_indices = @transform_2, window_bounds = array<i64: 1, 8, 8>}, {pipeline_mode = #tpu.pipeline_mode<synchronous>, transform_indices = @transform_3, window_bounds = array<i64: 32, 32>}, {pipeline_mode = #tpu.pipeline_mode<synchronous>, transform_indices = @transform_4, window_bounds = array<i64: 1, 32>}, {pipeline_mode = #tpu.pipeline_mode<synchronous>, transform_indices = @transform_5, window_bounds = array<i64: 32, 64>}, {pipeline_mode = #tpu.pipeline_mode<synchronous>, transform_indices = @transform_6, window_bounds = array<i64: 1, 64>}, {pipeline_mode = #tpu.pipeline_mode<synchronous>, transform_indices = @transform_7, window_bounds = array<i64: 32, 32>}, {pipeline_mode = #tpu.pipeline_mode<synchronous>, transform_indices = @transform_8, window_bounds = array<i64: 1, 32>}, {pipeline_mode = #tpu.pipeline_mode<synchronous>, transform_indices = @transform_9, window_bounds = array<i64: 1, 32>}, {pipeline_mode = #tpu.pipeline_mode<synchronous>, transform_indices = @transform_10, window_bounds = array<i64: 1, 32>}, {transform_indices = @transform_11, window_bounds = array<i64: 1, 8, 32>}]} {
    %c0 = arith.constant 0 : index
    %c0_0 = arith.constant 0 : index
    %c0_1 = arith.constant 0 : index
    %0 = vector.load %arg2[%c0, %c0_0, %c0_1] : memref<1x8x32xf32, #tpu.memory_space<vmem>>, vector<1x8x32xf32>
    %1 = vector.shape_cast %0 : vector<1x8x32xf32> to vector<8x32xf32>
    %c0_2 = arith.constant 0 : index
    %c0_3 = arith.constant 0 : index
    %c0_4 = arith.constant 0 : index
    %2 = vector.load %arg3[%c0_2, %c0_3, %c0_4] : memref<1x8x32xf32, #tpu.memory_space<vmem>>, vector<1x8x32xf32>
    %3 = vector.shape_cast %2 : vector<1x8x32xf32> to vector<8x32xf32>
    %c0_5 = arith.constant 0 : index
    %c0_6 = arith.constant 0 : index
    %4 = vector.load %arg5[%c0_5, %c0_6] : memref<32x32xbf16, #tpu.memory_space<vmem>>, vector<32x32xbf16>
    %5 = arith.truncf %1 : vector<8x32xf32> to vector<8x32xbf16>
    %cst = arith.constant dense<0.000000e+00> : vector<8x32xf32>
    %6 = tpu.matmul %5, %4, %cst {dimension_numbers = #tpu.dot_dimension_numbers<[1], [0], [0], [1], [0, 0, 1, 1], [], []>} : vector<8x32xbf16>, vector<32x32xbf16>, vector<8x32xf32> -> vector<8x32xf32>
    %c0_7 = arith.constant 0 : index
    %c0_8 = arith.constant 0 : index
    %7 = vector.load %arg6[%c0_7, %c0_8] : memref<1x32xf32, #tpu.memory_space<vmem>>, vector<1x32xf32>
    %8 = vector.broadcast %7 : vector<1x32xf32> to vector<8x32xf32>
    %9 = arith.addf %6, %8 : vector<8x32xf32>
    %cst_9 = arith.constant 0.353553385 : f32
    %10 = vector.broadcast %cst_9 : f32 to vector<8x32xf32>
    %11 = arith.mulf %9, %10 : vector<8x32xf32>
    %c0_10 = arith.constant 0 : index
    %c0_11 = arith.constant 0 : index
    %12 = vector.load %arg7[%c0_10, %c0_11] : memref<32x64xbf16, #tpu.memory_space<vmem>>, vector<32x64xbf16>
    %13 = arith.truncf %3 : vector<8x32xf32> to vector<8x32xbf16>
    %cst_12 = arith.constant dense<0.000000e+00> : vector<8x64xf32>
    %14 = tpu.matmul %13, %12, %cst_12 {dimension_numbers = #tpu.dot_dimension_numbers<[1], [0], [0], [1], [0, 0, 1, 1], [], []>} : vector<8x32xbf16>, vector<32x64xbf16>, vector<8x64xf32> -> vector<8x64xf32>
    %c0_13 = arith.constant 0 : index
    %c0_14 = arith.constant 0 : index
    %15 = vector.load %arg8[%c0_13, %c0_14] : memref<1x64xf32, #tpu.memory_space<vmem>>, vector<1x64xf32>
    %16 = vector.broadcast %15 : vector<1x64xf32> to vector<8x64xf32>
    %17 = arith.addf %14, %16 : vector<8x64xf32>
    %18 = vector.extract_strided_slice %17 {offsets = [0, 0], sizes = [8, 32], strides = [1, 1]} : vector<8x64xf32> to vector<8x32xf32>
    %19 = vector.extract_strided_slice %17 {offsets = [0, 32], sizes = [8, 32], strides = [1, 1]} : vector<8x64xf32> to vector<8x32xf32>
    %c0_15 = arith.constant 0 : index
    %c0_16 = arith.constant 0 : index
    %c0_17 = arith.constant 0 : index
    %20 = vector.load %arg4[%c0_15, %c0_16, %c0_17] : memref<1x8x8xf32, #tpu.memory_space<vmem>>, vector<1x8x8xf32>
    %21 = vector.shape_cast %20 : vector<1x8x8xf32> to vector<8x8xf32>
    %22 = vector.shape_cast %11 : vector<8x32xf32> to vector<8x4x8xf32>
    %23 = tpu.transpose %22, [1, 0, 2] : vector<8x4x8xf32> -> vector<4x8x8xf32>
    %24 = arith.truncf %23 : vector<4x8x8xf32> to vector<4x8x8xbf16>
    %25 = vector.shape_cast %18 : vector<8x32xf32> to vector<8x4x8xf32>
    %26 = tpu.transpose %25, [1, 0, 2] : vector<8x4x8xf32> -> vector<4x8x8xf32>
    %27 = arith.truncf %26 : vector<4x8x8xf32> to vector<4x8x8xbf16>
    %28 = vector.shape_cast %19 : vector<8x32xf32> to vector<8x4x8xf32>
    %29 = tpu.transpose %28, [1, 0, 2] : vector<8x4x8xf32> -> vector<4x8x8xf32>
    %30 = arith.truncf %29 : vector<4x8x8xf32> to vector<4x8x8xbf16>
    "tpu.trace_start"() <{level = 10 : i32, message = "hqd,hkd->hqk"}> : () -> ()
    %cst_18 = arith.constant dense<0.000000e+00> : vector<4x8x8xf32>
    %31 = tpu.matmul %24, %27, %cst_18 {dimension_numbers = #tpu.dot_dimension_numbers<[2], [2], [1], [1], [0, 0, 0, 1, 1, 1], [0], [0]>} : vector<4x8x8xbf16>, vector<4x8x8xbf16>, vector<4x8x8xf32> -> vector<4x8x8xf32>
    "tpu.trace_stop"() : () -> ()
    %32 = vector.shape_cast %21 : vector<8x8xf32> to vector<1x8x8xf32>
    %cst_19 = arith.constant 0.000000e+00 : f32
    %33 = vector.broadcast %cst_19 : f32 to vector<1x8x8xf32>
    %34 = arith.cmpf ogt, %32, %33 : vector<1x8x8xf32>
    %cst_20 = arith.constant -1.000000e+09 : f32
    %35 = vector.shape_cast %34 : vector<1x8x8xi1> to vector<1x8x8xi1>
    %36 = vector.broadcast %35 : vector<1x8x8xi1> to vector<4x8x8xi1>
    %37 = vector.broadcast %cst_20 : f32 to vector<4x8x8xf32>
    %38 = arith.select %36, %31, %37 : vector<4x8x8xi1>, vector<4x8x8xf32>
    %cst_21 = arith.constant dense<0xFF800000> : vector<4x8xf32>
    %39 = vector.multi_reduction <maximumf>, %38, %cst_21 [2] : vector<4x8x8xf32> to vector<4x8xf32>
    %40 = vector.shape_cast %39 : vector<4x8xf32> to vector<4x8x1xf32>
    %41 = vector.broadcast %40 : vector<4x8x1xf32> to vector<4x8x8xf32>
    %42 = arith.subf %38, %41 : vector<4x8x8xf32>
    %43 = math.exp %42 : vector<4x8x8xf32>
    %cst_22 = arith.constant dense<0.000000e+00> : vector<4x8xf32>
    %44 = vector.multi_reduction <add>, %43, %cst_22 [2] : vector<4x8x8xf32> to vector<4x8xf32>
    %45 = vector.shape_cast %44 : vector<4x8xf32> to vector<4x8x1xf32>
    %cst_23 = arith.constant 9.99999968E-21 : f32
    %46 = vector.broadcast %cst_23 : f32 to vector<4x8x1xf32>
    %47 = arith.maximumf %45, %46 : vector<4x8x1xf32>
    %48 = arith.truncf %43 : vector<4x8x8xf32> to vector<4x8x8xbf16>
    "tpu.trace_start"() <{level = 10 : i32, message = "hqk,hkd->hqd"}> : () -> ()
    %cst_24 = arith.constant dense<0.000000e+00> : vector<4x8x8xf32>
    %49 = tpu.matmul %48, %30, %cst_24 {dimension_numbers = #tpu.dot_dimension_numbers<[2], [1], [1], [2], [0, 0, 0, 1, 1, 2], [0], [0]>} : vector<4x8x8xbf16>, vector<4x8x8xbf16>, vector<4x8x8xf32> -> vector<4x8x8xf32>
    "tpu.trace_stop"() : () -> ()
    %50 = tpu.reciprocal %47 {approx = true} : vector<4x8x1xf32> -> vector<4x8x1xf32>
    %51 = vector.broadcast %50 : vector<4x8x1xf32> to vector<4x8x8xf32>
    %52 = arith.mulf %49, %51 : vector<4x8x8xf32>
    %53 = tpu.transpose %52, [1, 0, 2] : vector<4x8x8xf32> -> vector<8x4x8xf32>
    %54 = vector.shape_cast %53 : vector<8x4x8xf32> to vector<8x32xf32>
    %c0_25 = arith.constant 0 : index
    %c0_26 = arith.constant 0 : index
    %55 = vector.load %arg9[%c0_25, %c0_26] : memref<32x32xbf16, #tpu.memory_space<vmem>>, vector<32x32xbf16>
    %56 = arith.truncf %54 : vector<8x32xf32> to vector<8x32xbf16>
    %cst_27 = arith.constant dense<0.000000e+00> : vector<8x32xf32>
    %57 = tpu.matmul %56, %55, %cst_27 {dimension_numbers = #tpu.dot_dimension_numbers<[1], [0], [0], [1], [0, 0, 1, 1], [], []>} : vector<8x32xbf16>, vector<32x32xbf16>, vector<8x32xf32> -> vector<8x32xf32>
    %c0_28 = arith.constant 0 : index
    %c0_29 = arith.constant 0 : index
    %58 = vector.load %arg10[%c0_28, %c0_29] : memref<1x32xf32, #tpu.memory_space<vmem>>, vector<1x32xf32>
    %59 = vector.broadcast %58 : vector<1x32xf32> to vector<8x32xf32>
    %60 = arith.addf %57, %59 : vector<8x32xf32>
    %c0_30 = arith.constant 0 : index
    %c0_31 = arith.constant 0 : index
    %61 = vector.load %arg11[%c0_30, %c0_31] : memref<1x32xf32, #tpu.memory_space<vmem>>, vector<1x32xf32>
    %c0_32 = arith.constant 0 : index
    %c0_33 = arith.constant 0 : index
    %62 = vector.load %arg12[%c0_32, %c0_33] : memref<1x32xf32, #tpu.memory_space<vmem>>, vector<1x32xf32>
    %63 = arith.addf %1, %60 : vector<8x32xf32>
    %cst_34 = arith.constant dense<0.000000e+00> : vector<8xf32>
    %64 = vector.multi_reduction <add>, %63, %cst_34 [1] : vector<8x32xf32> to vector<8xf32>
    %65 = vector.shape_cast %64 : vector<8xf32> to vector<8x1xf32>
    %cst_35 = arith.constant 3.200000e+01 : f32
    %66 = vector.broadcast %cst_35 : f32 to vector<8x1xf32>
    %67 = arith.divf %65, %66 : vector<8x1xf32>
    %68 = vector.broadcast %67 : vector<8x1xf32> to vector<8x32xf32>
    %69 = arith.subf %63, %68 : vector<8x32xf32>
    %70 = arith.mulf %69, %69 : vector<8x32xf32>
    %cst_36 = arith.constant dense<0.000000e+00> : vector<8xf32>
    %71 = vector.multi_reduction <add>, %70, %cst_36 [1] : vector<8x32xf32> to vector<8xf32>
    %72 = vector.shape_cast %71 : vector<8xf32> to vector<8x1xf32>
    %cst_37 = arith.constant 3.200000e+01 : f32
    %73 = vector.broadcast %cst_37 : f32 to vector<8x1xf32>
    %74 = arith.divf %72, %73 : vector<8x1xf32>
    %75 = vector.broadcast %67 : vector<8x1xf32> to vector<8x32xf32>
    %76 = arith.subf %63, %75 : vector<8x32xf32>
    %cst_38 = arith.constant 9.99999974E-6 : f32
    %77 = vector.broadcast %cst_38 : f32 to vector<8x1xf32>
    %78 = arith.addf %74, %77 : vector<8x1xf32>
    %79 = math.rsqrt %78 : vector<8x1xf32>
    %80 = vector.broadcast %79 : vector<8x1xf32> to vector<8x32xf32>
    %81 = arith.mulf %76, %80 : vector<8x32xf32>
    %82 = vector.broadcast %61 : vector<1x32xf32> to vector<8x32xf32>
    %83 = arith.mulf %81, %82 : vector<8x32xf32>
    %84 = vector.broadcast %62 : vector<1x32xf32> to vector<8x32xf32>
    %85 = arith.addf %83, %84 : vector<8x32xf32>
    %c0_39 = arith.constant 0 : index
    %c0_40 = arith.constant 0 : index
    %c0_41 = arith.constant 0 : index
    %86 = vector.load %arg13[%c0_39, %c0_40, %c0_41] : memref<1x8x32xf32, #tpu.memory_space<vmem>>, vector<1x8x32xf32>
    %87 = vector.shape_cast %86 : vector<1x8x32xf32> to vector<8x32xf32>
    %88 = vector.shape_cast %85 : vector<8x32xf32> to vector<1x8x32xf32>
    tpu.vector_store %arg13[%c0_39, %c0_40, %c0_41], %88 {strides = array<i32>} : memref<1x8x32xf32, #tpu.memory_space<vmem>>, vector<1x8x32xf32>,
    return
  }
  func.func @transform_0(%arg0: i32, %arg1: i32) -> (i32, i32, i32) {
    %c0_i32 = arith.constant 0 : i32
    %c0_i32_0 = arith.constant 0 : i32
    return %arg0, %arg1, %c0_i32 : i32, i32, i32
  }
  func.func @transform_1(%arg0: i32, %arg1: i32) -> (i32, i32, i32) {
    %c0_i32 = arith.constant 0 : i32
    %c0_i32_0 = arith.constant 0 : i32
    %c0_i32_1 = arith.constant 0 : i32
    return %arg0, %c0_i32, %c0_i32_0 : i32, i32, i32
  }
  func.func @transform_2(%arg0: i32, %arg1: i32) -> (i32, i32, i32) {
    %c0_i32 = arith.constant 0 : i32
    %c0_i32_0 = arith.constant 0 : i32
    %c0_i32_1 = arith.constant 0 : i32
    return %c0_i32, %arg1, %c0_i32_0 : i32, i32, i32
  }
  func.func @transform_3(%arg0: i32, %arg1: i32) -> (i32, i32) {
    %c0_i32 = arith.constant 0 : i32
    %c0_i32_0 = arith.constant 0 : i32
    %c0_i32_1 = arith.constant 0 : i32
    return %c0_i32, %c0_i32_0 : i32, i32
  }
  func.func @transform_4(%arg0: i32, %arg1: i32) -> (i32, i32) {
    %c0_i32 = arith.constant 0 : i32
    %c0_i32_0 = arith.constant 0 : i32
    %c0_i32_1 = arith.constant 0 : i32
    return %c0_i32, %c0_i32_0 : i32, i32
  }
  func.func @transform_5(%arg0: i32, %arg1: i32) -> (i32, i32) {
    %c0_i32 = arith.constant 0 : i32
    %c0_i32_0 = arith.constant 0 : i32
    %c0_i32_1 = arith.constant 0 : i32
    return %c0_i32, %c0_i32_0 : i32, i32
  }
  func.func @transform_6(%arg0: i32, %arg1: i32) -> (i32, i32) {
    %c0_i32 = arith.constant 0 : i32
    %c0_i32_0 = arith.constant 0 : i32
    %c0_i32_1 = arith.constant 0 : i32
    return %c0_i32, %c0_i32_0 : i32, i32
  }
  func.func @transform_7(%arg0: i32, %arg1: i32) -> (i32, i32) {
    %c0_i32 = arith.constant 0 : i32
    %c0_i32_0 = arith.constant 0 : i32
    %c0_i32_1 = arith.constant 0 : i32
    return %c0_i32, %c0_i32_0 : i32, i32
  }
  func.func @transform_8(%arg0: i32, %arg1: i32) -> (i32, i32) {
    %c0_i32 = arith.constant 0 : i32
    %c0_i32_0 = arith.constant 0 : i32
    %c0_i32_1 = arith.constant 0 : i32
    return %c0_i32, %c0_i32_0 : i32, i32
  }
  func.func @transform_9(%arg0: i32, %arg1: i32) -> (i32, i32) {
    %c0_i32 = arith.constant 0 : i32
    %c0_i32_0 = arith.constant 0 : i32
    %c0_i32_1 = arith.constant 0 : i32
    return %c0_i32, %c0_i32_0 : i32, i32
  }
  func.func @transform_10(%arg0: i32, %arg1: i32) -> (i32, i32) {
    %c0_i32 = arith.constant 0 : i32
    %c0_i32_0 = arith.constant 0 : i32
    %c0_i32_1 = arith.constant 0 : i32
    return %c0_i32, %c0_i32_0 : i32, i32
  }
  func.func @transform_11(%arg0: i32, %arg1: i32) -> (i32, i32, i32) {
    %c0_i32 = arith.constant 0 : i32
    %c0_i32_0 = arith.constant 0 : i32
    return %arg0, %arg1, %c0_i32 : i32, i32, i32
  }
}

module attributes {stable_mosaic.version = 11 : i64} {
  func.func @_vocab_proj_kernel(%arg0: i32, %arg1: i32, %arg2: memref<16x32xf32, #tpu.memory_space<vmem>>, %arg3: memref<32x128xbf16, #tpu.memory_space<vmem>>, %arg4: memref<1x128xf32, #tpu.memory_space<vmem>>, %arg5: memref<16x128xf32, #tpu.memory_space<vmem>>) attributes {dimension_semantics = [#tpu.dimension_semantics<parallel>, #tpu.dimension_semantics<parallel>], iteration_bounds = array<i64: 1, 1>, scalar_prefetch = 0 : i64, scratch_operands = 0 : i64, tpu.core_type = #tpu.core_type<tc>, window_params = [{transform_indices = @transform_0, window_bounds = array<i64: 16, 32>}, {transform_indices = @transform_1, window_bounds = array<i64: 32, 128>}, {transform_indices = @transform_2, window_bounds = array<i64: 1, 128>}, {transform_indices = @transform_3, window_bounds = array<i64: 16, 128>}]} {
    %c0 = arith.constant 0 : index
    %c0_0 = arith.constant 0 : index
    %0 = vector.load %arg2[%c0, %c0_0] : memref<16x32xf32, #tpu.memory_space<vmem>>, vector<16x32xf32>
    %c0_1 = arith.constant 0 : index
    %c0_2 = arith.constant 0 : index
    %1 = vector.load %arg3[%c0_1, %c0_2] : memref<32x128xbf16, #tpu.memory_space<vmem>>, vector<32x128xbf16>
    %2 = arith.truncf %0 : vector<16x32xf32> to vector<16x32xbf16>
    %cst = arith.constant dense<0.000000e+00> : vector<16x128xf32>
    %3 = tpu.matmul %2, %1, %cst {dimension_numbers = #tpu.dot_dimension_numbers<[1], [0], [0], [1], [0, 0, 1, 1], [], []>} : vector<16x32xbf16>, vector<32x128xbf16>, vector<16x128xf32> -> vector<16x128xf32>
    %c0_3 = arith.constant 0 : index
    %c0_4 = arith.constant 0 : index
    %4 = vector.load %arg4[%c0_3, %c0_4] : memref<1x128xf32, #tpu.memory_space<vmem>>, vector<1x128xf32>
    %5 = vector.broadcast %4 : vector<1x128xf32> to vector<16x128xf32>
    %6 = arith.addf %3, %5 : vector<16x128xf32>
    %c0_5 = arith.constant 0 : index
    %c0_6 = arith.constant 0 : index
    %7 = vector.load %arg5[%c0_5, %c0_6] : memref<16x128xf32, #tpu.memory_space<vmem>>, vector<16x128xf32>
    tpu.vector_store %arg5[%c0_5, %c0_6], %6 {strides = array<i32>} : memref<16x128xf32, #tpu.memory_space<vmem>>, vector<16x128xf32>,
    return
  }
  func.func @transform_0(%arg0: i32, %arg1: i32) -> (i32, i32) {
    %c0_i32 = arith.constant 0 : i32
    %c0_i32_0 = arith.constant 0 : i32
    return %arg0, %c0_i32 : i32, i32
  }
  func.func @transform_1(%arg0: i32, %arg1: i32) -> (i32, i32) {
    %c0_i32 = arith.constant 0 : i32
    %c0_i32_0 = arith.constant 0 : i32
    return %c0_i32, %arg1 : i32, i32
  }
  func.func @transform_2(%arg0: i32, %arg1: i32) -> (i32, i32) {
    %c0_i32 = arith.constant 0 : i32
    %c0_i32_0 = arith.constant 0 : i32
    return %c0_i32, %arg1 : i32, i32
  }
  func.func @transform_3(%arg0: i32, %arg1: i32) -> (i32, i32) {
    %c0_i32 = arith.constant 0 : i32
    return %arg0, %arg1 : i32, i32
  }
}

</mosaic_0001>

<bundles_post_ra>
// kernel: decoder_forward.9
= control target key start
LH: loop header
LB: loop body
LE: loop exit
PB: predicated region body
PF: predicated region fallthrough
CT: control target
= control target key end

     0   :  { %vm31_vm0 = vcmask 261120   ;;  %v312_v0 = vmov 0.0   ;;  %vm313_vm1 = vmmov 0   ;;  %vm142_vm2 = vcmask 523264   ;;  %s407_s1 = inlined_call_operand.vmem [shape: bf16[32,64], index: 1, kind: input, shape index: {}]   ;;  %s408_s0 = inlined_call_operand.vmem [shape: f32[16,32], index: 0, kind: input, shape index: {}]   ;;  %s409_s3 = inlined_call_operand.vmem [shape: bf16[64,32], index: 3, kind: input, shape index: {}]   ;;  %s410_s2 = inlined_call_operand.vmem [shape: f32[1,64], index: 2, kind: input, shape index: {}]   ;;  %s411_s4 = inlined_call_operand.vmem [shape: f32[1,32], index: 4, kind: input, shape index: {}]   ;;  %s412_s5 = inlined_call_operand.vmem [shape: f32[1,32], index: 5, kind: input, shape index: {}]   ;;  %s413_s6 = inlined_call_operand.vmem [shape: f32[1,32], index: 6, kind: input, shape index: {}]   ;;  %s414_s7 = inlined_call_operand.vmem [shape: f32[16,32], index: 7, kind: output, shape index: {}]  }
   0x1   :  { %280 = vmatprep.subr.bf16.mxu0 %v312_v0  ;;  %v302_v1 = vld [vmem:[%s407_s1 + $0x8] sm:$0xff]   ;;  %284 = vmatprep.mubr.msk.bf16.mxu0 %vm313_vm1, %v312_v0  ;;  %32 = vst.msk [vmem:[#allocation2] sm:$0xff] %vm31_vm0, %v312_v0  ;;  %33 = vst.msk [vmem:[#allocation2 + $0x8] sm:$0xff] %vm31_vm0, %v312_v0  ;;  %v303_v2 = vld [vmem:[%s407_s1] sm:$0xff]  }
   0x2   :  { %288 = vmatprep.subr.bf16.mxu1 %v312_v0  ;;  %296 = vmatprep.mubr.msk.bf16.mxu1 %vm313_vm1, %v312_v0  ;;  %v34_v3 = vld [vmem:[%s408_s0] sm:$0xff]  ;;  %v35_v4 = vld [vmem:[%s408_s0 + $0x8] sm:$0xff]  ;;  %v304_v5 = vld [vmem:[%s409_s3 + $0x18] sm:$0xff]  }
   0x3   :  { %281 = vmatpush3.bf16.msra.mxu0 %v302_v1  ;;  %v40_v6 = vpack.c.bf16 %v35_v4, %v34_v3  ;;  %289 = vmatpush3.bf16.msra.mxu1 %v304_v5  ;;  %v305_v7 = vld [vmem:[%s409_s3 + $0x10] sm:$0xff]   ;;  %v306_v8 = vld [vmem:[%s409_s3 + $0x8] sm:$0xff]   ;;  %v307_v9 = vld [vmem:[%s409_s3] sm:$0xff]  }
   0x4   :  { %282 = vmatprep.subr.bf16.mxu0 %v312_v0  ;;  %290 = vmatprep.subr.bf16.mxu1 %v312_v0  ;;  %v260_v10 = vld [vmem:[%s410_s2] ss:$0 sm:$0xff] }
   0x5   :  { %v269_v28 = vld [vmem:[%s411_s4] ss:$0 sm:$0xff] }
   0x6   :  { %v270_v54 = vld [vmem:[%s412_s5] ss:$0 sm:$0xff] }
   0x7   :  { %283 = vmatpush3.bf16.msra.mxu0 %v303_v2  ;;  %291 = vmatpush3.bf16.msra.mxu1 %v305_v7  ;;  %v271_v56 = vld [vmem:[%s413_s6] ss:$0 sm:$0xff] }
   0x8   :  { %292 = vmatprep.subr.bf16.mxu1 %v312_v0  ;;  %v107_v20 = vld [vmem:[#allocation2] sm:$0xff]  ;;  %v108_v24 = vld [vmem:[#allocation2 + $0x8] sm:$0xff] }
   0xa   :  { %285 = vmatmul.mubr.msk.bf16.vlgmr.msra.gmra.mxu0 %vm31_vm0, %v40_v6 }
   0xb   :  { %293 = vmatpush3.bf16.msra.mxu1 %v306_v8 }
   0xc   :  { %294 = vmatprep.subr.bf16.mxu1 %v312_v0 }
   0xf   :  { %295 = vmatpush3.bf16.msra.mxu1 %v307_v9 }
  0xca   :  { %v98_v11 = vpop.f32.mrf.mxu0 }
  0xcb   :  { %v99_v13 = vadd.f32 %v260_v10, %v98_v11 }
  0xcc   :  { %v286_v12 = vpop.f32.mrf.mxu0 }
  0xcd   :  { %v105_v17 = vmax.f32 %v99_v13, 0.0 }
  0xce   :  { %v101_v14 = vpop.f32.mrf.mxu0 }
  0xcf   :  { %v102_v15 = vadd.f32 %v260_v10, %v101_v14 }
  0xd0   :  { %v287_v16 = vpop.f32.mrf.mxu0 }
  0xd1   :  { %v106_v18 = vmax.f32 %v102_v15, 0.0 }
  0xd3   :  { %v117_v19 = vpack.c.bf16 %v106_v18, %v105_v17 }
  0xd5   :  { %297 = vmatmul.mubr.msk.bf16.vlgmr.msra.gmra.mxu1 %vm142_vm2, %v117_v19 }
 0x195   :  { %v180_v21 = vpop.f32.mrf.mxu1 }
 0x196   :  { %v187_v22 = vadd.f32 %v180_v21, %v107_v20 }
 0x197   :  { %v298_v23 = vpop.f32.mrf.mxu1 }
 0x198   :  { %189 = vst.msk [vmem:[#allocation2] sm:$0xff] %vm31_vm0, %v187_v22 }
 0x199   :  { %v183_v25 = vpop.f32.mrf.mxu1 }
 0x19a   :  { %v188_v26 = vadd.f32 %v183_v25, %v108_v24 }
 0x19b   :  { %v299_v27 = vpop.f32.mrf.mxu1 }
 0x19c   :  { %190 = vst.msk [vmem:[#allocation2 + $0x8] sm:$0xff] %vm31_vm0, %v188_v26 }
 0x19f   :  { %v194_v29 = vld [vmem:[#allocation2] sm:$0xff] }
 0x1a0   :  { %v203_v30 = vadd.f32 %v269_v28, %v194_v29 }
 0x1a2   :  { %v209_v31 = vadd.f32 %v203_v30, %v34_v3 }
 0x1a3   :  { %v195_v32 = vld [vmem:[#allocation2 + $0x8] sm:$0xff] }
 0x1a4   :  { %v211_v33 = vsel %vm31_vm0, %v209_v31, 0.0  ;;  %v204_v34 = vadd.f32 %v269_v28, %v195_v32 }
 0x1a5   :  { %212 = vadd.xlane.f32.xlu0 %v211_v33 }
 0x1a6   :  { %v210_v35 = vadd.f32 %v204_v34, %v35_v4 }
 0x1a8   :  { %v214_v36 = vsel %vm31_vm0, %v210_v35, 0.0 }
 0x1a9   :  { %215 = vadd.xlane.f32.xlu0 %v214_v36 }
 0x22e   :  { %v213_v37 = vpop.xlane.xlu0 %212 }
 0x22f   :  { %v218_v38 = vmul.f32 0.03125, %v213_v37 }
 0x231   :  { %v220_v39 = vsub.f32 %v209_v31, %v218_v38 }
 0x232   :  { %v216_v40 = vpop.xlane.xlu0 %215 }
 0x233   :  { %v219_v41 = vmul.f32 0.03125, %v216_v40  ;;  %v222_v42 = vmul.f32 %v220_v39, %v220_v39 }
 0x235   :  { %v221_v43 = vsub.f32 %v210_v35, %v219_v41  ;;  %v224_v44 = vsel %vm31_vm0, %v222_v42, 0.0 }
 0x236   :  { %225 = vadd.xlane.f32.xlu1 %v224_v44 }
 0x237   :  { %v223_v45 = vmul.f32 %v221_v43, %v221_v43 }
 0x239   :  { %v227_v46 = vsel %vm31_vm0, %v223_v45, 0.0 }
 0x23a   :  { %228 = vadd.xlane.f32.xlu1 %v227_v46 }
 0x2bf   :  { %v226_v47 = vpop.xlane.xlu1 %225 }
 0x2c0   :  { %v230_v48 = vmul.f32 0.03125, %v226_v47 }
 0x2c2   :  { %v232_v49 = vadd.f32 1e-05, %v230_v48 }
 0x2c3   :  { %v229_v50 = vpop.xlane.xlu1 %228 }
 0x2c4   :  { %308 = vrsqrt.f32 %v232_v49  ;;  %v231_v51 = vmul.f32 0.03125, %v229_v50 }
 0x2c6   :  { %v233_v52 = vadd.f32 1e-05, %v231_v51 }
 0x2c8   :  { %310 = vrsqrt.f32 %v233_v52 }
 0x2d1   :  { %v309_v53 = vpop.eup %308 }
 0x2d2   :  { %v236_v55 = vmul.f32 %v309_v53, %v220_v39 }
 0x2d4   :  { %v244_v57 = vmul.f32 %v270_v54, %v236_v55 }
 0x2d5   :  { %v311_v58 = vpop.eup %310 }
 0x2d6   :  { %v252_v59 = vadd.f32 %v271_v56, %v244_v57  ;;  %v237_v60 = vmul.f32 %v311_v58, %v221_v43 }
 0x2d8   :  { %254 = vst.msk [vmem:[%s414_s7] sm:$0xff] %vm31_vm0, %v252_v59  ;;  %v245_v61 = vmul.f32 %v270_v54, %v237_v60 }
 0x2da   :  { %v253_v62 = vadd.f32 %v271_v56, %v245_v61 }
 0x2dc   :  { %255 = vst.msk [vmem:[%s414_s7 + $0x8] sm:$0xff] %vm31_vm0, %v253_v62 }

// kernel: decoder_forward.7
= control target key start
LH: loop header
LB: loop body
LE: loop exit
PB: predicated region body
PF: predicated region fallthrough
CT: control target
= control target key end

     0   :  { %16 = vsyncpa [#allocation3], 0  ;;  %s2606_s0 = inlined_call_operand.vmem [shape: f32[2,8,32], index: 0, kind: input, shape index: {}, may-alias: {0,1}]   ;;  %s2607_s1 = inlined_call_operand.vmem [shape: f32[2,8,32], index: 1, kind: input, shape index: {}, may-alias: {0,1}]   ;;  %s2608_s2 = inlined_call_operand.vmem [shape: f32[1,8,8], index: 2, kind: input, shape index: {}]   ;;  %s2609_s3 = inlined_call_operand.vmem [shape: bf16[32,32], index: 3, kind: input, shape index: {}]   ;;  %s2610_s4 = inlined_call_operand.vmem [shape: f32[1,32], index: 4, kind: input, shape index: {}]   ;;  %s2611_s5 = inlined_call_operand.vmem [shape: bf16[32,64], index: 5, kind: input, shape index: {}]   ;;  %s2612_s6 = inlined_call_operand.hbm [shape: f32[1,64], index: 6, kind: input, shape index: {}]   ;;  %s2613_s7 = inlined_call_operand.vmem [shape: bf16[32,32], index: 7, kind: input, shape index: {}]   ;;  %s2614_s8 = inlined_call_operand.hbm [shape: f32[1,32], index: 8, kind: input, shape index: {}]   ;;  %s2615_s9 = inlined_call_operand.vmem [shape: f32[1,32], index: 9, kind: input, shape index: {}]   ;;  %s2616_s10 = inlined_call_operand.hbm [shape: f32[1,32], index: 10, kind: input, shape index: {}]   ;;  %s2617_s11 = inlined_call_operand.vmem [shape: f32[2,8,32], index: 11, kind: output, shape index: {}]  }
   0x1   :  { %17 = vsyncpa [#allocation5], 0  ;;  %s2309_s17 = smov 0   ;;  %s2311_s18 = smov 0  }
   0x2   :  { %s2313_s19 = smov 0  }
   0x3 LB: > { %s2235_s20 = smov [#allocation4]   ;;  %s1891_s22 = sadd.s32 4294967295, %s2233_s19   ;;  %s2233_s19 = sphi %s2313_s19, %s23_s19   ;;  %s2229_s18 = sphi %s2311_s18, %s2623_s18   ;;  %s2225_s17 = sphi %s2309_s17, %s2622_s17  }
   0x4   : > { %s359_s21 = sshll.u32 %s2235_s20, 4  ;;  %p1893_p0 = scmp.ge.s32.totalorder %s2233_s19, 1  ;;  %s360_s21 = int_to_ptr.vmem [resolvable:$true] %s359_s21 }
   0x5   : > { %p316_p1 = scmp.lt.s32.totalorder %s2233_s19, 3  ;;  %p2327_p2 = scmp.eq.s32.totalorder %s1891_s22, 0 }
   0x6   : > { %s35_s25 = sadd.s32 1, %s2229_s18  ;;  %s2236_s28 = smov [#allocation2]  }
   0x7   : > { %p2331_p3 = pnand %p1893_p0, %p316_p1  ;;  %p2344_p6 = scmp.ge.s32.totalorder %s35_s25, 2 }
   0x8   : > { %s345_s29 = sshll.u32 %s2236_s28, 4  ;;  %s2136_s30 = scalar_lea.vmem %s360_s21, 16  ;;  %s346_s29 = int_to_ptr.vmem [resolvable:$true] %s345_s29 }
   0x9   : > { %p2047_p4 = pneg %p2331_p3  ;;  %p2137_p8 = scmp.ne.s32.totalorder %s360_s21, %s2136_s30 }
   0xa   : > { %s2143_s12 = scalar_lea.vmem %s360_s21, 32  ;;  %p2144_p11 = scmp.lt.s32.totalorder %s360_s21, %s360_s21 }
   0xb   : > { %p2340_p5 = pnand %p2327_p2, %p2047_p4  ;;  %p2145_p12 = scmp.lt.s32.totalorder %s2143_s12, %s2136_s30 }
   0xd   : > { %p2127_p7 = pneg %p2340_p5  ;;  %p2146_p13 = por %p2145_p12, %p2144_p11 }
   0xf   : > { %p2139_p9 = pnand %p2137_p8, %p2127_p7 }
  0x11   : > { %p2140_p10 = pneg %p2139_p9 }
  0x13   : > { %p2147_p0 = pnand %p2146_p13, %p2140_p10 }
  0x15   : > { %2150 = shalt.err (!%p2147_p0)
}
  0x16   : > { %2053 = dma.hbm_to_vmem [thread:$0]  (!%p2340_p5), %s2614_s8, 16, %s360_s21, [#allocation5]  }
  0x17   : > { %s2625_s25 = smov (%p2344_p6, %s35_s25), 0  ;;  %s2162_s15 = scalar_lea.vmem %s346_s29, 16 }
  0x18   : > { %p2163_p1 = scmp.ne.s32.totalorder %s346_s29, %s2162_s15  ;;  %s2169_s16 = scalar_lea.vmem %s346_s29, 32 }
  0x19   : > { %p2170_p9 = scmp.lt.s32.totalorder %s346_s29, %s346_s29  ;;  %p2171_p10 = scmp.lt.s32.totalorder %s2169_s16, %s2162_s15 }
  0x1a   : > { %p2165_p4 = pnand %p2163_p1, %p2127_p7 }
  0x1b   : > { %p2172_p11 = por %p2171_p10, %p2170_p9 }
  0x1c   : > { %p2166_p8 = pneg %p2165_p4 }
  0x1e   : > { %p2173_p12 = pnand %p2172_p11, %p2166_p8 }
  0x20   : > { %2176 = shalt.err (!%p2173_p12)
}
  0x21   : > { %2050 = dma.hbm_to_vmem [thread:$0]  (!%p2340_p5), %s2612_s6, 16, %s346_s29, [#allocation3]  }
  0x22   : > { %s2237_s21 = smov [#allocation6]  }
  0x23   : > { %s373_s27 = sshll.u32 %s2237_s21, 4  ;;  %s374_s27 = int_to_ptr.vmem [resolvable:$true] %s373_s27 }
  0x24   : > { %s2188_s28 = scalar_lea.vmem %s374_s27, 16  ;;  %s2195_s30 = scalar_lea.vmem %s374_s27, 32 }
  0x25   : > { %p2189_p6 = scmp.ne.s32.totalorder %s374_s27, %s2188_s28  ;;  %p2196_p1 = scmp.lt.s32.totalorder %s374_s27, %s374_s27 }
  0x26   : > { %p2197_p4 = scmp.lt.s32.totalorder %s2195_s30, %s2188_s28 }
  0x27   : > { %p2191_p13 = pnand %p2189_p6, %p2127_p7 }
  0x28   : > { %p2198_p8 = por %p2197_p4, %p2196_p1 }
  0x29   : > { %p2192_p0 = pneg %p2191_p13 }
  0x2b   : > { %p2199_p9 = pnand %p2198_p8, %p2192_p0 }
  0x2d   : > { %2202 = shalt.err (!%p2199_p9)
}
  0x2e   : > { %2056 = dma.hbm_to_vmem [thread:$0]  (!%p2340_p5), %s2616_s10, 16, %s374_s27, [#allocation5]  }
  0x2f   : > { %403 = sbr.rel (%p2331_p3) target bundleno = 1655 (0x677), region = 64 }
  0x34   : > { %2216 = dma.done.wait (%p2327_p2), [#allocation3], 16  }
  0x35   : > { %2218 = vsyncadd (%p2327_p2), [#allocation3], 4294967280 }
  0x36   : > { %2220 = dma.done.wait (%p2327_p2), [#allocation5], 32  }
  0x37   : > { %2222 = vsyncadd (%p2327_p2), [#allocation5], 4294967264  ;;  %p463_p7 = scmp.lt.s32.totalorder %s2225_s17, 1  ;;  %v2238_v0 = vmov 0.0   ;;  %vm2239_vm0 = vmmov 0   ;;  %v2101_v1 = vld [vmem:[%s2611_s5 + $0x8] sm:$0xff]   ;;  %v640_v24 = vlaneseq }
  0x38   : > { %1971 = vmatprep.subr.bf16.mxu1 %v2238_v0  ;;  %1963 = vmatprep.subr.bf16.mxu0 %v2238_v0  ;;  %v2102_v2 = vld [vmem:[%s2609_s3 + $0x8] sm:$0xff]   ;;  %v2103_v3 = vld [vmem:[%s2611_s5] sm:$0xff]   ;;  %vm512_vm1 = vcmask 261120   ;;  %s2240_s26 = smov 104   ;;  %s2241_s29 = smov 120   ;;  %vm1077_vm2 = vcmask 64512  }
  0x39   : > { %1975 = vmatprep.mubr.msk.bf16.mxu1 %vm2239_vm0, %v2238_v0  ;;  %1967 = vmatprep.mubr.msk.bf16.mxu0 %vm2239_vm0, %v2238_v0  ;;  %s2627_s17 = smov (!%p463_p7, %s2225_s17), 1  ;;  %v2104_v4 = vld [vmem:[%s2609_s3] sm:$0xff]   ;;  %s2242_s14 = smov 112   ;;  %v2244_v22 = vmov 1983009808   ;;  %v641_v28 = vshrl.u32 %v640_v24, 7 }
  0x3a   : > { %s2396_s24 = sshll.u32 %s2627_s17, 3  ;;  %1972 = vmatpush3.bf16.msra.mxu1 %v2101_v1  ;;  %1964 = vmatpush3.bf16.msra.mxu0 %v2102_v2  ;;  %v1910_v9 = vld [vmem:[#allocation2] ss:$0 sm:$0xff]  ;;  %s2243_s15 = smov 96   ;;  %v638_v23 = vunpack.c.l.s4 %v2244_v22  ;;  %v2245_v25 = vmov 1934713408  }
  0x3b   : > { %s473_s20 = scalar_lea.vmem %s2607_s1, %s2396_s24  ;;  %s469_s27 = scalar_lea.vmem %s2606_s0, %s2396_s24  ;;  %1973 = vmatprep.subr.bf16.mxu1 %v2238_v0  ;;  %1965 = vmatprep.subr.bf16.mxu0 %v2238_v0  ;;  %v1906_v10 = vld [vmem:[%s2610_s4] ss:$0 sm:$0xff]  ;;  %v670_v26 = vunpack.c.l.s4 %v2245_v25  ;;  %vm1316_vm4 = vcmask 1043456   ;;  %vm1655_vm5 = vcmask 130048   ;;  %vm1657_vm6 = vcmask 195584  }
  0x3c   : > { %v487_v5 = vld [vmem:[%s473_s20] sm:$0xff]  ;;  %v639_v27 = vunpack.c.0.s8 %v638_v23  ;;  %s2246_s28 = smov 16   ;;  %s2247_s30 = smov 8  }
  0x3d   : > { %v2420_v6 = vld [vmem:[%s469_s27] sm:$0xff]  ;;  %v561_v7 = vpack.c.bf16 %v487_v5, %v487_v5  ;;  %v671_v31 = vunpack.c.0.s8 %v670_v26  ;;  %s2248_s12 = smov 24  }
  0x3e   : > { %1974 = vmatpush3.bf16.msra.mxu1 %v2103_v3  ;;  %v492_v8 = vpack.c.bf16 %v2420_v6, %v2420_v6  ;;  %1966 = vmatpush3.bf16.msra.mxu0 %v2104_v4  ;;  %v2439_v32 = vsub.s32 %v639_v27, %v641_v28 }
  0x3f   : > { %1985 = vmatprep.subr.bf16.mxu1 %v2238_v0  ;;  %1979 = vmatprep.subr.bf16.mxu0 %v2238_v0  ;;  %v2447_v39 = vsub.s32 %v671_v31, %v641_v28 }
  0x41   : > { %1976 = vmatmul.mubr.msk.bf16.vlgmr.msra.gmra.mxu1 %vm512_vm1, %v561_v7  ;;  %1968 = vmatmul.mubr.msk.bf16.vlgmr.msra.gmra.mxu0 %vm512_vm1, %v492_v8 }
  0x42   : > { %1987 = vmatprep.mubr.msk.bf16.mxu1 %vm2239_vm0, %v2238_v0  ;;  %1981 = vmatprep.mubr.msk.bf16.mxu0 %vm2239_vm0, %v2238_v0 }
 0x101   : > { %v618_v11 = vpop.f32.mrf.mxu1  ;;  %v550_v13 = vpop.f32.mrf.mxu0 }
 0x102   : > { %v619_v12 = vadd.f32 %v1910_v9, %v618_v11  ;;  %v551_v14 = vadd.f32 %v1906_v10, %v550_v13 }
 0x103   : > { %v1977_v15 = vpop.f32.mrf.mxu1  ;;  %v1969_v16 = vpop.f32.mrf.mxu0 }
 0x104   : > { %782 = vrot.lane.b32.xlu1 %v619_v12, %s2240_s26  ;;  %776 = vrot.lane.b32.xlu0 %v619_v12, %s2241_s29  ;;  %v556_v17 = vmul.f32 0.35355338, %v551_v14 }
 0x105   : > { %v621_v18 = vpop.f32.mrf.mxu1  ;;  %v553_v19 = vpop.f32.mrf.mxu0 }
 0x107   : > { %v1978_v20 = vpop.f32.mrf.mxu1  ;;  %v1970_v21 = vpop.f32.mrf.mxu0 }
 0x108   : > { %779 = vrot.lane.b32.xlu0 %v619_v12, %s2242_s14  ;;  %626 = vrot.lane.b32.xlu1 %v556_v17, %s2241_s29 }
 0x10c   : > { %629 = vrot.lane.b32.xlu0 %v556_v17, %s2242_s14  ;;  %632 = vrot.lane.b32.xlu1 %v556_v17, %s2240_s26  ;;  %s484_s14 = scalar_lea.vmem %s2617_s11, %s2396_s24 }
 0x110   : > { %925 = vrot.lane.b32.xlu0 %v619_v12, %s2243_s15 }
 0x176   : > { %v2436_v29 = vpop.permute.xlu1 %782  ;;  %v777_v30 = vpop.permute.xlu0 %776 }
 0x177   : > { %927 = vrot.lane.b32.xlu1 %v777_v30, %s2243_s15  ;;  %v801_v33 = vcombine.low %v777_v30, %v2436_v29  ;;  %v802_v34 = vcombine.high %v777_v30, %v2436_v29 }
 0x179   : > { %v809_v40 = vrot.slane %v801_v33, %v2439_v32  ;;  %v816_v41 = vrot.slane %v802_v34, %v2439_v32 }
 0x17a   : > { %v2443_v35 = vpop.permute.xlu0 %779  ;;  %v627_v36 = vpop.permute.xlu1 %626 }
 0x17b   : > { %v785_v37 = vcombine.low %v619_v12, %v2443_v35  ;;  %v786_v38 = vcombine.high %v619_v12, %v2443_v35 }
 0x17d   : > { %v793_v42 = vrot.slane %v785_v37, %v2439_v32  ;;  %v800_v43 = vrot.slane %v786_v38, %v2439_v32 }
 0x17e   : > { %v630_v44 = vpop.permute.xlu0 %629  ;;  %v633_v45 = vpop.permute.xlu1 %632 }
 0x17f   : > { %v817_v46 = vcombine.low %v793_v42, %v809_v40  ;;  %v818_v47 = vcombine.high %v793_v42, %v809_v40  ;;  %v833_v48 = vcombine.low %v800_v43, %v816_v41  ;;  %v834_v49 = vcombine.high %v800_v43, %v816_v41 }
 0x180   : > { %v635_v50 = vcombine.low %v556_v17, %v630_v44  ;;  %v636_v51 = vcombine.high %v556_v17, %v630_v44  ;;  %v651_v52 = vcombine.low %v627_v36, %v633_v45  ;;  %v652_v53 = vcombine.high %v627_v36, %v633_v45 }
 0x181   : > { %v825_v54 = vrot.slane %v817_v46, %v2447_v39  ;;  %v832_v55 = vrot.slane %v818_v47, %v2447_v39  ;;  %v841_v56 = vrot.slane %v833_v48, %v2447_v39  ;;  %v848_v57 = vrot.slane %v834_v49, %v2447_v39 }
 0x182   : > { %v643_v58 = vrot.slane %v635_v50, %v2439_v32  ;;  %v650_v59 = vrot.slane %v636_v51, %v2439_v32  ;;  %v659_v60 = vrot.slane %v651_v52, %v2439_v32  ;;  %v666_v61 = vrot.slane %v652_v53, %v2439_v32 }
 0x183   : > { %v853_v62 = vcombine.low %v825_v54, %v832_v55  ;;  %v1916_v63 = vcombine.high %v825_v54, %v832_v55  ;;  %v869_v1 = vcombine.low %v841_v56, %v848_v57  ;;  %v1917_v2 = vcombine.high %v841_v56, %v848_v57 }
 0x184   : > { %v667_v3 = vcombine.low %v643_v58, %v659_v60  ;;  %v668_v4 = vcombine.high %v643_v58, %v659_v60  ;;  %v683_v5 = vcombine.low %v650_v59, %v666_v61  ;;  %v684_v7 = vcombine.high %v650_v59, %v666_v61 }
 0x185   : > { %v860_v8 = vrot.slane %v853_v62, %v2439_v32  ;;  %v868_v9 = vrot.slane %v1916_v63, %v2439_v32  ;;  %v876_v10 = vrot.slane %v869_v1, %v2439_v32  ;;  %v884_v11 = vrot.slane %v1917_v2, %v2439_v32  ;;  %v624_v1 = vld [vmem:[%s2608_s2] sm:$0xff] }
 0x186   : > { %v675_v12 = vrot.slane %v667_v3, %v2447_v39  ;;  %v682_v13 = vrot.slane %v668_v4, %v2447_v39  ;;  %v691_v14 = vrot.slane %v683_v5, %v2447_v39  ;;  %v698_v15 = vrot.slane %v684_v7, %v2447_v39 }
 0x187   : > { %v885_v16 = vcombine.low %v860_v8, %v868_v9  ;;  %v901_v17 = vcombine.low %v876_v10, %v884_v11  ;;  %v886_v18 = vcombine.high %v860_v8, %v868_v9  ;;  %v902_v19 = vcombine.high %v876_v10, %v884_v11 }
 0x188   : > { %v703_v20 = vcombine.low %v675_v12, %v682_v13  ;;  %v1914_v21 = vcombine.high %v675_v12, %v682_v13  ;;  %v719_v22 = vcombine.low %v691_v14, %v698_v15  ;;  %v1915_v23 = vcombine.high %v691_v14, %v698_v15 }
 0x189   : > { %v893_v24 = vrot.slane %v885_v16, %v2447_v39  ;;  %v909_v25 = vrot.slane %v901_v17, %v2447_v39  ;;  %v900_v34 = vrot.slane %v886_v18, %v2447_v39  ;;  %v916_v36 = vrot.slane %v902_v19, %v2447_v39 }
 0x18a   : > { %v710_v26 = vrot.slane %v703_v20, %v2439_v32  ;;  %v718_v27 = vrot.slane %v1914_v21, %v2439_v32  ;;  %v726_v28 = vrot.slane %v719_v22, %v2439_v32  ;;  %v734_v30 = vrot.slane %v1915_v23, %v2439_v32 }
 0x18b   : > { %v917_v31 = vcombine.low %v893_v24, %v909_v25  ;;  %v918_v33 = vcombine.high %v893_v24, %v909_v25  ;;  %v919_v46 = vcombine.low %v900_v34, %v916_v36  ;;  %v920_v47 = vcombine.high %v900_v34, %v916_v36 }
 0x18c   : > { %v735_v37 = vcombine.low %v710_v26, %v718_v27  ;;  %v751_v38 = vcombine.low %v726_v28, %v734_v30  ;;  %v736_v48 = vcombine.high %v710_v26, %v718_v27  ;;  %v752_v49 = vcombine.high %v726_v28, %v734_v30  ;;  %v926_v27 = vpop.permute.xlu0 %925 }
 0x18d   : > { %v921_v40 = vpack.c.bf16 %v917_v31, %v917_v31  ;;  %v922_v41 = vpack.c.bf16 %v918_v33, %v918_v33  ;;  %v923_v52 = vpack.c.bf16 %v919_v46, %v919_v46  ;;  %v924_v53 = vpack.c.bf16 %v920_v47, %v920_v47 }
 0x18e   : > { %v743_v42 = vrot.slane %v735_v37, %v2447_v39  ;;  %v759_v43 = vrot.slane %v751_v38, %v2447_v39  ;;  %v750_v56 = vrot.slane %v736_v48, %v2447_v39  ;;  %v766_v57 = vrot.slane %v752_v49, %v2447_v39 }
 0x18f   : > { %v1082_v44 = vsel %vm1077_vm2, %v921_v40, 0  ;;  %v1128_v45 = vsel %vm1077_vm2, %v922_v41, 0  ;;  %v1174_v58 = vsel %vm1077_vm2, %v923_v52, 0  ;;  %v1220_v59 = vsel %vm1077_vm2, %v924_v53, 0 }
 0x190   : > { %1980 = vmatpush3.bf16.xpose.msra.mxu0 %v1082_v44  ;;  %1986 = vmatpush3.bf16.xpose.msra.mxu1 %v1128_v45  ;;  %v767_v50 = vcombine.low %v743_v42, %v759_v43  ;;  %v768_v51 = vcombine.high %v743_v42, %v759_v43  ;;  %v769_v60 = vcombine.low %v750_v56, %v766_v57  ;;  %vm1262_vm3 = vcmp.gt.f32.partialorder %v624_v1, 0.0 }
 0x191   : > { %1991 = vmatprep.subr.bf16.mxu0 %v2238_v0  ;;  %1997 = vmatprep.subr.bf16.mxu1 %v2238_v0  ;;  %v770_v61 = vcombine.high %v750_v56, %v766_v57 }
 0x192   : > { %v771_v54 = vpack.c.bf16 %v767_v50, %v767_v50  ;;  %v772_v55 = vpack.c.bf16 %v768_v51, %v768_v51  ;;  %v773_v62 = vpack.c.bf16 %v769_v60, %v769_v60 }
 0x193   : > { %v774_v63 = vpack.c.bf16 %v770_v61, %v770_v61 }
 0x197   : > { %1982 = vmatmul.mubr.msk.bf16.vlgmr.msra.gmra.mxu0 %vm1077_vm2, %v771_v54  ;;  %1988 = vmatmul.mubr.msk.bf16.vlgmr.msra.gmra.mxu1 %vm1077_vm2, %v772_v55 }
 0x198   : > { %1992 = vmatpush3.bf16.xpose.msra.mxu0 %v1174_v58  ;;  %1998 = vmatpush3.bf16.xpose.msra.mxu1 %v1220_v59 }
 0x199   : > { %1993 = vmatprep.mubr.msk.bf16.mxu0 %vm2239_vm0, %v2238_v0  ;;  %1999 = vmatprep.mubr.msk.bf16.mxu1 %vm2239_vm0, %v2238_v0 }
 0x19a   : > { %2003 = vmatprep.subr.bf16.mxu0 %v2238_v0  ;;  %2009 = vmatprep.subr.bf16.mxu1 %v2238_v0 }
 0x19f   : > { %1994 = vmatmul.mubr.msk.bf16.vlgmr.msra.gmra.mxu0 %vm1077_vm2, %v773_v62  ;;  %2000 = vmatmul.mubr.msk.bf16.vlgmr.msra.gmra.mxu1 %vm1077_vm2, %v774_v63 }
 0x1a0   : > { %2005 = vmatprep.mubr.msk.bf16.mxu0 %vm2239_vm0, %v2238_v0  ;;  %2011 = vmatprep.mubr.msk.bf16.mxu1 %vm2239_vm0, %v2238_v0 }
 0x1e9   : > { %v928_v28 = vpop.permute.xlu1 %927 }
 0x257   : > { %v1118_v2 = vpop.f32.mrf.mxu0  ;;  %v1164_v3 = vpop.f32.mrf.mxu1 }
 0x258   : > { %v1265_v4 = vsel %vm1262_vm3, %v1118_v2, -1e+09  ;;  %v1266_v5 = vsel %vm1262_vm3, %v1164_v3, -1e+09 }
 0x259   : > { %v1983_v7 = vpop.f32.mrf.mxu0  ;;  %v1989_v8 = vpop.f32.mrf.mxu1  ;;  %v1272_v9 = vsel %vm1077_vm2, %v1266_v5, -inf  ;;  %v1269_v10 = vsel %vm1077_vm2, %v1265_v4, -inf }
 0x25a   : > { %1273 = vmax.xlane.f32.xlu1 %v1272_v9  ;;  %1270 = vmax.xlane.f32.xlu0 %v1269_v10 }
 0x25b   : > { %v1121_v11 = vpop.f32.mrf.mxu0  ;;  %v1167_v12 = vpop.f32.mrf.mxu1 }
 0x25d   : > { %v1984_v13 = vpop.f32.mrf.mxu0  ;;  %v1990_v14 = vpop.f32.mrf.mxu1 }
 0x25f   : > { %v1210_v15 = vpop.f32.mrf.mxu0  ;;  %v1256_v16 = vpop.f32.mrf.mxu1 }
 0x260   : > { %v2513_v23 = vsel %vm1262_vm3, %v1210_v15, -1e+09  ;;  %v2516_v24 = vsel %vm1262_vm3, %v1256_v16, -1e+09 }
 0x261   : > { %v1995_v17 = vpop.f32.mrf.mxu0  ;;  %v2001_v18 = vpop.f32.mrf.mxu1  ;;  %v1278_v25 = vsel %vm1077_vm2, %v2516_v24, -inf  ;;  %v1275_v26 = vsel %vm1077_vm2, %v2513_v23, -inf }
 0x263   : > { %v1213_v19 = vpop.f32.mrf.mxu0  ;;  %v1259_v20 = vpop.f32.mrf.mxu1 }
 0x265   : > { %v1996_v21 = vpop.f32.mrf.mxu0  ;;  %v2002_v22 = vpop.f32.mrf.mxu1 }
 0x26b   : > { %931 = vrot.lane.b32.xlu1 %v2436_v29, %s2243_s15 }
 0x270   : > { %929 = vrot.lane.b32.xlu0 %v2443_v35, %s2243_s15 }
 0x28f   : > { %1279 = vmax.xlane.f32.xlu1 %v1278_v25  ;;  %1276 = vmax.xlane.f32.xlu0 %v1275_v26 }
 0x2e3   : > { %v1274_v29 = vpop.xlane.xlu1 %1273  ;;  %v1271_v30 = vpop.xlane.xlu0 %1270 }
 0x2e4   : > { %v1282_v31 = vsub.f32 %v1266_v5, %v1274_v29  ;;  %v1281_v35 = vsub.f32 %v1265_v4, %v1271_v30 }
 0x2e6   : > { %v1285_v33 = vmul.f32 1.442695, %v1281_v35  ;;  %v1287_v34 = vmul.f32 1.442695, %v1282_v31 }
 0x2e7   : > { %v932_v36 = vpop.permute.xlu1 %931  ;;  %v930_v37 = vpop.permute.xlu0 %929 }
 0x2e8   : > { %v953_v38 = vcombine.low %v928_v28, %v932_v36  ;;  %v954_v40 = vcombine.high %v928_v28, %v932_v36  ;;  %v937_v41 = vcombine.low %v926_v27, %v930_v37  ;;  %2107 = vpow2.f32 %v1285_v33 }
 0x2e9   : > { %v938_v42 = vcombine.high %v926_v27, %v930_v37  ;;  %2109 = vpow2.f32 %v1287_v34 }
 0x2ea   : > { %v961_v43 = vrot.slane %v953_v38, %v2439_v32  ;;  %v968_v44 = vrot.slane %v954_v40, %v2439_v32  ;;  %v945_v45 = vrot.slane %v937_v41, %v2439_v32 }
 0x2eb   : > { %v952_v46 = vrot.slane %v938_v42, %v2439_v32 }
 0x2ec   : > { %v969_v47 = vcombine.low %v945_v45, %v961_v43  ;;  %v970_v48 = vcombine.high %v945_v45, %v961_v43 }
 0x2ed   : > { %v985_v49 = vcombine.low %v952_v46, %v968_v44  ;;  %v986_v50 = vcombine.high %v952_v46, %v968_v44 }
 0x2ee   : > { %v977_v51 = vrot.slane %v969_v47, %v2447_v39  ;;  %v984_v52 = vrot.slane %v970_v48, %v2447_v39 }
 0x2ef   : > { %v993_v53 = vrot.slane %v985_v49, %v2447_v39  ;;  %v1000_v54 = vrot.slane %v986_v50, %v2447_v39 }
 0x2f0   : > { %v1005_v55 = vcombine.low %v977_v51, %v984_v52  ;;  %v1918_v56 = vcombine.high %v977_v51, %v984_v52 }
 0x2f1   : > { %v1021_v57 = vcombine.low %v993_v53, %v1000_v54  ;;  %v1919_v58 = vcombine.high %v993_v53, %v1000_v54 }
 0x2f2   : > { %v1012_v59 = vrot.slane %v1005_v55, %v2439_v32  ;;  %v1020_v60 = vrot.slane %v1918_v56, %v2439_v32 }
 0x2f3   : > { %v1028_v61 = vrot.slane %v1021_v57, %v2439_v32  ;;  %v1036_v62 = vrot.slane %v1919_v58, %v2439_v32 }
 0x2f4   : > { %v1037_v63 = vcombine.low %v1012_v59, %v1020_v60  ;;  %v1038_v1 = vcombine.high %v1012_v59, %v1020_v60 }
 0x2f5   : > { %v1053_v2 = vcombine.low %v1028_v61, %v1036_v62  ;;  %v1054_v3 = vcombine.high %v1028_v61, %v1036_v62  ;;  %v2108_v4 = vpop.eup %2107 }
 0x2f6   : > { %v1045_v5 = vrot.slane %v1037_v63, %v2447_v39  ;;  %v1052_v7 = vrot.slane %v1038_v1, %v2447_v39  ;;  %v1293_v8 = vsel %vm1077_vm2, %v2108_v4, 0.0  ;;  %v2110_v11 = vpop.eup %2109  ;;  %v1309_v25 = vpack.c.bf16 %v2108_v4, %v2108_v4 }
 0x2f7   : > { %v1061_v9 = vrot.slane %v1053_v2, %v2447_v39  ;;  %v1068_v10 = vrot.slane %v1054_v3, %v2447_v39  ;;  %1294 = vadd.xlane.f32.xlu0 %v1293_v8  ;;  %v1296_v16 = vsel %vm1077_vm2, %v2110_v11, 0.0  ;;  %v1310_v26 = vpack.c.bf16 %v2110_v11, %v2110_v11 }
 0x2f9   : > { %v1069_v12 = vcombine.low %v1045_v5, %v1061_v9  ;;  %v1070_v13 = vcombine.high %v1045_v5, %v1061_v9  ;;  %v1071_v14 = vcombine.low %v1052_v7, %v1068_v10  ;;  %v1072_v15 = vcombine.high %v1052_v7, %v1068_v10 }
 0x2fb   : > { %v1073_v17 = vpack.c.bf16 %v1069_v12, %v1069_v12  ;;  %v1074_v18 = vpack.c.bf16 %v1070_v13, %v1070_v13  ;;  %1297 = vadd.xlane.f32.xlu0 %v1296_v16  ;;  %v1075_v21 = vpack.c.bf16 %v1071_v14, %v1071_v14  ;;  %v1076_v22 = vpack.c.bf16 %v1072_v15, %v1072_v15 }
 0x2fd   : > { %v1318_v19 = vsel %vm1316_vm4, %v1073_v17, 0  ;;  %v1364_v20 = vsel %vm1316_vm4, %v1074_v18, 0  ;;  %v1410_v27 = vsel %vm1316_vm4, %v1075_v21, 0  ;;  %v1456_v28 = vsel %vm1316_vm4, %v1076_v22, 0 }
 0x2fe   : > { %2004 = vmatpush3.bf16.msra.mxu0 %v1318_v19  ;;  %2010 = vmatpush3.bf16.msra.mxu1 %v1364_v20 }
 0x2ff   : > { %2015 = vmatprep.subr.bf16.mxu0 %v2238_v0  ;;  %2021 = vmatprep.subr.bf16.mxu1 %v2238_v0 }
 0x301   : > { %2006 = vmatmul.mubr.msk.bf16.vlgmr.msra.gmra.mxu0 %vm1077_vm2, %v1309_v25  ;;  %2012 = vmatmul.mubr.msk.bf16.vlgmr.msra.gmra.mxu1 %vm1077_vm2, %v1310_v26  ;;  %v2105_v25 = vld [vmem:[%s2613_s7 + $0x8] sm:$0xff]  }
 0x302   : > { %2016 = vmatpush3.bf16.msra.mxu0 %v1410_v27  ;;  %2022 = vmatpush3.bf16.msra.mxu1 %v1456_v28 }
 0x303   : > { %2017 = vmatprep.mubr.msk.bf16.mxu0 %vm2239_vm0, %v2238_v0  ;;  %2023 = vmatprep.mubr.msk.bf16.mxu1 %vm2239_vm0, %v2238_v0 }
 0x304   : > { %2027 = vmatprep.subr.bf16.mxu0 %v2238_v0 }
 0x318   : > { %v1280_v29 = vpop.xlane.xlu1 %1279  ;;  %v1277_v30 = vpop.xlane.xlu0 %1276 }
 0x319   : > { %v1284_v31 = vsub.f32 %v2516_v24, %v1280_v29  ;;  %v1283_v35 = vsub.f32 %v2513_v23, %v1277_v30 }
 0x31b   : > { %v1291_v33 = vmul.f32 1.442695, %v1284_v31  ;;  %v1289_v34 = vmul.f32 1.442695, %v1283_v35 }
 0x31d   : > { %2111 = vpow2.f32 %v1291_v33 }
 0x31e   : > { %2113 = vpow2.f32 %v1289_v34  ;;  %v2106_v34 = vld [vmem:[%s2613_s7] sm:$0xff]  }
 0x32a   : > { %v2112_v36 = vpop.eup %2111 }
 0x32b   : > { %v2114_v37 = vpop.eup %2113  ;;  %v1302_v38 = vsel %vm1077_vm2, %v2112_v36, 0.0  ;;  %v1312_v40 = vpack.c.bf16 %v2112_v36, %v2112_v36 }
 0x32c   : > { %1303 = vadd.xlane.f32.xlu0 %v1302_v38  ;;  %v1299_v41 = vsel %vm1077_vm2, %v2114_v37, 0.0  ;;  %v1311_v42 = vpack.c.bf16 %v2114_v37, %v2114_v37 }
 0x32d   : > { %1300 = vadd.xlane.f32.xlu1 %v1299_v41  ;;  %2024 = vmatmul.mubr.msk.bf16.vlgmr.msra.gmra.mxu1 %vm1077_vm2, %v1312_v40 }
 0x32e   : > { %2018 = vmatmul.mubr.msk.bf16.vlgmr.msra.gmra.mxu0 %vm1077_vm2, %v1311_v42 }
 0x32f   : > { %2031 = vmatprep.mubr.msk.bf16.mxu0 %vm2239_vm0, %v2238_v0  ;;  %2028 = vmatpush3.bf16.msra.mxu0 %v2105_v25 }
 0x330   : > { %2029 = vmatprep.subr.bf16.mxu0 %v2238_v0 }
 0x333   : > { %2030 = vmatpush3.bf16.msra.mxu0 %v2106_v34 }
 0x380   : > { %v1295_v49 = vpop.xlane.xlu0 %1294 }
 0x381   : > { %v1305_v52 = vmax.f32 %v1295_v49, 1e-20 }
 0x383   : > { %2115 = vrcp.f32 %v1305_v52 }
 0x384   : > { %v1298_v50 = vpop.xlane.xlu0 %1297 }
 0x385   : > { %v1306_v54 = vmax.f32 %v1298_v50, 1e-20 }
 0x387   : > { %2117 = vrcp.f32 %v1306_v54 }
 0x390   : > { %v2116_v57 = vpop.eup %2115 }
 0x394   : > { %v2118_v58 = vpop.eup %2117 }
 0x3b5   : > { %v1304_v51 = vpop.xlane.xlu0 %1303 }
 0x3b6   : > { %v1301_v53 = vpop.xlane.xlu1 %1300  ;;  %v1308_v55 = vmax.f32 %v1304_v51, 1e-20 }
 0x3b7   : > { %v1307_v56 = vmax.f32 %v1301_v53, 1e-20 }
 0x3b8   : > { %2119 = vrcp.f32 %v1308_v55  ;;  %v1930_v55 = vld [vmem:[#allocation4] ss:$0 sm:$0xff] }
 0x3b9   : > { %2121 = vrcp.f32 %v1307_v56 }
 0x3c1   : > { %v1354_v23 = vpop.f32.mrf.mxu0  ;;  %v1400_v24 = vpop.f32.mrf.mxu1 }
 0x3c2   : > { %v1503_v62 = vmul.f32 %v2118_v58, %v1400_v24  ;;  %v1502_v2 = vmul.f32 %v2116_v57, %v1354_v23 }
 0x3c3   : > { %v2007_v43 = vpop.f32.mrf.mxu0  ;;  %v2013_v44 = vpop.f32.mrf.mxu1 }
 0x3c5   : > { %v1357_v45 = vpop.f32.mrf.mxu0  ;;  %v1403_v46 = vpop.f32.mrf.mxu1 }
 0x3c6   : > { %v2120_v59 = vpop.eup %2119 }
 0x3c7   : > { %v2008_v47 = vpop.f32.mrf.mxu0  ;;  %v2014_v48 = vpop.f32.mrf.mxu1 }
 0x3c8   : > { %v2122_v61 = vpop.eup %2121 }
 0x3ed   : > { %v1492_v60 = vpop.f32.mrf.mxu1 }
 0x3ee   : > { %v1446_v63 = vpop.f32.mrf.mxu0  ;;  %v1505_v1 = vmul.f32 %v2120_v59, %v1492_v60 }
 0x3ef   : > { %v1504_v3 = vmul.f32 %v2122_v61, %v1446_v63  ;;  %v2025_v4 = vpop.f32.mrf.mxu1 }
 0x3f0   : > { %v1522_v5 = vcombine.low %v1503_v62, %v1505_v1  ;;  %v1523_v7 = vcombine.high %v1503_v62, %v1505_v1  ;;  %v2019_v8 = vpop.f32.mrf.mxu0 }
 0x3f1   : > { %v1506_v9 = vcombine.low %v1502_v2, %v1504_v3  ;;  %v1507_v10 = vcombine.high %v1502_v2, %v1504_v3  ;;  %v1495_v11 = vpop.f32.mrf.mxu1 }
 0x3f2   : > { %v1530_v12 = vrot.slane %v1522_v5, %v2439_v32  ;;  %v1537_v13 = vrot.slane %v1523_v7, %v2439_v32  ;;  %v1449_v14 = vpop.f32.mrf.mxu0  ;;  %v1935_v11 = vld [vmem:[#allocation6] ss:$0 sm:$0xff] }
 0x3f3   : > { %v1514_v15 = vrot.slane %v1506_v9, %v2439_v32  ;;  %v1521_v16 = vrot.slane %v1507_v10, %v2439_v32  ;;  %v2026_v17 = vpop.f32.mrf.mxu1 }
 0x3f4   : > { %v2020_v18 = vpop.f32.mrf.mxu0 }
 0x3f5   : > { %v1538_v19 = vcombine.low %v1514_v15, %v1530_v12  ;;  %v1539_v20 = vcombine.high %v1514_v15, %v1530_v12  ;;  %v1554_v21 = vcombine.low %v1521_v16, %v1537_v13  ;;  %v1555_v22 = vcombine.high %v1521_v16, %v1537_v13 }
 0x3f7   : > { %v1546_v26 = vrot.slane %v1538_v19, %v2447_v39  ;;  %v1553_v27 = vrot.slane %v1539_v20, %v2447_v39  ;;  %v1562_v28 = vrot.slane %v1554_v21, %v2447_v39  ;;  %v1569_v29 = vrot.slane %v1555_v22, %v2447_v39 }
 0x3f9   : > { %v1574_v30 = vcombine.low %v1546_v26, %v1553_v27  ;;  %v1928_v31 = vcombine.high %v1546_v26, %v1553_v27  ;;  %v1590_v35 = vcombine.low %v1562_v28, %v1569_v29  ;;  %v1929_v33 = vcombine.high %v1562_v28, %v1569_v29 }
 0x3fb   : > { %v1581_v36 = vrot.slane %v1574_v30, %v2439_v32  ;;  %v1589_v37 = vrot.slane %v1928_v31, %v2439_v32  ;;  %v1597_v38 = vrot.slane %v1590_v35, %v2439_v32  ;;  %v1605_v40 = vrot.slane %v1929_v33, %v2439_v32 }
 0x3fd   : > { %v1607_v41 = vcombine.high %v1581_v36, %v1589_v37  ;;  %v1623_v42 = vcombine.high %v1597_v38, %v1605_v40  ;;  %v1606_v0 = vcombine.low %v1581_v36, %v1589_v37  ;;  %v1622_v23 = vcombine.low %v1597_v38, %v1605_v40 }
 0x3ff   : > { %v1621_v24 = vrot.slane %v1607_v41, %v2447_v39  ;;  %v1637_v43 = vrot.slane %v1623_v42, %v2447_v39  ;;  %v1614_v44 = vrot.slane %v1606_v0, %v2447_v39  ;;  %v1630_v45 = vrot.slane %v1622_v23, %v2447_v39 }
 0x401   : > { %v1640_v46 = vcombine.low %v1621_v24, %v1637_v43  ;;  %v1639_v47 = vcombine.high %v1614_v44, %v1630_v45  ;;  %v1638_v48 = vcombine.low %v1614_v44, %v1630_v45  ;;  %v1641_v32 = vcombine.high %v1621_v24, %v1637_v43 }
 0x403   : > { %1647 = vrot.lane.b32.xlu0 %v1640_v46, %s2246_s28  ;;  %1643 = vrot.lane.b32.xlu1 %v1639_v47, %s2247_s30 }
 0x407   : > { %1651 = vrot.lane.b32.xlu1 %v1641_v32, %s2248_s12 }
 0x475   : > { %v1644_v49 = vpop.permute.xlu1 %1643  ;;  %v1648_v50 = vpop.permute.xlu0 %1647 }
 0x476   : > { %v1654_v51 = vsel %vm1077_vm2, %v1638_v48, %v1644_v49 }
 0x477   : > { %v1656_v53 = vsel %vm1655_vm5, %v1654_v51, %v1648_v50 }
 0x479   : > { %v1652_v52 = vpop.permute.xlu1 %1651 }
 0x47a   : > { %v1658_v54 = vsel %vm1657_vm6, %v1656_v53, %v1652_v52 }
 0x47b   : > { %v1663_v39 = vpack.c.bf16 %v1658_v54, %v1658_v54 }
 0x47d   : > { %2032 = vmatmul.mubr.msk.bf16.vlgmr.msra.gmra.mxu0 %vm512_vm1, %v1663_v39 }
 0x53d   : > { %v1720_v56 = vpop.f32.mrf.mxu0 }
 0x53e   : > { %v1721_v57 = vadd.f32 %v1930_v55, %v1720_v56 }
 0x53f   : > { %v2033_v58 = vpop.f32.mrf.mxu0 }
 0x540   : > { %v1728_v59 = vadd.f32 %v1721_v57, %v2420_v6  ;;  %v1934_v6 = vld [vmem:[%s2615_s9] ss:$0 sm:$0xff] }
 0x541   : > { %v1723_v60 = vpop.f32.mrf.mxu0 }
 0x542   : > { %v1729_v61 = vsel %vm512_vm1, %v1728_v59, 0.0 }
 0x543   : > { %1730 = vadd.xlane.f32.xlu1 %v1729_v61  ;;  %v2034_v62 = vpop.f32.mrf.mxu0 }
 0x5cc   : > { %v1731_v63 = vpop.xlane.xlu1 %1730 }
 0x5cd   : > { %v1733_v1 = vmul.f32 0.03125, %v1731_v63 }
 0x5cf   : > { %v1734_v2 = vsub.f32 %v1728_v59, %v1733_v1 }
 0x5d1   : > { %v1735_v3 = vmul.f32 %v1734_v2, %v1734_v2 }
 0x5d3   : > { %v1736_v4 = vsel %vm512_vm1, %v1735_v3, 0.0 }
 0x5d4   : > { %1737 = vadd.xlane.f32.xlu0 %v1736_v4 }
 0x65d   : > { %v1738_v5 = vpop.xlane.xlu0 %1737 }
 0x65e   : > { %v1739_v7 = vmul.f32 0.03125, %v1738_v5 }
 0x660   : > { %v1740_v8 = vadd.f32 1e-05, %v1739_v7 }
 0x662   : > { %2123 = vrsqrt.f32 %v1740_v8 }
 0x66f   : > { %v2124_v9 = vpop.eup %2123 }
 0x670   : > { %v1742_v10 = vmul.f32 %v2124_v9, %v1734_v2 }
 0x672   : > { %v1749_v12 = vmul.f32 %v1934_v6, %v1742_v10 }
 0x674   : > { %v1756_v13 = vadd.f32 %v1935_v11, %v1749_v12 }
 0x676   : > { %1757 = vst.msk [vmem:[%s484_s14] sm:$0xff] %vm512_vm1, %v1756_v13 }
 0x677 PF: > { %s23_s19 = sadd.s32 1, %s2233_s19   ;;  %s2622_s17 = smov %s2229_s18 }
 0x678   : > { %p20_p2 = scmp.ge.s32.totalorder %s23_s19, 4   ;;  %s2623_s18 = smov %s2625_s25 }
 0x67a   :  { %22 = sbr.rel (!%p20_p2) target bundleno = 3 (0x3), region = 113 }
 0x67f   :  { %1783 = vsyncpa [#allocation3], 1 }
 0x680   :  { %1785 = vsyncpa [#allocation3 + $0x1], 1 }
 0x681   :  { %1786 = vsyncpa [#allocation5], 1 }

// kernel: decoder_forward.8
= control target key start
LH: loop header
LB: loop body
LE: loop exit
PB: predicated region body
PF: predicated region fallthrough
CT: control target
= control target key end

     0   :  { %s2109_s17 = smov 0   ;;  %s2111_s18 = smov 0   ;;  %s2361_s0 = inlined_call_operand.vmem [shape: f32[2,8,32], index: 0, kind: input, shape index: {}]   ;;  %s2362_s1 = inlined_call_operand.vmem [shape: f32[2,8,32], index: 1, kind: input, shape index: {}]   ;;  %s2363_s2 = inlined_call_operand.vmem [shape: f32[2,1,8], index: 2, kind: input, shape index: {}]   ;;  %s2364_s3 = inlined_call_operand.vmem [shape: bf16[32,32], index: 3, kind: input, shape index: {}]   ;;  %s2365_s4 = inlined_call_operand.vmem [shape: f32[1,32], index: 4, kind: input, shape index: {}]   ;;  %s2366_s5 = inlined_call_operand.vmem [shape: bf16[32,64], index: 5, kind: input, shape index: {}]   ;;  %s2367_s6 = inlined_call_operand.vmem [shape: f32[1,64], index: 6, kind: input, shape index: {}]   ;;  %s2368_s7 = inlined_call_operand.vmem [shape: bf16[32,32], index: 7, kind: input, shape index: {}]   ;;  %s2369_s8 = inlined_call_operand.vmem [shape: f32[1,32], index: 8, kind: input, shape index: {}]   ;;  %s2370_s9 = inlined_call_operand.vmem [shape: f32[1,32], index: 9, kind: input, shape index: {}]   ;;  %s2371_s10 = inlined_call_operand.vmem [shape: f32[1,32], index: 10, kind: input, shape index: {}]   ;;  %s2372_s11 = inlined_call_operand.vmem [shape: f32[2,8,32], index: 11, kind: output, shape index: {}]  }
   0x1   :  { %s2113_s19 = smov 0  }
   0x2 LB: > { %s33_s20 = sadd.s32 1, %s2031_s18  ;;  %p1820_p0 = scmp.ge.s32.totalorder %s2035_s19, 1  ;;  %s2035_s19 = sphi %s2113_s19, %s21_s19   ;;  %s2031_s18 = sphi %s2111_s18, %s2374_s18   ;;  %s2027_s17 = sphi %s2109_s17, %s2373_s17  }
   0x3   : > { %p35_p1 = scmp.ge.s32.totalorder %s33_s20, 2  ;;  %p372_p2 = scmp.lt.s32.totalorder %s2035_s19, 3 }
   0x5   : > { %s2376_s20 = smov (%p35_p1, %s33_s20), 0  ;;  %p373_p3 = pnand %p1820_p0, %p372_p2 }
   0x6   : > { %p423_p4 = scmp.lt.s32.totalorder (!%p373_p3), %s2027_s17, 1  ;;  %s2039_s25 = smov (!%p373_p3), 104  }
   0x7   : > { %376 = sbr.rel (%p373_p3) target bundleno = 1611 (0x64b), region = 64  ;;  %s2040_s26 = smov (!%p373_p3), 120  }
   0x8   : > { %s2041_s27 = smov (!%p373_p3), 112   ;;  %s2042_s28 = smov (!%p373_p3), 96  }
   0x9   : > { %s2046_s21 = smov (!%p373_p3), 16   ;;  %s2047_s22 = smov (!%p373_p3), 8  }
   0xa   : > { %s2048_s23 = smov (!%p373_p3), 24  }
   0xc   : > { %v1989_v0 = vld [vmem:[%s2366_s5 + $0x8] sm:$0xff]   ;;  %v2037_v1 = vmov 0.0   ;;  %v1991_v3 = vld [vmem:[%s2366_s5] sm:$0xff]   ;;  %vm2038_vm0 = vmmov 0   ;;  %s2378_s17 = smov (!%p423_p4, %s2027_s17), 1  ;;  %vm471_vm1 = vcmask 261120   ;;  %v599_v24 = vlaneseq }
   0xd   : > { %1889 = vmatprep.subr.bf16.mxu1 %v2037_v1  ;;  %1881 = vmatprep.subr.bf16.mxu0 %v2037_v1  ;;  %v1990_v2 = vld [vmem:[%s2364_s3 + $0x8] sm:$0xff]   ;;  %v1992_v4 = vld [vmem:[%s2364_s3] sm:$0xff]   ;;  %s2150_s29 = sshll.u32 %s2378_s17, 3  ;;  %v2043_v22 = vmov 1983009808   ;;  %vm1036_vm2 = vcmask 64512  }
   0xe   : > { %1890 = vmatpush3.bf16.msra.mxu1 %v1989_v0  ;;  %1893 = vmatprep.mubr.msk.bf16.mxu1 %vm2038_vm0, %v2037_v1  ;;  %s433_s13 = scalar_lea.vmem %s2362_s1, %s2150_s29  ;;  %s429_s16 = scalar_lea.vmem %s2361_s0, %s2150_s29  ;;  %v1828_v9 = vld [vmem:[%s2367_s6] ss:$0 sm:$0xff]  ;;  %v597_v23 = vunpack.c.l.s4 %v2043_v22  ;;  %v2044_v25 = vmov 1934713408   ;;  %v2179_v28 = vshrl.u32 %v599_v24, 7  ;;  %vm1279_vm5 = vcmask 1043456  }
   0xf   : > { %1882 = vmatpush3.bf16.msra.mxu0 %v1990_v2  ;;  %1891 = vmatprep.subr.bf16.mxu1 %v2037_v1  ;;  %v446_v5 = vld [vmem:[%s433_s13] sm:$0xff]  ;;  %v629_v26 = vunpack.c.l.s4 %v2044_v25  ;;  %s436_s13 = scalar_lea.vmem %s2363_s2, %s2378_s17  ;;  %vm1618_vm6 = vcmask 130048   ;;  %vm1620_vm7 = vcmask 195584   ;;  %s443_s17 = scalar_lea.vmem %s2372_s11, %s2150_s29 }
  0x10   : > { %1883 = vmatprep.subr.bf16.mxu0 %v2037_v1  ;;  %1885 = vmatprep.mubr.msk.bf16.mxu0 %vm2038_vm0, %v2037_v1  ;;  %v520_v6 = vpack.c.bf16 %v446_v5, %v446_v5  ;;  %v2162_v7 = vld [vmem:[%s429_s16] sm:$0xff]  ;;  %v598_v27 = vunpack.c.0.s8 %v597_v23 }
  0x11   : > { %v451_v8 = vpack.c.bf16 %v2162_v7, %v2162_v7  ;;  %v1824_v10 = vld [vmem:[%s2365_s4] ss:$0 sm:$0xff]  ;;  %v630_v31 = vunpack.c.0.s8 %v629_v26 }
  0x12   : > { %1892 = vmatpush3.bf16.msra.mxu1 %v1991_v3  ;;  %v2185_v32 = vsub.s32 %v598_v27, %v2179_v28 }
  0x13   : > { %1884 = vmatpush3.bf16.msra.mxu0 %v1992_v4  ;;  %1903 = vmatprep.subr.bf16.mxu1 %v2037_v1  ;;  %v2194_v39 = vsub.s32 %v630_v31, %v2179_v28 }
  0x14   : > { %1897 = vmatprep.subr.bf16.mxu0 %v2037_v1 }
  0x15   : > { %1894 = vmatmul.mubr.msk.bf16.vlgmr.msra.gmra.mxu1 %vm471_vm1, %v520_v6 }
  0x16   : > { %1886 = vmatmul.mubr.msk.bf16.vlgmr.msra.gmra.mxu0 %vm471_vm1, %v451_v8  ;;  %1905 = vmatprep.mubr.msk.bf16.mxu1 %vm2038_vm0, %v2037_v1 }
  0x17   : > { %1899 = vmatprep.mubr.msk.bf16.mxu0 %vm2038_vm0, %v2037_v1 }
  0xd5   : > { %v577_v11 = vpop.f32.mrf.mxu1 }
  0xd6   : > { %v578_v12 = vadd.f32 %v1828_v9, %v577_v11  ;;  %v509_v13 = vpop.f32.mrf.mxu0 }
  0xd7   : > { %v510_v14 = vadd.f32 %v1824_v10, %v509_v13  ;;  %v1895_v15 = vpop.f32.mrf.mxu1 }
  0xd8   : > { %741 = vrot.lane.b32.xlu1 %v578_v12, %s2039_s25  ;;  %735 = vrot.lane.b32.xlu0 %v578_v12, %s2040_s26  ;;  %v1887_v16 = vpop.f32.mrf.mxu0 }
  0xd9   : > { %v515_v17 = vmul.f32 0.35355338, %v510_v14  ;;  %v580_v18 = vpop.f32.mrf.mxu1 }
  0xda   : > { %v512_v19 = vpop.f32.mrf.mxu0 }
  0xdb   : > { %v1896_v20 = vpop.f32.mrf.mxu1 }
  0xdc   : > { %738 = vrot.lane.b32.xlu0 %v578_v12, %s2041_s27  ;;  %585 = vrot.lane.b32.xlu1 %v515_v17, %s2040_s26  ;;  %v1888_v21 = vpop.f32.mrf.mxu0 }
  0xe0   : > { %588 = vrot.lane.b32.xlu0 %v515_v17, %s2041_s27  ;;  %591 = vrot.lane.b32.xlu1 %v515_v17, %s2039_s25 }
  0xe4   : > { %884 = vrot.lane.b32.xlu0 %v578_v12, %s2042_s28 }
 0x14a   : > { %v2181_v29 = vpop.permute.xlu1 %741  ;;  %v736_v30 = vpop.permute.xlu0 %735 }
 0x14b   : > { %886 = vrot.lane.b32.xlu1 %v736_v30, %s2042_s28  ;;  %v760_v33 = vcombine.low %v736_v30, %v2181_v29  ;;  %v761_v34 = vcombine.high %v736_v30, %v2181_v29 }
 0x14d   : > { %v768_v40 = vrot.slane %v760_v33, %v2185_v32  ;;  %v775_v41 = vrot.slane %v761_v34, %v2185_v32 }
 0x14e   : > { %v2189_v35 = vpop.permute.xlu0 %738  ;;  %v586_v36 = vpop.permute.xlu1 %585 }
 0x14f   : > { %v744_v37 = vcombine.low %v578_v12, %v2189_v35  ;;  %v745_v38 = vcombine.high %v578_v12, %v2189_v35 }
 0x151   : > { %v752_v42 = vrot.slane %v744_v37, %v2185_v32  ;;  %v759_v43 = vrot.slane %v745_v38, %v2185_v32 }
 0x152   : > { %v589_v44 = vpop.permute.xlu0 %588  ;;  %v592_v45 = vpop.permute.xlu1 %591 }
 0x153   : > { %v776_v46 = vcombine.low %v752_v42, %v768_v40  ;;  %v777_v47 = vcombine.high %v752_v42, %v768_v40  ;;  %v792_v48 = vcombine.low %v759_v43, %v775_v41  ;;  %v793_v49 = vcombine.high %v759_v43, %v775_v41 }
 0x154   : > { %v594_v50 = vcombine.low %v515_v17, %v589_v44  ;;  %v595_v51 = vcombine.high %v515_v17, %v589_v44  ;;  %v610_v52 = vcombine.low %v586_v36, %v592_v45  ;;  %v611_v53 = vcombine.high %v586_v36, %v592_v45 }
 0x155   : > { %v784_v54 = vrot.slane %v776_v46, %v2194_v39  ;;  %v791_v55 = vrot.slane %v777_v47, %v2194_v39  ;;  %v800_v56 = vrot.slane %v792_v48, %v2194_v39  ;;  %v807_v57 = vrot.slane %v793_v49, %v2194_v39 }
 0x156   : > { %v602_v58 = vrot.slane %v594_v50, %v2185_v32  ;;  %v609_v59 = vrot.slane %v595_v51, %v2185_v32  ;;  %v618_v60 = vrot.slane %v610_v52, %v2185_v32  ;;  %v625_v61 = vrot.slane %v611_v53, %v2185_v32 }
 0x157   : > { %v812_v62 = vcombine.low %v784_v54, %v791_v55  ;;  %v1834_v63 = vcombine.high %v784_v54, %v791_v55  ;;  %v828_v0 = vcombine.low %v800_v56, %v807_v57  ;;  %v1835_v2 = vcombine.high %v800_v56, %v807_v57 }
 0x158   : > { %v626_v3 = vcombine.low %v602_v58, %v618_v60  ;;  %v627_v4 = vcombine.high %v602_v58, %v618_v60  ;;  %v642_v5 = vcombine.low %v609_v59, %v625_v61  ;;  %v643_v6 = vcombine.high %v609_v59, %v625_v61 }
 0x159   : > { %v819_v8 = vrot.slane %v812_v62, %v2185_v32  ;;  %v827_v9 = vrot.slane %v1834_v63, %v2185_v32  ;;  %v835_v10 = vrot.slane %v828_v0, %v2185_v32  ;;  %v843_v11 = vrot.slane %v1835_v2, %v2185_v32  ;;  %v583_v2 = vld [vmem:[%s436_s13] sm:$0x1] }
 0x15a   : > { %v634_v12 = vrot.slane %v626_v3, %v2194_v39  ;;  %v641_v13 = vrot.slane %v627_v4, %v2194_v39  ;;  %v650_v14 = vrot.slane %v642_v5, %v2194_v39  ;;  %v657_v15 = vrot.slane %v643_v6, %v2194_v39 }
 0x15b   : > { %v844_v16 = vcombine.low %v819_v8, %v827_v9  ;;  %v860_v17 = vcombine.low %v835_v10, %v843_v11  ;;  %v845_v18 = vcombine.high %v819_v8, %v827_v9  ;;  %v861_v19 = vcombine.high %v835_v10, %v843_v11 }
 0x15c   : > { %v662_v20 = vcombine.low %v634_v12, %v641_v13  ;;  %v1832_v21 = vcombine.high %v634_v12, %v641_v13  ;;  %v678_v22 = vcombine.low %v650_v14, %v657_v15  ;;  %v1833_v23 = vcombine.high %v650_v14, %v657_v15 }
 0x15d   : > { %v852_v24 = vrot.slane %v844_v16, %v2194_v39  ;;  %v868_v25 = vrot.slane %v860_v17, %v2194_v39  ;;  %v859_v36 = vrot.slane %v845_v18, %v2194_v39  ;;  %v875_v37 = vrot.slane %v861_v19, %v2194_v39 }
 0x15e   : > { %v669_v26 = vrot.slane %v662_v20, %v2185_v32  ;;  %v677_v27 = vrot.slane %v1832_v21, %v2185_v32  ;;  %v685_v30 = vrot.slane %v678_v22, %v2185_v32  ;;  %v693_v31 = vrot.slane %v1833_v23, %v2185_v32 }
 0x15f   : > { %v876_v33 = vcombine.low %v852_v24, %v868_v25  ;;  %v877_v34 = vcombine.high %v852_v24, %v868_v25  ;;  %v878_v47 = vcombine.low %v859_v36, %v875_v37  ;;  %v879_v48 = vcombine.high %v859_v36, %v875_v37 }
 0x160   : > { %v694_v38 = vcombine.low %v669_v26, %v677_v27  ;;  %v710_v40 = vcombine.low %v685_v30, %v693_v31  ;;  %v695_v49 = vcombine.high %v669_v26, %v677_v27  ;;  %v711_v50 = vcombine.high %v685_v30, %v693_v31 }
 0x161   : > { %v880_v41 = vpack.c.bf16 %v876_v33, %v876_v33  ;;  %v881_v42 = vpack.c.bf16 %v877_v34, %v877_v34  ;;  %v882_v53 = vpack.c.bf16 %v878_v47, %v878_v47  ;;  %v883_v54 = vpack.c.bf16 %v879_v48, %v879_v48  ;;  %v885_v34 = vpop.permute.xlu0 %884 }
 0x162   : > { %v702_v43 = vrot.slane %v694_v38, %v2194_v39  ;;  %v718_v44 = vrot.slane %v710_v40, %v2194_v39  ;;  %v709_v57 = vrot.slane %v695_v49, %v2194_v39  ;;  %v725_v58 = vrot.slane %v711_v50, %v2194_v39 }
 0x163   : > { %v1041_v45 = vsel %vm1036_vm2, %v880_v41, 0  ;;  %v1087_v46 = vsel %vm1036_vm2, %v881_v42, 0  ;;  %v1133_v59 = vsel %vm1036_vm2, %v882_v53, 0  ;;  %v1179_v60 = vsel %vm1036_vm2, %v883_v54, 0 }
 0x164   : > { %1898 = vmatpush3.bf16.xpose.msra.mxu0 %v1041_v45  ;;  %1904 = vmatpush3.bf16.xpose.msra.mxu1 %v1087_v46  ;;  %v726_v51 = vcombine.low %v702_v43, %v718_v44  ;;  %v727_v52 = vcombine.high %v702_v43, %v718_v44  ;;  %v728_v61 = vcombine.low %v709_v57, %v725_v58  ;;  %vm1221_vm3 = vcmp.gt.f32.partialorder %v583_v2, 0.0 }
 0x165   : > { %1909 = vmatprep.subr.bf16.mxu0 %v2037_v1  ;;  %1915 = vmatprep.subr.bf16.mxu1 %v2037_v1  ;;  %v729_v62 = vcombine.high %v709_v57, %v725_v58  ;;  %v1225_v3 = vsub.s32 0, %v2179_v28  ;;  %v2045_v4 = vmov 0  }
 0x166   : > { %v730_v55 = vpack.c.bf16 %v726_v51, %v726_v51  ;;  %v731_v56 = vpack.c.bf16 %v727_v52, %v727_v52  ;;  %v732_v63 = vpack.c.bf16 %v728_v61, %v728_v61  ;;  %v1222_v5 = vsel %vm1221_vm3, 1, %v2045_v4 }
 0x167   : > { %v733_v0 = vpack.c.bf16 %v729_v62, %v729_v62  ;;  %v1226_v6 = vrot.slane %v1222_v5, %v1225_v3 }
 0x169   : > { %vm1227_vm4 = vcmp.eq.s32.totalorder %v1226_v6, 1 }
 0x16b   : > { %1900 = vmatmul.mubr.msk.bf16.vlgmr.msra.gmra.mxu0 %vm1036_vm2, %v730_v55  ;;  %1906 = vmatmul.mubr.msk.bf16.vlgmr.msra.gmra.mxu1 %vm1036_vm2, %v731_v56 }
 0x16c   : > { %1910 = vmatpush3.bf16.xpose.msra.mxu0 %v1133_v59  ;;  %1916 = vmatpush3.bf16.xpose.msra.mxu1 %v1179_v60 }
 0x16d   : > { %1911 = vmatprep.mubr.msk.bf16.mxu0 %vm2038_vm0, %v2037_v1  ;;  %1917 = vmatprep.mubr.msk.bf16.mxu1 %vm2038_vm0, %v2037_v1 }
 0x16e   : > { %1921 = vmatprep.subr.bf16.mxu0 %v2037_v1  ;;  %1927 = vmatprep.subr.bf16.mxu1 %v2037_v1 }
 0x173   : > { %1912 = vmatmul.mubr.msk.bf16.vlgmr.msra.gmra.mxu0 %vm1036_vm2, %v732_v63  ;;  %1918 = vmatmul.mubr.msk.bf16.vlgmr.msra.gmra.mxu1 %vm1036_vm2, %v733_v0 }
 0x174   : > { %1923 = vmatprep.mubr.msk.bf16.mxu0 %vm2038_vm0, %v2037_v1  ;;  %1929 = vmatprep.mubr.msk.bf16.mxu1 %vm2038_vm0, %v2037_v1 }
 0x1bd   : > { %v887_v36 = vpop.permute.xlu1 %886 }
 0x22b   : > { %v1077_v8 = vpop.f32.mrf.mxu0  ;;  %v1123_v9 = vpop.f32.mrf.mxu1 }
 0x22c   : > { %v1228_v10 = vsel %vm1227_vm4, %v1077_v8, -1e+09  ;;  %v1229_v11 = vsel %vm1227_vm4, %v1123_v9, -1e+09 }
 0x22d   : > { %v1901_v12 = vpop.f32.mrf.mxu0  ;;  %v1907_v13 = vpop.f32.mrf.mxu1  ;;  %v1235_v14 = vsel %vm1036_vm2, %v1229_v11, -inf  ;;  %v1232_v15 = vsel %vm1036_vm2, %v1228_v10, -inf }
 0x22e   : > { %1236 = vmax.xlane.f32.xlu1 %v1235_v14  ;;  %1233 = vmax.xlane.f32.xlu0 %v1232_v15 }
 0x22f   : > { %v1080_v16 = vpop.f32.mrf.mxu0  ;;  %v1126_v28 = vpop.f32.mrf.mxu1 }
 0x231   : > { %v1902_v17 = vpop.f32.mrf.mxu0  ;;  %v1908_v18 = vpop.f32.mrf.mxu1 }
 0x233   : > { %v1169_v19 = vpop.f32.mrf.mxu0  ;;  %v1215_v20 = vpop.f32.mrf.mxu1 }
 0x234   : > { %v2262_v27 = vsel %vm1227_vm4, %v1169_v19, -1e+09  ;;  %v2265_v30 = vsel %vm1227_vm4, %v1215_v20, -1e+09 }
 0x235   : > { %v1913_v21 = vpop.f32.mrf.mxu0  ;;  %v1919_v22 = vpop.f32.mrf.mxu1  ;;  %v1241_v31 = vsel %vm1036_vm2, %v2265_v30, -inf  ;;  %v1238_v33 = vsel %vm1036_vm2, %v2262_v27, -inf }
 0x237   : > { %v1172_v23 = vpop.f32.mrf.mxu0  ;;  %v1218_v24 = vpop.f32.mrf.mxu1 }
 0x239   : > { %v1914_v25 = vpop.f32.mrf.mxu0  ;;  %v1920_v26 = vpop.f32.mrf.mxu1 }
 0x23f   : > { %890 = vrot.lane.b32.xlu1 %v2181_v29, %s2042_s28 }
 0x244   : > { %888 = vrot.lane.b32.xlu0 %v2189_v35, %s2042_s28 }
 0x263   : > { %1242 = vmax.xlane.f32.xlu1 %v1241_v31  ;;  %1239 = vmax.xlane.f32.xlu0 %v1238_v33 }
 0x2b7   : > { %v1237_v29 = vpop.xlane.xlu1 %1236  ;;  %v1234_v37 = vpop.xlane.xlu0 %1233 }
 0x2b8   : > { %v1245_v38 = vsub.f32 %v1229_v11, %v1237_v29  ;;  %v1244_v35 = vsub.f32 %v1228_v10, %v1234_v37 }
 0x2ba   : > { %v1248_v40 = vmul.f32 1.442695, %v1244_v35  ;;  %v1250_v41 = vmul.f32 1.442695, %v1245_v38 }
 0x2bb   : > { %v891_v42 = vpop.permute.xlu1 %890  ;;  %v889_v43 = vpop.permute.xlu0 %888 }
 0x2bc   : > { %v912_v44 = vcombine.low %v887_v36, %v891_v42  ;;  %v913_v45 = vcombine.high %v887_v36, %v891_v42  ;;  %v896_v46 = vcombine.low %v885_v34, %v889_v43  ;;  %1995 = vpow2.f32 %v1248_v40 }
 0x2bd   : > { %v897_v47 = vcombine.high %v885_v34, %v889_v43  ;;  %1997 = vpow2.f32 %v1250_v41 }
 0x2be   : > { %v920_v48 = vrot.slane %v912_v44, %v2185_v32  ;;  %v927_v49 = vrot.slane %v913_v45, %v2185_v32  ;;  %v904_v50 = vrot.slane %v896_v46, %v2185_v32 }
 0x2bf   : > { %v911_v51 = vrot.slane %v897_v47, %v2185_v32 }
 0x2c0   : > { %v928_v52 = vcombine.low %v904_v50, %v920_v48  ;;  %v929_v53 = vcombine.high %v904_v50, %v920_v48 }
 0x2c1   : > { %v944_v54 = vcombine.low %v911_v51, %v927_v49  ;;  %v945_v55 = vcombine.high %v911_v51, %v927_v49 }
 0x2c2   : > { %v936_v56 = vrot.slane %v928_v52, %v2194_v39  ;;  %v943_v57 = vrot.slane %v929_v53, %v2194_v39 }
 0x2c3   : > { %v952_v58 = vrot.slane %v944_v54, %v2194_v39  ;;  %v959_v59 = vrot.slane %v945_v55, %v2194_v39 }
 0x2c4   : > { %v964_v60 = vcombine.low %v936_v56, %v943_v57  ;;  %v1836_v61 = vcombine.high %v936_v56, %v943_v57 }
 0x2c5   : > { %v980_v62 = vcombine.low %v952_v58, %v959_v59  ;;  %v1837_v63 = vcombine.high %v952_v58, %v959_v59 }
 0x2c6   : > { %v971_v0 = vrot.slane %v964_v60, %v2185_v32  ;;  %v979_v2 = vrot.slane %v1836_v61, %v2185_v32 }
 0x2c7   : > { %v987_v3 = vrot.slane %v980_v62, %v2185_v32  ;;  %v995_v4 = vrot.slane %v1837_v63, %v2185_v32 }
 0x2c8   : > { %v996_v5 = vcombine.low %v971_v0, %v979_v2  ;;  %v997_v6 = vcombine.high %v971_v0, %v979_v2 }
 0x2c9   : > { %v1012_v8 = vcombine.low %v987_v3, %v995_v4  ;;  %v1013_v9 = vcombine.high %v987_v3, %v995_v4  ;;  %v1996_v10 = vpop.eup %1995 }
 0x2ca   : > { %v1004_v11 = vrot.slane %v996_v5, %v2194_v39  ;;  %v1011_v12 = vrot.slane %v997_v6, %v2194_v39  ;;  %v1256_v13 = vsel %vm1036_vm2, %v1996_v10, 0.0  ;;  %v1998_v16 = vpop.eup %1997  ;;  %v1272_v31 = vpack.c.bf16 %v1996_v10, %v1996_v10 }
 0x2cb   : > { %v1020_v14 = vrot.slane %v1012_v8, %v2194_v39  ;;  %v1027_v15 = vrot.slane %v1013_v9, %v2194_v39  ;;  %1257 = vadd.xlane.f32.xlu0 %v1256_v13  ;;  %v1259_v20 = vsel %vm1036_vm2, %v1998_v16, 0.0  ;;  %v1273_v33 = vpack.c.bf16 %v1998_v16, %v1998_v16 }
 0x2cd   : > { %v1028_v28 = vcombine.low %v1004_v11, %v1020_v14  ;;  %v1029_v17 = vcombine.high %v1004_v11, %v1020_v14  ;;  %v1030_v18 = vcombine.low %v1011_v12, %v1027_v15  ;;  %v1031_v19 = vcombine.high %v1011_v12, %v1027_v15 }
 0x2cf   : > { %v1032_v21 = vpack.c.bf16 %v1028_v28, %v1028_v28  ;;  %v1033_v22 = vpack.c.bf16 %v1029_v17, %v1029_v17  ;;  %1260 = vadd.xlane.f32.xlu0 %v1259_v20  ;;  %v1034_v25 = vpack.c.bf16 %v1030_v18, %v1030_v18  ;;  %v1035_v26 = vpack.c.bf16 %v1031_v19, %v1031_v19 }
 0x2d1   : > { %v1281_v23 = vsel %vm1279_vm5, %v1032_v21, 0  ;;  %v1327_v24 = vsel %vm1279_vm5, %v1033_v22, 0  ;;  %v1373_v34 = vsel %vm1279_vm5, %v1034_v25, 0  ;;  %v1419_v36 = vsel %vm1279_vm5, %v1035_v26, 0 }
 0x2d2   : > { %1922 = vmatpush3.bf16.msra.mxu0 %v1281_v23  ;;  %1928 = vmatpush3.bf16.msra.mxu1 %v1327_v24 }
 0x2d3   : > { %1933 = vmatprep.subr.bf16.mxu0 %v2037_v1  ;;  %1939 = vmatprep.subr.bf16.mxu1 %v2037_v1 }
 0x2d5   : > { %1924 = vmatmul.mubr.msk.bf16.vlgmr.msra.gmra.mxu0 %vm1036_vm2, %v1272_v31  ;;  %1930 = vmatmul.mubr.msk.bf16.vlgmr.msra.gmra.mxu1 %vm1036_vm2, %v1273_v33  ;;  %v1993_v31 = vld [vmem:[%s2368_s7 + $0x8] sm:$0xff]  }
 0x2d6   : > { %1934 = vmatpush3.bf16.msra.mxu0 %v1373_v34  ;;  %1940 = vmatpush3.bf16.msra.mxu1 %v1419_v36 }
 0x2d7   : > { %1935 = vmatprep.mubr.msk.bf16.mxu0 %vm2038_vm0, %v2037_v1  ;;  %1941 = vmatprep.mubr.msk.bf16.mxu1 %vm2038_vm0, %v2037_v1 }
 0x2d8   : > { %1945 = vmatprep.subr.bf16.mxu0 %v2037_v1 }
 0x2ec   : > { %v1243_v29 = vpop.xlane.xlu1 %1242  ;;  %v1240_v37 = vpop.xlane.xlu0 %1239 }
 0x2ed   : > { %v1247_v38 = vsub.f32 %v2265_v30, %v1243_v29  ;;  %v1246_v35 = vsub.f32 %v2262_v27, %v1240_v37 }
 0x2ef   : > { %v1254_v40 = vmul.f32 1.442695, %v1247_v38  ;;  %v1252_v41 = vmul.f32 1.442695, %v1246_v35 }
 0x2f1   : > { %1999 = vpow2.f32 %v1254_v40 }
 0x2f2   : > { %2001 = vpow2.f32 %v1252_v41  ;;  %v1994_v41 = vld [vmem:[%s2368_s7] sm:$0xff]  }
 0x2fe   : > { %v2000_v42 = vpop.eup %1999 }
 0x2ff   : > { %v2002_v43 = vpop.eup %2001  ;;  %v1265_v44 = vsel %vm1036_vm2, %v2000_v42, 0.0  ;;  %v1275_v45 = vpack.c.bf16 %v2000_v42, %v2000_v42 }
 0x300   : > { %1266 = vadd.xlane.f32.xlu0 %v1265_v44  ;;  %v1262_v46 = vsel %vm1036_vm2, %v2002_v43, 0.0  ;;  %v1274_v47 = vpack.c.bf16 %v2002_v43, %v2002_v43 }
 0x301   : > { %1263 = vadd.xlane.f32.xlu1 %v1262_v46  ;;  %1942 = vmatmul.mubr.msk.bf16.vlgmr.msra.gmra.mxu1 %vm1036_vm2, %v1275_v45 }
 0x302   : > { %1936 = vmatmul.mubr.msk.bf16.vlgmr.msra.gmra.mxu0 %vm1036_vm2, %v1274_v47 }
 0x303   : > { %1949 = vmatprep.mubr.msk.bf16.mxu0 %vm2038_vm0, %v2037_v1  ;;  %1946 = vmatpush3.bf16.msra.mxu0 %v1993_v31 }
 0x304   : > { %1947 = vmatprep.subr.bf16.mxu0 %v2037_v1 }
 0x307   : > { %1948 = vmatpush3.bf16.msra.mxu0 %v1994_v41 }
 0x354   : > { %v1258_v54 = vpop.xlane.xlu0 %1257 }
 0x355   : > { %v1268_v57 = vmax.f32 %v1258_v54, 1e-20 }
 0x357   : > { %2003 = vrcp.f32 %v1268_v57 }
 0x358   : > { %v1261_v55 = vpop.xlane.xlu0 %1260 }
 0x359   : > { %v1269_v59 = vmax.f32 %v1261_v55, 1e-20 }
 0x35b   : > { %2005 = vrcp.f32 %v1269_v59 }
 0x364   : > { %v2004_v62 = vpop.eup %2003 }
 0x368   : > { %v2006_v63 = vpop.eup %2005 }
 0x389   : > { %v1267_v56 = vpop.xlane.xlu0 %1266 }
 0x38a   : > { %v1264_v58 = vpop.xlane.xlu1 %1263  ;;  %v1271_v60 = vmax.f32 %v1267_v56, 1e-20 }
 0x38b   : > { %v1270_v61 = vmax.f32 %v1264_v58, 1e-20 }
 0x38c   : > { %2007 = vrcp.f32 %v1271_v60  ;;  %v1848_v60 = vld [vmem:[%s2369_s8] ss:$0 sm:$0xff] }
 0x38d   : > { %2009 = vrcp.f32 %v1270_v61 }
 0x395   : > { %v1317_v27 = vpop.f32.mrf.mxu0  ;;  %v1363_v30 = vpop.f32.mrf.mxu1 }
 0x396   : > { %v1466_v4 = vmul.f32 %v2006_v63, %v1363_v30  ;;  %v1465_v8 = vmul.f32 %v2004_v62, %v1317_v27 }
 0x397   : > { %v1925_v48 = vpop.f32.mrf.mxu0  ;;  %v1931_v49 = vpop.f32.mrf.mxu1 }
 0x399   : > { %v1320_v50 = vpop.f32.mrf.mxu0  ;;  %v1366_v51 = vpop.f32.mrf.mxu1 }
 0x39a   : > { %v2008_v0 = vpop.eup %2007 }
 0x39b   : > { %v1926_v52 = vpop.f32.mrf.mxu0  ;;  %v1932_v53 = vpop.f32.mrf.mxu1 }
 0x39c   : > { %v2010_v3 = vpop.eup %2009 }
 0x3c1   : > { %v1455_v2 = vpop.f32.mrf.mxu1 }
 0x3c2   : > { %v1409_v5 = vpop.f32.mrf.mxu0  ;;  %v1468_v6 = vmul.f32 %v2008_v0, %v1455_v2 }
 0x3c3   : > { %v1467_v9 = vmul.f32 %v2010_v3, %v1409_v5  ;;  %v1943_v10 = vpop.f32.mrf.mxu1 }
 0x3c4   : > { %v1485_v11 = vcombine.low %v1466_v4, %v1468_v6  ;;  %v1486_v12 = vcombine.high %v1466_v4, %v1468_v6  ;;  %v1937_v13 = vpop.f32.mrf.mxu0 }
 0x3c5   : > { %v1469_v14 = vcombine.low %v1465_v8, %v1467_v9  ;;  %v1470_v15 = vcombine.high %v1465_v8, %v1467_v9  ;;  %v1458_v16 = vpop.f32.mrf.mxu1 }
 0x3c6   : > { %v1493_v28 = vrot.slane %v1485_v11, %v2185_v32  ;;  %v1500_v17 = vrot.slane %v1486_v12, %v2185_v32  ;;  %v1412_v18 = vpop.f32.mrf.mxu0  ;;  %v1853_v16 = vld [vmem:[%s2371_s10] ss:$0 sm:$0xff] }
 0x3c7   : > { %v1477_v19 = vrot.slane %v1469_v14, %v2185_v32  ;;  %v1484_v20 = vrot.slane %v1470_v15, %v2185_v32  ;;  %v1944_v21 = vpop.f32.mrf.mxu1 }
 0x3c8   : > { %v1938_v22 = vpop.f32.mrf.mxu0 }
 0x3c9   : > { %v1501_v23 = vcombine.low %v1477_v19, %v1493_v28  ;;  %v1502_v24 = vcombine.high %v1477_v19, %v1493_v28  ;;  %v1517_v25 = vcombine.low %v1484_v20, %v1500_v17  ;;  %v1518_v26 = vcombine.high %v1484_v20, %v1500_v17 }
 0x3cb   : > { %v1509_v33 = vrot.slane %v1501_v23, %v2194_v39  ;;  %v1516_v34 = vrot.slane %v1502_v24, %v2194_v39  ;;  %v1525_v36 = vrot.slane %v1517_v25, %v2194_v39  ;;  %v1532_v29 = vrot.slane %v1518_v26, %v2194_v39 }
 0x3cd   : > { %v1537_v37 = vcombine.low %v1509_v33, %v1516_v34  ;;  %v1846_v38 = vcombine.high %v1509_v33, %v1516_v34  ;;  %v1553_v35 = vcombine.low %v1525_v36, %v1532_v29  ;;  %v1847_v40 = vcombine.high %v1525_v36, %v1532_v29 }
 0x3cf   : > { %v1544_v42 = vrot.slane %v1537_v37, %v2185_v32  ;;  %v1552_v43 = vrot.slane %v1846_v38, %v2185_v32  ;;  %v1560_v44 = vrot.slane %v1553_v35, %v2185_v32  ;;  %v1568_v45 = vrot.slane %v1847_v40, %v2185_v32 }
 0x3d1   : > { %v1570_v46 = vcombine.high %v1544_v42, %v1552_v43  ;;  %v1586_v47 = vcombine.high %v1560_v44, %v1568_v45  ;;  %v1569_v1 = vcombine.low %v1544_v42, %v1552_v43  ;;  %v1585_v27 = vcombine.low %v1560_v44, %v1568_v45 }
 0x3d3   : > { %v1584_v30 = vrot.slane %v1570_v46, %v2194_v39  ;;  %v1600_v48 = vrot.slane %v1586_v47, %v2194_v39  ;;  %v1577_v49 = vrot.slane %v1569_v1, %v2194_v39  ;;  %v1593_v50 = vrot.slane %v1585_v27, %v2194_v39 }
 0x3d5   : > { %v1603_v51 = vcombine.low %v1584_v30, %v1600_v48  ;;  %v1602_v52 = vcombine.high %v1577_v49, %v1593_v50  ;;  %v1601_v53 = vcombine.low %v1577_v49, %v1593_v50  ;;  %v1604_v32 = vcombine.high %v1584_v30, %v1600_v48 }
 0x3d7   : > { %1610 = vrot.lane.b32.xlu0 %v1603_v51, %s2046_s21  ;;  %1606 = vrot.lane.b32.xlu1 %v1602_v52, %s2047_s22 }
 0x3db   : > { %1614 = vrot.lane.b32.xlu1 %v1604_v32, %s2048_s23 }
 0x449   : > { %v1607_v54 = vpop.permute.xlu1 %1606  ;;  %v1611_v55 = vpop.permute.xlu0 %1610 }
 0x44a   : > { %v1617_v56 = vsel %vm1036_vm2, %v1601_v53, %v1607_v54 }
 0x44b   : > { %v1619_v58 = vsel %vm1618_vm6, %v1617_v56, %v1611_v55 }
 0x44d   : > { %v1615_v57 = vpop.permute.xlu1 %1614 }
 0x44e   : > { %v1621_v59 = vsel %vm1620_vm7, %v1619_v58, %v1615_v57 }
 0x44f   : > { %v1626_v39 = vpack.c.bf16 %v1621_v59, %v1621_v59 }
 0x451   : > { %1950 = vmatmul.mubr.msk.bf16.vlgmr.msra.gmra.mxu0 %vm471_vm1, %v1626_v39 }
 0x511   : > { %v1683_v61 = vpop.f32.mrf.mxu0 }
 0x512   : > { %v1684_v62 = vadd.f32 %v1848_v60, %v1683_v61 }
 0x513   : > { %v1951_v63 = vpop.f32.mrf.mxu0 }
 0x514   : > { %v1691_v0 = vadd.f32 %v1684_v62, %v2162_v7  ;;  %v1852_v7 = vld [vmem:[%s2370_s9] ss:$0 sm:$0xff] }
 0x515   : > { %v1686_v2 = vpop.f32.mrf.mxu0 }
 0x516   : > { %v1692_v3 = vsel %vm471_vm1, %v1691_v0, 0.0 }
 0x517   : > { %1693 = vadd.xlane.f32.xlu1 %v1692_v3  ;;  %v1952_v4 = vpop.f32.mrf.mxu0 }
 0x5a0   : > { %v1694_v5 = vpop.xlane.xlu1 %1693 }
 0x5a1   : > { %v1696_v6 = vmul.f32 0.03125, %v1694_v5 }
 0x5a3   : > { %v1697_v8 = vsub.f32 %v1691_v0, %v1696_v6 }
 0x5a5   : > { %v1698_v9 = vmul.f32 %v1697_v8, %v1697_v8 }
 0x5a7   : > { %v1699_v10 = vsel %vm471_vm1, %v1698_v9, 0.0 }
 0x5a8   : > { %1700 = vadd.xlane.f32.xlu0 %v1699_v10 }
 0x631   : > { %v1701_v11 = vpop.xlane.xlu0 %1700 }
 0x632   : > { %v1702_v12 = vmul.f32 0.03125, %v1701_v11 }
 0x634   : > { %v1703_v13 = vadd.f32 1e-05, %v1702_v12 }
 0x636   : > { %2011 = vrsqrt.f32 %v1703_v13 }
 0x643   : > { %v2012_v14 = vpop.eup %2011 }
 0x644   : > { %v1705_v15 = vmul.f32 %v2012_v14, %v1697_v8 }
 0x646   : > { %v1712_v28 = vmul.f32 %v1852_v7, %v1705_v15 }
 0x648   : > { %v1719_v17 = vadd.f32 %v1853_v16, %v1712_v28 }
 0x64a   : > { %1720 = vst.msk [vmem:[%s443_s17] sm:$0xff] %vm471_vm1, %v1719_v17 }
 0x64b PF: > { %s21_s19 = sadd.s32 1, %s2035_s19   ;;  %s2373_s17 = smov %s2031_s18 }
 0x64c   : > { %p18_p5 = scmp.ge.s32.totalorder %s21_s19, 4   ;;  %s2374_s18 = smov %s2376_s20 }
 0x64e   :  { %20 = sbr.rel (!%p18_p5) target bundleno = 2 (0x2), region = 100 }

// kernel: decoder_forward.13
= control target key start
LH: loop header
LB: loop body
LE: loop exit
PB: predicated region body
PF: predicated region fallthrough
CT: control target
= control target key end

     0   :  { %v111_v0 = vmov 0.0   ;;  %vm112_vm0 = vmmov 0   ;;  %vm41_vm1 = vcmask 261120   ;;  %s154_s1 = inlined_call_operand.vmem [shape: bf16[32,128], index: 1, kind: input, shape index: {}]   ;;  %s155_s0 = inlined_call_operand.vmem [shape: f32[16,32], index: 0, kind: input, shape index: {}]   ;;  %s156_s2 = inlined_call_operand.vmem [shape: f32[1,128], index: 2, kind: input, shape index: {}]   ;;  %s157_s3 = inlined_call_operand.vmem [shape: f32[16,128], index: 3, kind: output, shape index: {}]  }
   0x1   :  { %99 = vmatprep.subr.bf16.mxu0 %v111_v0  ;;  %v109_v1 = vld [vmem:[%s154_s1 + $0x8] sm:$0xff]   ;;  %103 = vmatprep.mubr.msk.bf16.mxu0 %vm112_vm0, %v111_v0  ;;  %v110_v2 = vld [vmem:[%s154_s1] sm:$0xff]  }
   0x2   :  { %100 = vmatpush3.bf16.msra.mxu0 %v109_v1  ;;  %v15_v3 = vld [vmem:[%s155_s0] sm:$0xff]  ;;  %v16_v4 = vld [vmem:[%s155_s0 + $0x8] sm:$0xff] }
   0x3   :  { %101 = vmatprep.subr.bf16.mxu0 %v111_v0  ;;  %v21_v5 = vpack.c.bf16 %v16_v4, %v15_v3  ;;  %v92_v6 = vld [vmem:[%s156_s2] ss:$0 sm:$0xff] }
   0x6   :  { %102 = vmatpush3.bf16.msra.mxu0 %v110_v2 }
   0x9   :  { %104 = vmatmul.mubr.msk.bf16.vlgmr.msra.gmra.mxu0 %vm41_vm1, %v21_v5 }
  0xc9   :  { %v79_v7 = vpop.f32.mrf.mxu0 }
  0xca   :  { %v80_v8 = vadd.f32 %v92_v6, %v79_v7 }
  0xcb   :  { %v105_v9 = vpop.f32.mrf.mxu0 }
  0xcc   :  { %86 = vst [vmem:[%s157_s3] sm:$0xff] %v80_v8 }
  0xcd   :  { %v82_v10 = vpop.f32.mrf.mxu0 }
  0xce   :  { %v83_v11 = vadd.f32 %v92_v6, %v82_v10 }
  0xcf   :  { %v106_v12 = vpop.f32.mrf.mxu0 }
  0xd0   :  { %87 = vst [vmem:[%s157_s3 + $0x8] sm:$0xff] %v83_v11 }

// kernel: decoder_forward.10
= control target key start
LH: loop header
LB: loop body
LE: loop exit
PB: predicated region body
PF: predicated region fallthrough
CT: control target
= control target key end

     0   :  { %s2114_s17 = smov 0   ;;  %s2116_s18 = smov 0   ;;  %s2357_s0 = inlined_call_operand.vmem [shape: f32[2,8,32], index: 0, kind: input, shape index: {}, may-alias: {0,1}]   ;;  %s2358_s1 = inlined_call_operand.vmem [shape: f32[2,8,32], index: 1, kind: input, shape index: {}, may-alias: {0,1}]   ;;  %s2359_s2 = inlined_call_operand.vmem [shape: f32[1,8,8], index: 2, kind: input, shape index: {}]   ;;  %s2360_s3 = inlined_call_operand.vmem [shape: bf16[32,32], index: 3, kind: input, shape index: {}]   ;;  %s2361_s4 = inlined_call_operand.vmem [shape: f32[1,32], index: 4, kind: input, shape index: {}]   ;;  %s2362_s5 = inlined_call_operand.vmem [shape: bf16[32,64], index: 5, kind: input, shape index: {}]   ;;  %s2363_s6 = inlined_call_operand.vmem [shape: f32[1,64], index: 6, kind: input, shape index: {}]   ;;  %s2364_s7 = inlined_call_operand.vmem [shape: bf16[32,32], index: 7, kind: input, shape index: {}]   ;;  %s2365_s8 = inlined_call_operand.vmem [shape: f32[1,32], index: 8, kind: input, shape index: {}]   ;;  %s2366_s9 = inlined_call_operand.vmem [shape: f32[1,32], index: 9, kind: input, shape index: {}]   ;;  %s2367_s10 = inlined_call_operand.vmem [shape: f32[1,32], index: 10, kind: input, shape index: {}]   ;;  %s2368_s11 = inlined_call_operand.vmem [shape: f32[2,8,32], index: 11, kind: output, shape index: {}]  }
   0x1   :  { %s2118_s19 = smov 0  }
   0x2 LB: > { %s33_s20 = sadd.s32 1, %s2037_s18  ;;  %p1827_p0 = scmp.ge.s32.totalorder %s2041_s19, 1  ;;  %s2041_s19 = sphi %s2118_s19, %s21_s19   ;;  %s2037_s18 = sphi %s2116_s18, %s2370_s18   ;;  %s2033_s17 = sphi %s2114_s17, %s2369_s17  }
   0x3   : > { %p35_p1 = scmp.ge.s32.totalorder %s33_s20, 2  ;;  %p373_p2 = scmp.lt.s32.totalorder %s2041_s19, 3 }
   0x5   : > { %s2372_s20 = smov (%p35_p1, %s33_s20), 0  ;;  %p374_p3 = pnand %p1827_p0, %p373_p2 }
   0x6   : > { %p425_p4 = scmp.lt.s32.totalorder (!%p374_p3), %s2033_s17, 1  ;;  %s2045_s24 = smov (!%p374_p3), 104  }
   0x7   : > { %377 = sbr.rel (%p374_p3) target bundleno = 1611 (0x64b), region = 64  ;;  %s2046_s25 = smov (!%p374_p3), 120  }
   0x8   : > { %s2047_s26 = smov (!%p374_p3), 112   ;;  %s2048_s27 = smov (!%p374_p3), 96  }
   0x9   : > { %s2053_s21 = smov (!%p374_p3), 24  }
   0xc   : > { %v1995_v0 = vld [vmem:[%s2362_s5 + $0x8] sm:$0xff]   ;;  %v2043_v1 = vmov 0.0   ;;  %v1997_v3 = vld [vmem:[%s2362_s5] sm:$0xff]   ;;  %vm2044_vm0 = vmmov 0   ;;  %s2374_s17 = smov (!%p425_p4, %s2033_s17), 1  ;;  %vm474_vm1 = vcmask 261120   ;;  %v602_v24 = vlaneseq }
   0xd   : > { %1896 = vmatprep.subr.bf16.mxu1 %v2043_v1  ;;  %1888 = vmatprep.subr.bf16.mxu0 %v2043_v1  ;;  %v1996_v2 = vld [vmem:[%s2360_s3 + $0x8] sm:$0xff]   ;;  %v1998_v4 = vld [vmem:[%s2360_s3] sm:$0xff]   ;;  %s2152_s29 = sshll.u32 %s2374_s17, 3  ;;  %v2049_v22 = vmov 1983009808   ;;  %vm1039_vm2 = vcmask 64512  }
   0xe   : > { %1897 = vmatpush3.bf16.msra.mxu1 %v1995_v0  ;;  %1900 = vmatprep.mubr.msk.bf16.mxu1 %vm2044_vm0, %v2043_v1  ;;  %s435_s13 = scalar_lea.vmem %s2358_s1, %s2152_s29  ;;  %s431_s16 = scalar_lea.vmem %s2357_s0, %s2152_s29  ;;  %v1835_v9 = vld [vmem:[%s2363_s6] ss:$0 sm:$0xff]  ;;  %v600_v23 = vunpack.c.l.s4 %v2049_v22  ;;  %v2050_v25 = vmov 1934713408   ;;  %v603_v28 = vshrl.u32 %v602_v24, 7  ;;  %vm1278_vm4 = vcmask 1043456  }
   0xf   : > { %1889 = vmatpush3.bf16.msra.mxu0 %v1996_v2  ;;  %1898 = vmatprep.subr.bf16.mxu1 %v2043_v1  ;;  %v449_v5 = vld [vmem:[%s435_s13] sm:$0xff]  ;;  %v632_v26 = vunpack.c.l.s4 %v2050_v25  ;;  %s2052_s17 = smov 8   ;;  %vm1617_vm5 = vcmask 130048   ;;  %vm1619_vm6 = vcmask 195584   ;;  %s446_s12 = scalar_lea.vmem %s2368_s11, %s2152_s29 }
  0x10   : > { %1890 = vmatprep.subr.bf16.mxu0 %v2043_v1  ;;  %1892 = vmatprep.mubr.msk.bf16.mxu0 %vm2044_vm0, %v2043_v1  ;;  %v523_v6 = vpack.c.bf16 %v449_v5, %v449_v5  ;;  %v2164_v7 = vld [vmem:[%s431_s16] sm:$0xff]  ;;  %v601_v27 = vunpack.c.0.s8 %v600_v23  ;;  %s2051_s16 = smov 16  }
  0x11   : > { %v454_v8 = vpack.c.bf16 %v2164_v7, %v2164_v7  ;;  %v1831_v10 = vld [vmem:[%s2361_s4] ss:$0 sm:$0xff]  ;;  %v633_v31 = vunpack.c.0.s8 %v632_v26 }
  0x12   : > { %1899 = vmatpush3.bf16.msra.mxu1 %v1997_v3  ;;  %v2184_v32 = vsub.s32 %v601_v27, %v603_v28 }
  0x13   : > { %1891 = vmatpush3.bf16.msra.mxu0 %v1998_v4  ;;  %1910 = vmatprep.subr.bf16.mxu1 %v2043_v1  ;;  %v2192_v39 = vsub.s32 %v633_v31, %v603_v28 }
  0x14   : > { %1904 = vmatprep.subr.bf16.mxu0 %v2043_v1 }
  0x15   : > { %1901 = vmatmul.mubr.msk.bf16.vlgmr.msra.gmra.mxu1 %vm474_vm1, %v523_v6 }
  0x16   : > { %1893 = vmatmul.mubr.msk.bf16.vlgmr.msra.gmra.mxu0 %vm474_vm1, %v454_v8  ;;  %1912 = vmatprep.mubr.msk.bf16.mxu1 %vm2044_vm0, %v2043_v1 }
  0x17   : > { %1906 = vmatprep.mubr.msk.bf16.mxu0 %vm2044_vm0, %v2043_v1 }
  0xd5   : > { %v580_v11 = vpop.f32.mrf.mxu1 }
  0xd6   : > { %v581_v12 = vadd.f32 %v1835_v9, %v580_v11  ;;  %v512_v13 = vpop.f32.mrf.mxu0 }
  0xd7   : > { %v513_v14 = vadd.f32 %v1831_v10, %v512_v13  ;;  %v1902_v15 = vpop.f32.mrf.mxu1 }
  0xd8   : > { %744 = vrot.lane.b32.xlu1 %v581_v12, %s2045_s24  ;;  %738 = vrot.lane.b32.xlu0 %v581_v12, %s2046_s25  ;;  %v1894_v16 = vpop.f32.mrf.mxu0 }
  0xd9   : > { %v518_v17 = vmul.f32 0.35355338, %v513_v14  ;;  %v583_v18 = vpop.f32.mrf.mxu1 }
  0xda   : > { %v515_v19 = vpop.f32.mrf.mxu0 }
  0xdb   : > { %v1903_v20 = vpop.f32.mrf.mxu1 }
  0xdc   : > { %741 = vrot.lane.b32.xlu0 %v581_v12, %s2047_s26  ;;  %588 = vrot.lane.b32.xlu1 %v518_v17, %s2046_s25  ;;  %v1895_v21 = vpop.f32.mrf.mxu0 }
  0xe0   : > { %591 = vrot.lane.b32.xlu0 %v518_v17, %s2047_s26  ;;  %594 = vrot.lane.b32.xlu1 %v518_v17, %s2045_s24 }
  0xe4   : > { %887 = vrot.lane.b32.xlu0 %v581_v12, %s2048_s27 }
 0x14a   : > { %v2181_v29 = vpop.permute.xlu1 %744  ;;  %v739_v30 = vpop.permute.xlu0 %738 }
 0x14b   : > { %889 = vrot.lane.b32.xlu1 %v739_v30, %s2048_s27  ;;  %v763_v33 = vcombine.low %v739_v30, %v2181_v29  ;;  %v764_v34 = vcombine.high %v739_v30, %v2181_v29 }
 0x14d   : > { %v771_v40 = vrot.slane %v763_v33, %v2184_v32  ;;  %v778_v41 = vrot.slane %v764_v34, %v2184_v32 }
 0x14e   : > { %v2188_v35 = vpop.permute.xlu0 %741  ;;  %v589_v36 = vpop.permute.xlu1 %588 }
 0x14f   : > { %v747_v37 = vcombine.low %v581_v12, %v2188_v35  ;;  %v748_v38 = vcombine.high %v581_v12, %v2188_v35 }
 0x151   : > { %v755_v42 = vrot.slane %v747_v37, %v2184_v32  ;;  %v762_v43 = vrot.slane %v748_v38, %v2184_v32 }
 0x152   : > { %v592_v44 = vpop.permute.xlu0 %591  ;;  %v595_v45 = vpop.permute.xlu1 %594 }
 0x153   : > { %v779_v46 = vcombine.low %v755_v42, %v771_v40  ;;  %v780_v47 = vcombine.high %v755_v42, %v771_v40  ;;  %v795_v48 = vcombine.low %v762_v43, %v778_v41  ;;  %v796_v49 = vcombine.high %v762_v43, %v778_v41 }
 0x154   : > { %v597_v50 = vcombine.low %v518_v17, %v592_v44  ;;  %v598_v51 = vcombine.high %v518_v17, %v592_v44  ;;  %v613_v52 = vcombine.low %v589_v36, %v595_v45  ;;  %v614_v53 = vcombine.high %v589_v36, %v595_v45 }
 0x155   : > { %v787_v54 = vrot.slane %v779_v46, %v2192_v39  ;;  %v794_v55 = vrot.slane %v780_v47, %v2192_v39  ;;  %v803_v56 = vrot.slane %v795_v48, %v2192_v39  ;;  %v810_v57 = vrot.slane %v796_v49, %v2192_v39 }
 0x156   : > { %v605_v58 = vrot.slane %v597_v50, %v2184_v32  ;;  %v612_v59 = vrot.slane %v598_v51, %v2184_v32  ;;  %v621_v60 = vrot.slane %v613_v52, %v2184_v32  ;;  %v628_v61 = vrot.slane %v614_v53, %v2184_v32 }
 0x157   : > { %v815_v62 = vcombine.low %v787_v54, %v794_v55  ;;  %v1841_v63 = vcombine.high %v787_v54, %v794_v55  ;;  %v831_v0 = vcombine.low %v803_v56, %v810_v57  ;;  %v1842_v2 = vcombine.high %v803_v56, %v810_v57 }
 0x158   : > { %v629_v3 = vcombine.low %v605_v58, %v621_v60  ;;  %v630_v4 = vcombine.high %v605_v58, %v621_v60  ;;  %v645_v5 = vcombine.low %v612_v59, %v628_v61  ;;  %v646_v6 = vcombine.high %v612_v59, %v628_v61 }
 0x159   : > { %v822_v8 = vrot.slane %v815_v62, %v2184_v32  ;;  %v830_v9 = vrot.slane %v1841_v63, %v2184_v32  ;;  %v838_v10 = vrot.slane %v831_v0, %v2184_v32  ;;  %v846_v11 = vrot.slane %v1842_v2, %v2184_v32  ;;  %v586_v0 = vld [vmem:[%s2359_s2] sm:$0xff] }
 0x15a   : > { %v637_v12 = vrot.slane %v629_v3, %v2192_v39  ;;  %v644_v13 = vrot.slane %v630_v4, %v2192_v39  ;;  %v653_v14 = vrot.slane %v645_v5, %v2192_v39  ;;  %v660_v15 = vrot.slane %v646_v6, %v2192_v39 }
 0x15b   : > { %v847_v16 = vcombine.low %v822_v8, %v830_v9  ;;  %v863_v17 = vcombine.low %v838_v10, %v846_v11  ;;  %v848_v18 = vcombine.high %v822_v8, %v830_v9  ;;  %v864_v19 = vcombine.high %v838_v10, %v846_v11 }
 0x15c   : > { %v665_v20 = vcombine.low %v637_v12, %v644_v13  ;;  %v1839_v21 = vcombine.high %v637_v12, %v644_v13  ;;  %v681_v22 = vcombine.low %v653_v14, %v660_v15  ;;  %v1840_v23 = vcombine.high %v653_v14, %v660_v15 }
 0x15d   : > { %v855_v24 = vrot.slane %v847_v16, %v2192_v39  ;;  %v871_v25 = vrot.slane %v863_v17, %v2192_v39  ;;  %v862_v34 = vrot.slane %v848_v18, %v2192_v39  ;;  %v878_v36 = vrot.slane %v864_v19, %v2192_v39 }
 0x15e   : > { %v672_v26 = vrot.slane %v665_v20, %v2184_v32  ;;  %v680_v27 = vrot.slane %v1839_v21, %v2184_v32  ;;  %v688_v28 = vrot.slane %v681_v22, %v2184_v32  ;;  %v696_v30 = vrot.slane %v1840_v23, %v2184_v32 }
 0x15f   : > { %v879_v31 = vcombine.low %v855_v24, %v871_v25  ;;  %v880_v33 = vcombine.high %v855_v24, %v871_v25  ;;  %v881_v46 = vcombine.low %v862_v34, %v878_v36  ;;  %v882_v47 = vcombine.high %v862_v34, %v878_v36 }
 0x160   : > { %v697_v37 = vcombine.low %v672_v26, %v680_v27  ;;  %v713_v38 = vcombine.low %v688_v28, %v696_v30  ;;  %v698_v48 = vcombine.high %v672_v26, %v680_v27  ;;  %v714_v49 = vcombine.high %v688_v28, %v696_v30  ;;  %v888_v27 = vpop.permute.xlu0 %887 }
 0x161   : > { %v883_v40 = vpack.c.bf16 %v879_v31, %v879_v31  ;;  %v884_v41 = vpack.c.bf16 %v880_v33, %v880_v33  ;;  %v885_v52 = vpack.c.bf16 %v881_v46, %v881_v46  ;;  %v886_v53 = vpack.c.bf16 %v882_v47, %v882_v47 }
 0x162   : > { %v705_v42 = vrot.slane %v697_v37, %v2192_v39  ;;  %v721_v43 = vrot.slane %v713_v38, %v2192_v39  ;;  %v712_v56 = vrot.slane %v698_v48, %v2192_v39  ;;  %v728_v57 = vrot.slane %v714_v49, %v2192_v39 }
 0x163   : > { %v1044_v44 = vsel %vm1039_vm2, %v883_v40, 0  ;;  %v1090_v45 = vsel %vm1039_vm2, %v884_v41, 0  ;;  %v1136_v58 = vsel %vm1039_vm2, %v885_v52, 0  ;;  %v1182_v59 = vsel %vm1039_vm2, %v886_v53, 0 }
 0x164   : > { %1905 = vmatpush3.bf16.xpose.msra.mxu0 %v1044_v44  ;;  %1911 = vmatpush3.bf16.xpose.msra.mxu1 %v1090_v45  ;;  %v729_v50 = vcombine.low %v705_v42, %v721_v43  ;;  %v730_v51 = vcombine.high %v705_v42, %v721_v43  ;;  %v731_v60 = vcombine.low %v712_v56, %v728_v57  ;;  %vm1224_vm3 = vcmp.gt.f32.partialorder %v586_v0, 0.0 }
 0x165   : > { %1916 = vmatprep.subr.bf16.mxu0 %v2043_v1  ;;  %1922 = vmatprep.subr.bf16.mxu1 %v2043_v1  ;;  %v732_v61 = vcombine.high %v712_v56, %v728_v57 }
 0x166   : > { %v733_v54 = vpack.c.bf16 %v729_v50, %v729_v50  ;;  %v734_v55 = vpack.c.bf16 %v730_v51, %v730_v51  ;;  %v735_v62 = vpack.c.bf16 %v731_v60, %v731_v60 }
 0x167   : > { %v736_v63 = vpack.c.bf16 %v732_v61, %v732_v61 }
 0x16b   : > { %1907 = vmatmul.mubr.msk.bf16.vlgmr.msra.gmra.mxu0 %vm1039_vm2, %v733_v54  ;;  %1913 = vmatmul.mubr.msk.bf16.vlgmr.msra.gmra.mxu1 %vm1039_vm2, %v734_v55 }
 0x16c   : > { %1917 = vmatpush3.bf16.xpose.msra.mxu0 %v1136_v58  ;;  %1923 = vmatpush3.bf16.xpose.msra.mxu1 %v1182_v59 }
 0x16d   : > { %1918 = vmatprep.mubr.msk.bf16.mxu0 %vm2044_vm0, %v2043_v1  ;;  %1924 = vmatprep.mubr.msk.bf16.mxu1 %vm2044_vm0, %v2043_v1 }
 0x16e   : > { %1928 = vmatprep.subr.bf16.mxu0 %v2043_v1  ;;  %1934 = vmatprep.subr.bf16.mxu1 %v2043_v1 }
 0x173   : > { %1919 = vmatmul.mubr.msk.bf16.vlgmr.msra.gmra.mxu0 %vm1039_vm2, %v735_v62  ;;  %1925 = vmatmul.mubr.msk.bf16.vlgmr.msra.gmra.mxu1 %vm1039_vm2, %v736_v63 }
 0x174   : > { %1930 = vmatprep.mubr.msk.bf16.mxu0 %vm2044_vm0, %v2043_v1  ;;  %1936 = vmatprep.mubr.msk.bf16.mxu1 %vm2044_vm0, %v2043_v1 }
 0x1bd   : > { %v890_v28 = vpop.permute.xlu1 %889 }
 0x22b   : > { %v1080_v2 = vpop.f32.mrf.mxu0  ;;  %v1126_v3 = vpop.f32.mrf.mxu1 }
 0x22c   : > { %v1227_v4 = vsel %vm1224_vm3, %v1080_v2, -1e+09  ;;  %v1228_v5 = vsel %vm1224_vm3, %v1126_v3, -1e+09 }
 0x22d   : > { %v1908_v6 = vpop.f32.mrf.mxu0  ;;  %v1914_v8 = vpop.f32.mrf.mxu1  ;;  %v1234_v9 = vsel %vm1039_vm2, %v1228_v5, -inf  ;;  %v1231_v10 = vsel %vm1039_vm2, %v1227_v4, -inf }
 0x22e   : > { %1235 = vmax.xlane.f32.xlu1 %v1234_v9  ;;  %1232 = vmax.xlane.f32.xlu0 %v1231_v10 }
 0x22f   : > { %v1083_v11 = vpop.f32.mrf.mxu0  ;;  %v1129_v12 = vpop.f32.mrf.mxu1 }
 0x231   : > { %v1909_v13 = vpop.f32.mrf.mxu0  ;;  %v1915_v14 = vpop.f32.mrf.mxu1 }
 0x233   : > { %v1172_v15 = vpop.f32.mrf.mxu0  ;;  %v1218_v16 = vpop.f32.mrf.mxu1 }
 0x234   : > { %v2258_v23 = vsel %vm1224_vm3, %v1172_v15, -1e+09  ;;  %v2261_v24 = vsel %vm1224_vm3, %v1218_v16, -1e+09 }
 0x235   : > { %v1920_v17 = vpop.f32.mrf.mxu0  ;;  %v1926_v18 = vpop.f32.mrf.mxu1  ;;  %v1240_v25 = vsel %vm1039_vm2, %v2261_v24, -inf  ;;  %v1237_v26 = vsel %vm1039_vm2, %v2258_v23, -inf }
 0x237   : > { %v1175_v19 = vpop.f32.mrf.mxu0  ;;  %v1221_v20 = vpop.f32.mrf.mxu1 }
 0x239   : > { %v1921_v21 = vpop.f32.mrf.mxu0  ;;  %v1927_v22 = vpop.f32.mrf.mxu1 }
 0x23f   : > { %893 = vrot.lane.b32.xlu1 %v2181_v29, %s2048_s27 }
 0x244   : > { %891 = vrot.lane.b32.xlu0 %v2188_v35, %s2048_s27 }
 0x263   : > { %1241 = vmax.xlane.f32.xlu1 %v1240_v25  ;;  %1238 = vmax.xlane.f32.xlu0 %v1237_v26 }
 0x2b7   : > { %v1236_v29 = vpop.xlane.xlu1 %1235  ;;  %v1233_v30 = vpop.xlane.xlu0 %1232 }
 0x2b8   : > { %v1244_v31 = vsub.f32 %v1228_v5, %v1236_v29  ;;  %v1243_v35 = vsub.f32 %v1227_v4, %v1233_v30 }
 0x2ba   : > { %v1247_v33 = vmul.f32 1.442695, %v1243_v35  ;;  %v1249_v34 = vmul.f32 1.442695, %v1244_v31 }
 0x2bb   : > { %v894_v36 = vpop.permute.xlu1 %893  ;;  %v892_v37 = vpop.permute.xlu0 %891 }
 0x2bc   : > { %v915_v38 = vcombine.low %v890_v28, %v894_v36  ;;  %v916_v40 = vcombine.high %v890_v28, %v894_v36  ;;  %v899_v41 = vcombine.low %v888_v27, %v892_v37  ;;  %2001 = vpow2.f32 %v1247_v33 }
 0x2bd   : > { %v900_v42 = vcombine.high %v888_v27, %v892_v37  ;;  %2003 = vpow2.f32 %v1249_v34 }
 0x2be   : > { %v923_v43 = vrot.slane %v915_v38, %v2184_v32  ;;  %v930_v44 = vrot.slane %v916_v40, %v2184_v32  ;;  %v907_v45 = vrot.slane %v899_v41, %v2184_v32 }
 0x2bf   : > { %v914_v46 = vrot.slane %v900_v42, %v2184_v32 }
 0x2c0   : > { %v931_v47 = vcombine.low %v907_v45, %v923_v43  ;;  %v932_v48 = vcombine.high %v907_v45, %v923_v43 }
 0x2c1   : > { %v947_v49 = vcombine.low %v914_v46, %v930_v44  ;;  %v948_v50 = vcombine.high %v914_v46, %v930_v44 }
 0x2c2   : > { %v939_v51 = vrot.slane %v931_v47, %v2192_v39  ;;  %v946_v52 = vrot.slane %v932_v48, %v2192_v39 }
 0x2c3   : > { %v955_v53 = vrot.slane %v947_v49, %v2192_v39  ;;  %v962_v54 = vrot.slane %v948_v50, %v2192_v39 }
 0x2c4   : > { %v967_v55 = vcombine.low %v939_v51, %v946_v52  ;;  %v1843_v56 = vcombine.high %v939_v51, %v946_v52 }
 0x2c5   : > { %v983_v57 = vcombine.low %v955_v53, %v962_v54  ;;  %v1844_v58 = vcombine.high %v955_v53, %v962_v54 }
 0x2c6   : > { %v974_v59 = vrot.slane %v967_v55, %v2184_v32  ;;  %v982_v60 = vrot.slane %v1843_v56, %v2184_v32 }
 0x2c7   : > { %v990_v61 = vrot.slane %v983_v57, %v2184_v32  ;;  %v998_v62 = vrot.slane %v1844_v58, %v2184_v32 }
 0x2c8   : > { %v999_v63 = vcombine.low %v974_v59, %v982_v60  ;;  %v1000_v0 = vcombine.high %v974_v59, %v982_v60 }
 0x2c9   : > { %v1015_v2 = vcombine.low %v990_v61, %v998_v62  ;;  %v1016_v3 = vcombine.high %v990_v61, %v998_v62  ;;  %v2002_v4 = vpop.eup %2001 }
 0x2ca   : > { %v1007_v5 = vrot.slane %v999_v63, %v2192_v39  ;;  %v1014_v6 = vrot.slane %v1000_v0, %v2192_v39  ;;  %v1255_v8 = vsel %vm1039_vm2, %v2002_v4, 0.0  ;;  %v2004_v11 = vpop.eup %2003  ;;  %v1271_v25 = vpack.c.bf16 %v2002_v4, %v2002_v4 }
 0x2cb   : > { %v1023_v9 = vrot.slane %v1015_v2, %v2192_v39  ;;  %v1030_v10 = vrot.slane %v1016_v3, %v2192_v39  ;;  %1256 = vadd.xlane.f32.xlu0 %v1255_v8  ;;  %v1258_v16 = vsel %vm1039_vm2, %v2004_v11, 0.0  ;;  %v1272_v26 = vpack.c.bf16 %v2004_v11, %v2004_v11 }
 0x2cd   : > { %v1031_v12 = vcombine.low %v1007_v5, %v1023_v9  ;;  %v1032_v13 = vcombine.high %v1007_v5, %v1023_v9  ;;  %v1033_v14 = vcombine.low %v1014_v6, %v1030_v10  ;;  %v1034_v15 = vcombine.high %v1014_v6, %v1030_v10 }
 0x2cf   : > { %v1035_v17 = vpack.c.bf16 %v1031_v12, %v1031_v12  ;;  %v1036_v18 = vpack.c.bf16 %v1032_v13, %v1032_v13  ;;  %1259 = vadd.xlane.f32.xlu0 %v1258_v16  ;;  %v1037_v21 = vpack.c.bf16 %v1033_v14, %v1033_v14  ;;  %v1038_v22 = vpack.c.bf16 %v1034_v15, %v1034_v15 }
 0x2d1   : > { %v1280_v19 = vsel %vm1278_vm4, %v1035_v17, 0  ;;  %v1326_v20 = vsel %vm1278_vm4, %v1036_v18, 0  ;;  %v1372_v27 = vsel %vm1278_vm4, %v1037_v21, 0  ;;  %v1418_v28 = vsel %vm1278_vm4, %v1038_v22, 0 }
 0x2d2   : > { %1929 = vmatpush3.bf16.msra.mxu0 %v1280_v19  ;;  %1935 = vmatpush3.bf16.msra.mxu1 %v1326_v20 }
 0x2d3   : > { %1940 = vmatprep.subr.bf16.mxu0 %v2043_v1  ;;  %1946 = vmatprep.subr.bf16.mxu1 %v2043_v1 }
 0x2d5   : > { %1931 = vmatmul.mubr.msk.bf16.vlgmr.msra.gmra.mxu0 %vm1039_vm2, %v1271_v25  ;;  %1937 = vmatmul.mubr.msk.bf16.vlgmr.msra.gmra.mxu1 %vm1039_vm2, %v1272_v26  ;;  %v1999_v25 = vld [vmem:[%s2364_s7 + $0x8] sm:$0xff]  }
 0x2d6   : > { %1941 = vmatpush3.bf16.msra.mxu0 %v1372_v27  ;;  %1947 = vmatpush3.bf16.msra.mxu1 %v1418_v28 }
 0x2d7   : > { %1942 = vmatprep.mubr.msk.bf16.mxu0 %vm2044_vm0, %v2043_v1  ;;  %1948 = vmatprep.mubr.msk.bf16.mxu1 %vm2044_vm0, %v2043_v1 }
 0x2d8   : > { %1952 = vmatprep.subr.bf16.mxu0 %v2043_v1 }
 0x2ec   : > { %v1242_v29 = vpop.xlane.xlu1 %1241  ;;  %v1239_v30 = vpop.xlane.xlu0 %1238 }
 0x2ed   : > { %v1246_v31 = vsub.f32 %v2261_v24, %v1242_v29  ;;  %v1245_v35 = vsub.f32 %v2258_v23, %v1239_v30 }
 0x2ef   : > { %v1253_v33 = vmul.f32 1.442695, %v1246_v31  ;;  %v1251_v34 = vmul.f32 1.442695, %v1245_v35 }
 0x2f1   : > { %2005 = vpow2.f32 %v1253_v33 }
 0x2f2   : > { %2007 = vpow2.f32 %v1251_v34  ;;  %v2000_v34 = vld [vmem:[%s2364_s7] sm:$0xff]  }
 0x2fe   : > { %v2006_v36 = vpop.eup %2005 }
 0x2ff   : > { %v2008_v37 = vpop.eup %2007  ;;  %v1264_v38 = vsel %vm1039_vm2, %v2006_v36, 0.0  ;;  %v1274_v40 = vpack.c.bf16 %v2006_v36, %v2006_v36 }
 0x300   : > { %1265 = vadd.xlane.f32.xlu0 %v1264_v38  ;;  %v1261_v41 = vsel %vm1039_vm2, %v2008_v37, 0.0  ;;  %v1273_v42 = vpack.c.bf16 %v2008_v37, %v2008_v37 }
 0x301   : > { %1262 = vadd.xlane.f32.xlu1 %v1261_v41  ;;  %1949 = vmatmul.mubr.msk.bf16.vlgmr.msra.gmra.mxu1 %vm1039_vm2, %v1274_v40 }
 0x302   : > { %1943 = vmatmul.mubr.msk.bf16.vlgmr.msra.gmra.mxu0 %vm1039_vm2, %v1273_v42 }
 0x303   : > { %1956 = vmatprep.mubr.msk.bf16.mxu0 %vm2044_vm0, %v2043_v1  ;;  %1953 = vmatpush3.bf16.msra.mxu0 %v1999_v25 }
 0x304   : > { %1954 = vmatprep.subr.bf16.mxu0 %v2043_v1 }
 0x307   : > { %1955 = vmatpush3.bf16.msra.mxu0 %v2000_v34 }
 0x354   : > { %v1257_v49 = vpop.xlane.xlu0 %1256 }
 0x355   : > { %v1267_v52 = vmax.f32 %v1257_v49, 1e-20 }
 0x357   : > { %2009 = vrcp.f32 %v1267_v52 }
 0x358   : > { %v1260_v50 = vpop.xlane.xlu0 %1259 }
 0x359   : > { %v1268_v54 = vmax.f32 %v1260_v50, 1e-20 }
 0x35b   : > { %2011 = vrcp.f32 %v1268_v54 }
 0x364   : > { %v2010_v57 = vpop.eup %2009 }
 0x368   : > { %v2012_v58 = vpop.eup %2011 }
 0x389   : > { %v1266_v51 = vpop.xlane.xlu0 %1265 }
 0x38a   : > { %v1263_v53 = vpop.xlane.xlu1 %1262  ;;  %v1270_v55 = vmax.f32 %v1266_v51, 1e-20 }
 0x38b   : > { %v1269_v56 = vmax.f32 %v1263_v53, 1e-20 }
 0x38c   : > { %2013 = vrcp.f32 %v1270_v55  ;;  %v1855_v55 = vld [vmem:[%s2365_s8] ss:$0 sm:$0xff] }
 0x38d   : > { %2015 = vrcp.f32 %v1269_v56 }
 0x395   : > { %v1316_v23 = vpop.f32.mrf.mxu0  ;;  %v1362_v24 = vpop.f32.mrf.mxu1 }
 0x396   : > { %v1465_v62 = vmul.f32 %v2012_v58, %v1362_v24  ;;  %v1464_v2 = vmul.f32 %v2010_v57, %v1316_v23 }
 0x397   : > { %v1932_v43 = vpop.f32.mrf.mxu0  ;;  %v1938_v44 = vpop.f32.mrf.mxu1 }
 0x399   : > { %v1319_v45 = vpop.f32.mrf.mxu0  ;;  %v1365_v46 = vpop.f32.mrf.mxu1 }
 0x39a   : > { %v2014_v59 = vpop.eup %2013 }
 0x39b   : > { %v1933_v47 = vpop.f32.mrf.mxu0  ;;  %v1939_v48 = vpop.f32.mrf.mxu1 }
 0x39c   : > { %v2016_v61 = vpop.eup %2015 }
 0x3c1   : > { %v1454_v60 = vpop.f32.mrf.mxu1 }
 0x3c2   : > { %v1408_v63 = vpop.f32.mrf.mxu0  ;;  %v1467_v0 = vmul.f32 %v2014_v59, %v1454_v60 }
 0x3c3   : > { %v1466_v3 = vmul.f32 %v2016_v61, %v1408_v63  ;;  %v1950_v4 = vpop.f32.mrf.mxu1 }
 0x3c4   : > { %v1484_v5 = vcombine.low %v1465_v62, %v1467_v0  ;;  %v1485_v6 = vcombine.high %v1465_v62, %v1467_v0  ;;  %v1944_v8 = vpop.f32.mrf.mxu0 }
 0x3c5   : > { %v1468_v9 = vcombine.low %v1464_v2, %v1466_v3  ;;  %v1469_v10 = vcombine.high %v1464_v2, %v1466_v3  ;;  %v1457_v11 = vpop.f32.mrf.mxu1 }
 0x3c6   : > { %v1492_v12 = vrot.slane %v1484_v5, %v2184_v32  ;;  %v1499_v13 = vrot.slane %v1485_v6, %v2184_v32  ;;  %v1411_v14 = vpop.f32.mrf.mxu0  ;;  %v1860_v11 = vld [vmem:[%s2367_s10] ss:$0 sm:$0xff] }
 0x3c7   : > { %v1476_v15 = vrot.slane %v1468_v9, %v2184_v32  ;;  %v1483_v16 = vrot.slane %v1469_v10, %v2184_v32  ;;  %v1951_v17 = vpop.f32.mrf.mxu1 }
 0x3c8   : > { %v1945_v18 = vpop.f32.mrf.mxu0 }
 0x3c9   : > { %v1500_v19 = vcombine.low %v1476_v15, %v1492_v12  ;;  %v1501_v20 = vcombine.high %v1476_v15, %v1492_v12  ;;  %v1516_v21 = vcombine.low %v1483_v16, %v1499_v13  ;;  %v1517_v22 = vcombine.high %v1483_v16, %v1499_v13 }
 0x3cb   : > { %v1508_v26 = vrot.slane %v1500_v19, %v2192_v39  ;;  %v1515_v27 = vrot.slane %v1501_v20, %v2192_v39  ;;  %v1524_v28 = vrot.slane %v1516_v21, %v2192_v39  ;;  %v1531_v29 = vrot.slane %v1517_v22, %v2192_v39 }
 0x3cd   : > { %v1536_v30 = vcombine.low %v1508_v26, %v1515_v27  ;;  %v1853_v31 = vcombine.high %v1508_v26, %v1515_v27  ;;  %v1552_v35 = vcombine.low %v1524_v28, %v1531_v29  ;;  %v1854_v33 = vcombine.high %v1524_v28, %v1531_v29 }
 0x3cf   : > { %v1543_v36 = vrot.slane %v1536_v30, %v2184_v32  ;;  %v1551_v37 = vrot.slane %v1853_v31, %v2184_v32  ;;  %v1559_v38 = vrot.slane %v1552_v35, %v2184_v32  ;;  %v1567_v40 = vrot.slane %v1854_v33, %v2184_v32 }
 0x3d1   : > { %v1569_v41 = vcombine.high %v1543_v36, %v1551_v37  ;;  %v1585_v42 = vcombine.high %v1559_v38, %v1567_v40  ;;  %v1568_v1 = vcombine.low %v1543_v36, %v1551_v37  ;;  %v1584_v23 = vcombine.low %v1559_v38, %v1567_v40 }
 0x3d3   : > { %v1583_v24 = vrot.slane %v1569_v41, %v2192_v39  ;;  %v1599_v43 = vrot.slane %v1585_v42, %v2192_v39  ;;  %v1576_v44 = vrot.slane %v1568_v1, %v2192_v39  ;;  %v1592_v45 = vrot.slane %v1584_v23, %v2192_v39 }
 0x3d5   : > { %v1602_v46 = vcombine.low %v1583_v24, %v1599_v43  ;;  %v1601_v47 = vcombine.high %v1576_v44, %v1592_v45  ;;  %v1600_v48 = vcombine.low %v1576_v44, %v1592_v45  ;;  %v1603_v32 = vcombine.high %v1583_v24, %v1599_v43 }
 0x3d7   : > { %1609 = vrot.lane.b32.xlu0 %v1602_v46, %s2051_s16  ;;  %1605 = vrot.lane.b32.xlu1 %v1601_v47, %s2052_s17 }
 0x3db   : > { %1613 = vrot.lane.b32.xlu1 %v1603_v32, %s2053_s21 }
 0x449   : > { %v1606_v49 = vpop.permute.xlu1 %1605  ;;  %v1610_v50 = vpop.permute.xlu0 %1609 }
 0x44a   : > { %v1616_v51 = vsel %vm1039_vm2, %v1600_v48, %v1606_v49 }
 0x44b   : > { %v1618_v53 = vsel %vm1617_vm5, %v1616_v51, %v1610_v50 }
 0x44d   : > { %v1614_v52 = vpop.permute.xlu1 %1613 }
 0x44e   : > { %v1620_v54 = vsel %vm1619_vm6, %v1618_v53, %v1614_v52 }
 0x44f   : > { %v1625_v39 = vpack.c.bf16 %v1620_v54, %v1620_v54 }
 0x451   : > { %1957 = vmatmul.mubr.msk.bf16.vlgmr.msra.gmra.mxu0 %vm474_vm1, %v1625_v39 }
 0x511   : > { %v1682_v56 = vpop.f32.mrf.mxu0 }
 0x512   : > { %v1683_v57 = vadd.f32 %v1855_v55, %v1682_v56 }
 0x513   : > { %v1958_v58 = vpop.f32.mrf.mxu0 }
 0x514   : > { %v1690_v59 = vadd.f32 %v1683_v57, %v2164_v7  ;;  %v1859_v7 = vld [vmem:[%s2366_s9] ss:$0 sm:$0xff] }
 0x515   : > { %v1685_v60 = vpop.f32.mrf.mxu0 }
 0x516   : > { %v1691_v61 = vsel %vm474_vm1, %v1690_v59, 0.0 }
 0x517   : > { %1692 = vadd.xlane.f32.xlu1 %v1691_v61  ;;  %v1959_v62 = vpop.f32.mrf.mxu0 }
 0x5a0   : > { %v1693_v63 = vpop.xlane.xlu1 %1692 }
 0x5a1   : > { %v1695_v0 = vmul.f32 0.03125, %v1693_v63 }
 0x5a3   : > { %v1696_v2 = vsub.f32 %v1690_v59, %v1695_v0 }
 0x5a5   : > { %v1697_v3 = vmul.f32 %v1696_v2, %v1696_v2 }
 0x5a7   : > { %v1698_v4 = vsel %vm474_vm1, %v1697_v3, 0.0 }
 0x5a8   : > { %1699 = vadd.xlane.f32.xlu0 %v1698_v4 }
 0x631   : > { %v1700_v5 = vpop.xlane.xlu0 %1699 }
 0x632   : > { %v1701_v6 = vmul.f32 0.03125, %v1700_v5 }
 0x634   : > { %v1702_v8 = vadd.f32 1e-05, %v1701_v6 }
 0x636   : > { %2017 = vrsqrt.f32 %v1702_v8 }
 0x643   : > { %v2018_v9 = vpop.eup %2017 }
 0x644   : > { %v1704_v10 = vmul.f32 %v2018_v9, %v1696_v2 }
 0x646   : > { %v1711_v12 = vmul.f32 %v1859_v7, %v1704_v10 }
 0x648   : > { %v1718_v13 = vadd.f32 %v1860_v11, %v1711_v12 }
 0x64a   : > { %1719 = vst.msk [vmem:[%s446_s12] sm:$0xff] %vm474_vm1, %v1718_v13 }
 0x64b PF: > { %s21_s19 = sadd.s32 1, %s2041_s19   ;;  %s2369_s17 = smov %s2037_s18 }
 0x64c   : > { %p18_p5 = scmp.ge.s32.totalorder %s21_s19, 4   ;;  %s2370_s18 = smov %s2372_s20 }
 0x64e   :  { %20 = sbr.rel (!%p18_p5) target bundleno = 2 (0x2), region = 100 }

</bundles_post_ra>
